<compile_context>
chip_gen: v5e
topology: v5e:2x2
jax: 0.10.0
libtpu: 0.0.40
codegen_flags: <defaults>
</compile_context>

<pallas_src>
import functools

import jax
import jax.numpy as jnp
from jax import lax
from jax.experimental import pallas as pl
from jax.experimental.pallas import tpu as pltpu

EPS = 1e-5          # PyTorch BatchNorm2d default eps
LANE = 128          # TPU lane width


def _round_up(x, m):
    return (x + m - 1) // m * m


def _pick_tm(m, target):
    """Largest divisor of m <= target that is a multiple of 16 (bf16 packing),
    falling back to a multiple of 8, else m itself."""
    t = min(target, m)
    for align in (16, 8):
        for cand in range(t, 0, -1):
            if m % cand == 0 and cand % align == 0:
                return cand
    return m


def _compiler_params(n_axes=1):
    # All grids carry only per-tile outputs -> every axis is "parallel"
    # (sharded across both TensorCores on v7x).  Explicit VMEM limit keeps us
    # well inside v7x's 64 MiB while raising v5e's 16 MiB scoped default.
    return pltpu.CompilerParams(
        dimension_semantics=("parallel",) * n_axes,
        vmem_limit_bytes=32 * 1024 * 1024)


# ----------------------------- Pallas kernels ------------------------------ #

def _mm_stats_kernel(x_ref, w_ref, y_ref, stats_ref):
    # x: (tm, K) bf16, w: (K, C) bf16 resident.
    # y: (tm, C) bf16.  stats: (1, 8, C) f32 per-tile (row0=sum, row1=sum sq).
    y = jnp.dot(x_ref[...], w_ref[...], preferred_element_type=jnp.float32)
    y_ref[...] = y.astype(y_ref.dtype)
    s = jnp.sum(y, axis=0, keepdims=True)
    sq = jnp.sum(y * y, axis=0, keepdims=True)
    stats_ref[0] = jnp.concatenate(
        [s, sq, jnp.zeros((6, y.shape[1]), jnp.float32)], axis=0)


def _bn_relu_conv3x3_stats_kernel(y1_ref, scale_ref, shift_ref, w_ref,
                                  y2_ref, stats_ref, xpad_ref, *, H, W):
    # Fused: BN1 + ReLU on this image's (H, W, Cin) tile, zero halo built in a
    # VMEM scratch, then a 3x3 conv as 3 matmuls with dw folded into K=3*Cin.
    # y1: (1, H, W, Cin) bf16; scale/shift: (1, Cin) f32 resident;
    # w: (3, 3*Cin, Cout) bf16 resident; y2: (H*W, Cout) bf16;
    # stats: (1, 8, Cout) f32; xpad (scratch): (H+2, W+2, Cin) bf16.
    cin = y1_ref.shape[-1]
    cout = w_ref.shape[-1]
    dt = xpad_ref.dtype

    # BN1 + ReLU (f32 math) and zero border, all in VMEM (no host-side pad).
    sc = scale_ref[...].reshape(1, 1, cin)
    sh = shift_ref[...].reshape(1, 1, cin)
    x1 = jnp.maximum(y1_ref[0].astype(jnp.float32) * sc + sh, 0.0).astype(dt)
    zc = jnp.zeros((H, 1, cin), dt)
    zr = jnp.zeros((1, W + 2, cin), dt)
    xw = jnp.concatenate([zc, x1, zc], axis=1)             # (H,   W+2, Cin)
    xpad_ref[...] = jnp.concatenate([zr, xw, zr], axis=0)  # (H+2, W+2, Cin)

    # 3 matmuls with K = 3*Cin (dw taps folded into K), f32 accumulation.
    acc = jnp.zeros((H * W, cout), jnp.float32)
    for dh in range(3):
        patch = jnp.concatenate(
            [xpad_ref[dh:dh + H, 0:W, :],
             xpad_ref[dh:dh + H, 1:W + 1, :],
             xpad_ref[dh:dh + H, 2:W + 2, :]],
            axis=-1).reshape(H * W, 3 * cin)
        acc += jnp.dot(patch, w_ref[dh], preferred_element_type=jnp.float32)

    y2_ref[...] = acc.astype(y2_ref.dtype)
    s = jnp.sum(acc, axis=0, keepdims=True)
    sq = jnp.sum(acc * acc, axis=0, keepdims=True)
    stats_ref[0] = jnp.concatenate(
        [s, sq, jnp.zeros((6, cout), jnp.float32)], axis=0)


def _bn_relu_mm_stats_kernel(y_ref, scale_ref, shift_ref, w_ref,
                             o_ref, stats_ref):
    # Fused: x = relu(y*scale+shift); out = x @ w (bf16 MXU, f32 acc) + stats.
    x = jnp.maximum(
        y_ref[...].astype(jnp.float32) * scale_ref[...] + shift_ref[...], 0.0)
    y = jnp.dot(x.astype(w_ref.dtype), w_ref[...],
                preferred_element_type=jnp.float32)
    o_ref[...] = y.astype(o_ref.dtype)
    s = jnp.sum(y, axis=0, keepdims=True)
    sq = jnp.sum(y * y, axis=0, keepdims=True)
    stats_ref[0] = jnp.concatenate(
        [s, sq, jnp.zeros((6, y.shape[1]), jnp.float32)], axis=0)


def _bn_relu_add_relu_kernel(y_ref, scale_ref, shift_ref, skip_ref, o_ref):
    # Final stage: relu(relu(y*scale+shift) + skip), bf16 in / bf16 out.
    act = jnp.maximum(
        y_ref[...].astype(jnp.float32) * scale_ref[...] + shift_ref[...], 0.0)
    o_ref[...] = jnp.maximum(
        act + skip_ref[...].astype(jnp.float32), 0.0).astype(o_ref.dtype)


# ------------------------------ host wrappers ------------------------------ #

def matmul_stats(x2d, w, *, tm):
    M, K = x2d.shape
    C = w.shape[1]
    G = M // tm
    return pl.pallas_call(
        _mm_stats_kernel,
        grid=(G,),
        in_specs=[pl.BlockSpec((tm, K), lambda i: (i, 0)),
                  pl.BlockSpec((K, C), lambda i: (0, 0))],
        out_specs=(pl.BlockSpec((tm, C), lambda i: (i, 0)),
                   pl.BlockSpec((1, 8, C), lambda i: (i, 0, 0))),
        out_shape=(jax.ShapeDtypeStruct((M, C), jnp.bfloat16),
                   jax.ShapeDtypeStruct((G, 8, C), jnp.float32)),
        compiler_params=_compiler_params(1),
    )(x2d, w)


def bn_relu_conv3x3_stats(y1_nhwc, scale, shift, w3x3, *, H, W):
    N = y1_nhwc.shape[0]
    cin = y1_nhwc.shape[-1]
    cout = w3x3.shape[-1]
    M = N * H * W
    kernel = functools.partial(_bn_relu_conv3x3_stats_kernel, H=H, W=W)
    return pl.pallas_call(
        kernel,
        grid=(N,),
        in_specs=[
            pl.BlockSpec((1, H, W, cin), lambda n: (n, 0, 0, 0)),
            pl.BlockSpec((1, cin), lambda n: (0, 0)),
            pl.BlockSpec((1, cin), lambda n: (0, 0)),
            pl.BlockSpec((3, 3 * cin, cout), lambda n: (0, 0, 0)),
        ],
        out_specs=(pl.BlockSpec((H * W, cout), lambda n: (n, 0)),
                   pl.BlockSpec((1, 8, cout), lambda n: (n, 0, 0))),
        out_shape=(jax.ShapeDtypeStruct((M, cout), jnp.bfloat16),
                   jax.ShapeDtypeStruct((N, 8, cout), jnp.float32)),
        scratch_shapes=[pltpu.VMEM((H + 2, W + 2, cin), jnp.bfloat16)],
        compiler_params=_compiler_params(1),
    )(y1_nhwc, scale, shift, w3x3)


def bn_relu_matmul_stats(y_in, scale, shift, w, *, tm):
    M, Cin = y_in.shape
    Cout = w.shape[1]
    G = M // tm
    return pl.pallas_call(
        _bn_relu_mm_stats_kernel,
        grid=(G,),
        in_specs=[pl.BlockSpec((tm, Cin), lambda i: (i, 0)),
                  pl.BlockSpec((1, Cin), lambda i: (0, 0)),
                  pl.BlockSpec((1, Cin), lambda i: (0, 0)),
                  pl.BlockSpec((Cin, Cout), lambda i: (0, 0))],
        out_specs=(pl.BlockSpec((tm, Cout), lambda i: (i, 0)),
                   pl.BlockSpec((1, 8, Cout), lambda i: (i, 0, 0))),
        out_shape=(jax.ShapeDtypeStruct((M, Cout), jnp.bfloat16),
                   jax.ShapeDtypeStruct((G, 8, Cout), jnp.float32)),
        compiler_params=_compiler_params(1),
    )(y_in, scale, shift, w)


def bn_relu_add_relu(y, scale, shift, skip, *, tm):
    M, C = y.shape
    return pl.pallas_call(
        _bn_relu_add_relu_kernel,
        grid=(M // tm,),
        in_specs=[pl.BlockSpec((tm, C), lambda i: (i, 0)),
                  pl.BlockSpec((1, C), lambda i: (0, 0)),
                  pl.BlockSpec((1, C), lambda i: (0, 0)),
                  pl.BlockSpec((tm, C), lambda i: (i, 0))],
        out_specs=pl.BlockSpec((tm, C), lambda i: (i, 0)),
        out_shape=jax.ShapeDtypeStruct((M, C), jnp.bfloat16),
        compiler_params=_compiler_params(1),
    )(y, scale, shift, skip)


def _bn_scale_shift(stats, count, gamma, beta):
    # stats: (G, 8, C) per-tile partials; row 0 = sum, row 1 = sum of squares.
    # Single-pass moments (biased var, as train-mode BatchNorm2d uses), O(C) in
    # plain JAX.
    tot = jnp.sum(stats, axis=0)
    s, sq = tot[0:1, :], tot[1:2, :]
    mean = s / count
    var = jnp.maximum(sq / count - mean * mean, 0.0)
    scale = gamma * lax.rsqrt(var + EPS)
    shift = beta - mean * scale
    return scale, shift


# --------------------------- params & forward pass -------------------------- #

def init_params(key, in_channels, out_channels):
    """Synthetic params in the padded matmul layout (+ raw PyTorch-layout copies
    for the reference check).  Conv biases are omitted: under train-mode BN a
    per-channel conv bias cancels exactly."""
    ks = jax.random.split(key, 3)
    c1 = c2 = out_channels
    c3 = 4 * out_channels

    w1_pt = 0.1 * jax.random.normal(ks[0], (c1, in_channels, 1, 1), jnp.float32)
    w2_pt = 0.1 * jax.random.normal(ks[1], (c2, c1, 3, 3), jnp.float32)
    w3_pt = 0.1 * jax.random.normal(ks[2], (c3, c2, 1, 1), jnp.float32)

    cin_p = _round_up(in_channels, LANE)
    c1_p = _round_up(c1, LANE)
    c2_p = _round_up(c2, LANE)
    c3_p = _round_up(c3, LANE)

    def to_mat_1x1(w_pt, ci_p, co_p):
        co, ci = w_pt.shape[0], w_pt.shape[1]
        w = jnp.transpose(w_pt[:, :, 0, 0], (1, 0))            # (ci, co)
        w = jnp.pad(w, ((0, ci_p - ci), (0, co_p - co)))
        return w.astype(jnp.bfloat16)

    def to_mat_3x3_dwfold(w_pt, ci_p, co_p):
        # (co, ci, kh, kw) -> (kh, kw*ci_p, co_p): dw folded into the K dim,
        # matching the in-kernel [dw=0 | dw=1 | dw=2] channel concat.
        co, ci, kh, kw = w_pt.shape
        w = jnp.transpose(w_pt, (2, 3, 1, 0))                  # (kh, kw, ci, co)
        w = jnp.pad(w, ((0, 0), (0, 0), (0, ci_p - ci), (0, co_p - co)))
        return w.reshape(kh, kw * ci_p, co_p).astype(jnp.bfloat16)

    def bn_vec(c, c_p):
        g = jnp.pad(jnp.ones((1, c), jnp.float32), ((0, 0), (0, c_p - c)))
        b = jnp.zeros((1, c_p), jnp.float32)
        return g, b

    g1, beta1 = bn_vec(c1, c1_p)
    g2, beta2 = bn_vec(c2, c2_p)
    g3, beta3 = bn_vec(c3, c3_p)

    params = {
        "w1": to_mat_1x1(w1_pt, cin_p, c1_p),
        "w2": to_mat_3x3_dwfold(w2_pt, c1_p, c2_p),
        "w3": to_mat_1x1(w3_pt, c2_p, c3_p),
        "g1": g1, "beta1": beta1,
        "g2": g2, "beta2": beta2,
        "g3": g3, "beta3": beta3,
    }
    raw = {"w1": w1_pt, "w2": w2_pt, "w3": w3_pt}
    channels = (in_channels, c1, c2, c3)
    return params, raw, channels


@functools.partial(jax.jit,
                   static_argnames=("channels", "tm_target", "tm_elem_target"))
def res_block_forward(x_nchw, params, channels, tm_target=256,
                      tm_elem_target=1024):
    """ResBlock with skip=None (identity), stride=1 (requires Cin == 4*out_ch)."""
    N, Cin, H, W = x_nchw.shape
    c_in, c1, c2, c3 = channels
    assert Cin == c_in
    assert Cin == c3, "identity skip requires in_channels == 4 * out_channels"

    cin_p = params["w1"].shape[0]
    c1_p = params["w1"].shape[1]
    c3_p = params["w3"].shape[1]
    assert cin_p == c3_p

    M = N * H * W
    tm = _pick_tm(M, tm_target)          # matmul-stage tiles
    tm_e = _pick_tm(M, tm_elem_target)   # bigger tiles for the pure HBM stream

    # NCHW -> NHWC (bf16), zero-pad channels to the lane width.  Padded lanes
    # stay exactly zero through every stage (zero weight rows/cols, gamma=0).
    x = jnp.transpose(x_nchw, (0, 2, 3, 1)).astype(jnp.bfloat16)
    x = jnp.pad(x, ((0, 0), (0, 0), (0, 0), (0, cin_p - Cin)))
    x2d = x.reshape(M, cin_p)
    skip2d = x2d                          # identity skip, bf16, padded layout

    # ---- conv1 (1x1): matmul + per-tile stats ----
    y1, st1 = matmul_stats(x2d, params["w1"], tm=tm)
    scale1, shift1 = _bn_scale_shift(st1, M, params["g1"], params["beta1"])

    # ---- conv2 (3x3, stride 1, pad 1): BN1+ReLU + zero halo + conv, fused ----
    y2, st2 = bn_relu_conv3x3_stats(y1.reshape(N, H, W, c1_p), scale1, shift1,
                                    params["w2"], H=H, W=W)
    scale2, shift2 = _bn_scale_shift(st2, M, params["g2"], params["beta2"])

    # ---- conv3 (1x1): BN2+ReLU fused with matmul + per-tile stats ----
    y3, st3 = bn_relu_matmul_stats(y2, scale2, shift2, params["w3"], tm=tm)
    scale3, shift3 = _bn_scale_shift(st3, M, params["g3"], params["beta3"])

    # ---- BN3 + ReLU + residual add + final ReLU (bf16 stream, big tiles) ----
    out2d = bn_relu_add_relu(y3, scale3, shift3, skip2d, tm=tm_e)

    out = out2d[:, :c3].astype(jnp.float32).reshape(N, H, W, c3)
    return jnp.transpose(out, (0, 3, 1, 2))              # back to NCHW


# ------------------------------ plain-JAX ref ------------------------------- #

def ref_res_block(x_nchw, raw):
    """f32 reference: Conv (no bias) + train-mode BN (gamma=1, beta=0) + ReLU."""
    def cbr(x, w, pad):
        y = lax.conv_general_dilated(
            x, w, window_strides=(1, 1), padding=pad,
            dimension_numbers=("NCHW", "OIHW", "NCHW"))
        mean = jnp.mean(y, axis=(0, 2, 3), keepdims=True)
        var = jnp.mean(jnp.square(y - mean), axis=(0, 2, 3), keepdims=True)
        return jnp.maximum((y - mean) * lax.rsqrt(var + EPS), 0.0)

    h = cbr(x_nchw, raw["w1"], "SAME")
    h = cbr(h, raw["w2"], [(1, 1), (1, 1)])
    h = cbr(h, raw["w3"], "SAME")
    return jnp.maximum(h + x_nchw, 0.0)


if __name__ == "__main__":
    key = jax.random.PRNGKey(0)
    k_x, k_p = jax.random.split(key)

    # Bottleneck block: out_channels=4 -> block output channels = 16,
    # so in_channels must be 16 for the identity skip (as in ResNet stages).
    N, H, W = 2, 16, 16
    out_channels = 4
    in_channels = 4 * out_channels          # 16

    x = jax.random.normal(k_x, (N, in_channels, H, W), jnp.float32)  # NCHW
    params, raw, channels = init_params(k_p, in_channels, out_channels)

    y = res_block_forward(x, params, channels)
    y = jax.block_until_ready(y)

    assert y.shape == (N, 4 * out_channels, H, W)
    assert bool(jnp.all(jnp.isfinite(y)))
    assert bool(jnp.all(y >= 0.0))          # final ReLU

    # Loose tolerance: kernel uses bf16 operands / inter-stage activations.
    y_ref = ref_res_block(x, raw)
    max_err = float(jnp.max(jnp.abs(y - y_ref)))
    assert bool(jnp.allclose(y, y_ref, atol=1e-1, rtol=5e-2)), max_err

    print("KERNEL_OK")
</pallas_src>

<mosaic_0001>
module attributes {stable_mosaic.version = 11 : i64} {
  func.func @_mm_stats_kernel(%arg0: i32, %arg1: memref<256x128xbf16, #tpu.memory_space<vmem>>, %arg2: memref<128x128xbf16, #tpu.memory_space<vmem>>, %arg3: memref<256x128xbf16, #tpu.memory_space<vmem>>, %arg4: memref<1x8x128xf32, #tpu.memory_space<vmem>>) attributes {dimension_semantics = [#tpu.dimension_semantics<parallel>], iteration_bounds = array<i64: 2>, scalar_prefetch = 0 : i64, scratch_operands = 0 : i64, tpu.core_type = #tpu.core_type<tc>, window_params = [{transform_indices = @transform_0, window_bounds = array<i64: 256, 128>}, {pipeline_mode = #tpu.pipeline_mode<synchronous>, transform_indices = @transform_1, window_bounds = array<i64: 128, 128>}, {transform_indices = @transform_2, window_bounds = array<i64: 256, 128>}, {transform_indices = @transform_3, window_bounds = array<i64: 1, 8, 128>}]} {
    %c0 = arith.constant 0 : index
    %c0_0 = arith.constant 0 : index
    %0 = vector.load %arg1[%c0, %c0_0] : memref<256x128xbf16, #tpu.memory_space<vmem>>, vector<256x128xbf16>
    %c0_1 = arith.constant 0 : index
    %c0_2 = arith.constant 0 : index
    %1 = vector.load %arg2[%c0_1, %c0_2] : memref<128x128xbf16, #tpu.memory_space<vmem>>, vector<128x128xbf16>
    %cst = arith.constant dense<0.000000e+00> : vector<256x128xf32>
    %2 = tpu.matmul %0, %1, %cst {dimension_numbers = #tpu.dot_dimension_numbers<[1], [0], [0], [1], [0, 0, 1, 1], [], []>} : vector<256x128xbf16>, vector<128x128xbf16>, vector<256x128xf32> -> vector<256x128xf32>
    %3 = arith.truncf %2 : vector<256x128xf32> to vector<256x128xbf16>
    %c0_3 = arith.constant 0 : index
    %c0_4 = arith.constant 0 : index
    %4 = vector.load %arg3[%c0_3, %c0_4] : memref<256x128xbf16, #tpu.memory_space<vmem>>, vector<256x128xbf16>
    tpu.vector_store %arg3[%c0_3, %c0_4], %3 {strides = array<i32>} : memref<256x128xbf16, #tpu.memory_space<vmem>>, vector<256x128xbf16>,
    %cst_5 = arith.constant dense<0.000000e+00> : vector<128xf32>
    %5 = vector.multi_reduction <add>, %2, %cst_5 [0] : vector<256x128xf32> to vector<128xf32>
    %6 = vector.shape_cast %5 : vector<128xf32> to vector<1x128xf32>
    %7 = arith.mulf %2, %2 : vector<256x128xf32>
    %cst_6 = arith.constant dense<0.000000e+00> : vector<128xf32>
    %8 = vector.multi_reduction <add>, %7, %cst_6 [0] : vector<256x128xf32> to vector<128xf32>
    %9 = vector.shape_cast %8 : vector<128xf32> to vector<1x128xf32>
    %cst_7 = arith.constant 0.000000e+00 : f32
    %10 = vector.broadcast %cst_7 : f32 to vector<6x128xf32>
    %11 = tpu.concatenate %6, %9, %10 in 0 : vector<1x128xf32>, vector<1x128xf32>, vector<6x128xf32> -> vector<8x128xf32>
    %c0_8 = arith.constant 0 : index
    %c0_9 = arith.constant 0 : index
    %c0_10 = arith.constant 0 : index
    %12 = vector.load %arg4[%c0_8, %c0_9, %c0_10] : memref<1x8x128xf32, #tpu.memory_space<vmem>>, vector<1x8x128xf32>
    %13 = vector.shape_cast %12 : vector<1x8x128xf32> to vector<8x128xf32>
    %14 = vector.shape_cast %11 : vector<8x128xf32> to vector<1x8x128xf32>
    tpu.vector_store %arg4[%c0_8, %c0_9, %c0_10], %14 {strides = array<i32>} : memref<1x8x128xf32, #tpu.memory_space<vmem>>, vector<1x8x128xf32>,
    return
  }
  func.func @transform_0(%arg0: i32) -> (i32, i32) {
    %c0_i32 = arith.constant 0 : i32
    %c0_i32_0 = arith.constant 0 : i32
    return %arg0, %c0_i32 : i32, i32
  }
  func.func @transform_1(%arg0: i32) -> (i32, i32) {
    %c0_i32 = arith.constant 0 : i32
    %c0_i32_0 = arith.constant 0 : i32
    %c0_i32_1 = arith.constant 0 : i32
    return %c0_i32, %c0_i32_0 : i32, i32
  }
  func.func @transform_2(%arg0: i32) -> (i32, i32) {
    %c0_i32 = arith.constant 0 : i32
    %c0_i32_0 = arith.constant 0 : i32
    return %arg0, %c0_i32 : i32, i32
  }
  func.func @transform_3(%arg0: i32) -> (i32, i32, i32) {
    %c0_i32 = arith.constant 0 : i32
    %c0_i32_0 = arith.constant 0 : i32
    %c0_i32_1 = arith.constant 0 : i32
    return %arg0, %c0_i32, %c0_i32_0 : i32, i32, i32
  }
}

module attributes {stable_mosaic.version = 11 : i64} {
  func.func @_bn_relu_mm_stats_kernel(%arg0: i32, %arg1: memref<256x128xbf16, #tpu.memory_space<vmem>>, %arg2: memref<1x128xf32, #tpu.memory_space<vmem>>, %arg3: memref<1x128xf32, #tpu.memory_space<vmem>>, %arg4: memref<128x128xbf16, #tpu.memory_space<vmem>>, %arg5: memref<256x128xbf16, #tpu.memory_space<vmem>>, %arg6: memref<1x8x128xf32, #tpu.memory_space<vmem>>) attributes {dimension_semantics = [#tpu.dimension_semantics<parallel>], iteration_bounds = array<i64: 2>, scalar_prefetch = 0 : i64, scratch_operands = 0 : i64, tpu.core_type = #tpu.core_type<tc>, window_params = [{transform_indices = @transform_0, window_bounds = array<i64: 256, 128>}, {pipeline_mode = #tpu.pipeline_mode<synchronous>, transform_indices = @transform_1, window_bounds = array<i64: 1, 128>}, {pipeline_mode = #tpu.pipeline_mode<synchronous>, transform_indices = @transform_2, window_bounds = array<i64: 1, 128>}, {pipeline_mode = #tpu.pipeline_mode<synchronous>, transform_indices = @transform_3, window_bounds = array<i64: 128, 128>}, {transform_indices = @transform_4, window_bounds = array<i64: 256, 128>}, {transform_indices = @transform_5, window_bounds = array<i64: 1, 8, 128>}]} {
    %c0 = arith.constant 0 : index
    %c0_0 = arith.constant 0 : index
    %0 = vector.load %arg1[%c0, %c0_0] : memref<256x128xbf16, #tpu.memory_space<vmem>>, vector<256x128xbf16>
    %1 = arith.extf %0 : vector<256x128xbf16> to vector<256x128xf32>
    %c0_1 = arith.constant 0 : index
    %c0_2 = arith.constant 0 : index
    %2 = vector.load %arg2[%c0_1, %c0_2] : memref<1x128xf32, #tpu.memory_space<vmem>>, vector<1x128xf32>
    %3 = vector.broadcast %2 : vector<1x128xf32> to vector<256x128xf32>
    %4 = arith.mulf %1, %3 : vector<256x128xf32>
    %c0_3 = arith.constant 0 : index
    %c0_4 = arith.constant 0 : index
    %5 = vector.load %arg3[%c0_3, %c0_4] : memref<1x128xf32, #tpu.memory_space<vmem>>, vector<1x128xf32>
    %6 = vector.broadcast %5 : vector<1x128xf32> to vector<256x128xf32>
    %7 = arith.addf %4, %6 : vector<256x128xf32>
    %cst = arith.constant 0.000000e+00 : f32
    %8 = vector.broadcast %cst : f32 to vector<256x128xf32>
    %9 = arith.maximumf %7, %8 : vector<256x128xf32>
    %10 = arith.truncf %9 : vector<256x128xf32> to vector<256x128xbf16>
    %c0_5 = arith.constant 0 : index
    %c0_6 = arith.constant 0 : index
    %11 = vector.load %arg4[%c0_5, %c0_6] : memref<128x128xbf16, #tpu.memory_space<vmem>>, vector<128x128xbf16>
    %cst_7 = arith.constant dense<0.000000e+00> : vector<256x128xf32>
    %12 = tpu.matmul %10, %11, %cst_7 {dimension_numbers = #tpu.dot_dimension_numbers<[1], [0], [0], [1], [0, 0, 1, 1], [], []>} : vector<256x128xbf16>, vector<128x128xbf16>, vector<256x128xf32> -> vector<256x128xf32>
    %13 = arith.truncf %12 : vector<256x128xf32> to vector<256x128xbf16>
    %c0_8 = arith.constant 0 : index
    %c0_9 = arith.constant 0 : index
    %14 = vector.load %arg5[%c0_8, %c0_9] : memref<256x128xbf16, #tpu.memory_space<vmem>>, vector<256x128xbf16>
    tpu.vector_store %arg5[%c0_8, %c0_9], %13 {strides = array<i32>} : memref<256x128xbf16, #tpu.memory_space<vmem>>, vector<256x128xbf16>,
    %cst_10 = arith.constant dense<0.000000e+00> : vector<128xf32>
    %15 = vector.multi_reduction <add>, %12, %cst_10 [0] : vector<256x128xf32> to vector<128xf32>
    %16 = vector.shape_cast %15 : vector<128xf32> to vector<1x128xf32>
    %17 = arith.mulf %12, %12 : vector<256x128xf32>
    %cst_11 = arith.constant dense<0.000000e+00> : vector<128xf32>
    %18 = vector.multi_reduction <add>, %17, %cst_11 [0] : vector<256x128xf32> to vector<128xf32>
    %19 = vector.shape_cast %18 : vector<128xf32> to vector<1x128xf32>
    %cst_12 = arith.constant 0.000000e+00 : f32
    %20 = vector.broadcast %cst_12 : f32 to vector<6x128xf32>
    %21 = tpu.concatenate %16, %19, %20 in 0 : vector<1x128xf32>, vector<1x128xf32>, vector<6x128xf32> -> vector<8x128xf32>
    %c0_13 = arith.constant 0 : index
    %c0_14 = arith.constant 0 : index
    %c0_15 = arith.constant 0 : index
    %22 = vector.load %arg6[%c0_13, %c0_14, %c0_15] : memref<1x8x128xf32, #tpu.memory_space<vmem>>, vector<1x8x128xf32>
    %23 = vector.shape_cast %22 : vector<1x8x128xf32> to vector<8x128xf32>
    %24 = vector.shape_cast %21 : vector<8x128xf32> to vector<1x8x128xf32>
    tpu.vector_store %arg6[%c0_13, %c0_14, %c0_15], %24 {strides = array<i32>} : memref<1x8x128xf32, #tpu.memory_space<vmem>>, vector<1x8x128xf32>,
    return
  }
  func.func @transform_0(%arg0: i32) -> (i32, i32) {
    %c0_i32 = arith.constant 0 : i32
    %c0_i32_0 = arith.constant 0 : i32
    return %arg0, %c0_i32 : i32, i32
  }
  func.func @transform_1(%arg0: i32) -> (i32, i32) {
    %c0_i32 = arith.constant 0 : i32
    %c0_i32_0 = arith.constant 0 : i32
    %c0_i32_1 = arith.constant 0 : i32
    return %c0_i32, %c0_i32_0 : i32, i32
  }
  func.func @transform_2(%arg0: i32) -> (i32, i32) {
    %c0_i32 = arith.constant 0 : i32
    %c0_i32_0 = arith.constant 0 : i32
    %c0_i32_1 = arith.constant 0 : i32
    return %c0_i32, %c0_i32_0 : i32, i32
  }
  func.func @transform_3(%arg0: i32) -> (i32, i32) {
    %c0_i32 = arith.constant 0 : i32
    %c0_i32_0 = arith.constant 0 : i32
    %c0_i32_1 = arith.constant 0 : i32
    return %c0_i32, %c0_i32_0 : i32, i32
  }
  func.func @transform_4(%arg0: i32) -> (i32, i32) {
    %c0_i32 = arith.constant 0 : i32
    %c0_i32_0 = arith.constant 0 : i32
    return %arg0, %c0_i32 : i32, i32
  }
  func.func @transform_5(%arg0: i32) -> (i32, i32, i32) {
    %c0_i32 = arith.constant 0 : i32
    %c0_i32_0 = arith.constant 0 : i32
    %c0_i32_1 = arith.constant 0 : i32
    return %arg0, %c0_i32, %c0_i32_0 : i32, i32, i32
  }
}

module attributes {stable_mosaic.version = 11 : i64} {
  func.func @_bn_relu_add_relu_kernel(%arg0: i32, %arg1: memref<512x128xbf16, #tpu.memory_space<vmem>>, %arg2: memref<1x128xf32, #tpu.memory_space<vmem>>, %arg3: memref<1x128xf32, #tpu.memory_space<vmem>>, %arg4: memref<512x128xbf16, #tpu.memory_space<vmem>>, %arg5: memref<512x128xbf16, #tpu.memory_space<vmem>>) attributes {dimension_semantics = [#tpu.dimension_semantics<parallel>], iteration_bounds = array<i64: 1>, scalar_prefetch = 0 : i64, scratch_operands = 0 : i64, tpu.core_type = #tpu.core_type<tc>, window_params = [{transform_indices = @transform_0, window_bounds = array<i64: 512, 128>}, {pipeline_mode = #tpu.pipeline_mode<synchronous>, transform_indices = @transform_1, window_bounds = array<i64: 1, 128>}, {pipeline_mode = #tpu.pipeline_mode<synchronous>, transform_indices = @transform_2, window_bounds = array<i64: 1, 128>}, {transform_indices = @transform_3, window_bounds = array<i64: 512, 128>}, {transform_indices = @transform_4, window_bounds = array<i64: 512, 128>}]} {
    %c0 = arith.constant 0 : index
    %c0_0 = arith.constant 0 : index
    %0 = vector.load %arg1[%c0, %c0_0] : memref<512x128xbf16, #tpu.memory_space<vmem>>, vector<512x128xbf16>
    %1 = arith.extf %0 : vector<512x128xbf16> to vector<512x128xf32>
    %c0_1 = arith.constant 0 : index
    %c0_2 = arith.constant 0 : index
    %2 = vector.load %arg2[%c0_1, %c0_2] : memref<1x128xf32, #tpu.memory_space<vmem>>, vector<1x128xf32>
    %3 = vector.broadcast %2 : vector<1x128xf32> to vector<512x128xf32>
    %4 = arith.mulf %1, %3 : vector<512x128xf32>
    %c0_3 = arith.constant 0 : index
    %c0_4 = arith.constant 0 : index
    %5 = vector.load %arg3[%c0_3, %c0_4] : memref<1x128xf32, #tpu.memory_space<vmem>>, vector<1x128xf32>
    %6 = vector.broadcast %5 : vector<1x128xf32> to vector<512x128xf32>
    %7 = arith.addf %4, %6 : vector<512x128xf32>
    %cst = arith.constant 0.000000e+00 : f32
    %8 = vector.broadcast %cst : f32 to vector<512x128xf32>
    %9 = arith.maximumf %7, %8 : vector<512x128xf32>
    %c0_5 = arith.constant 0 : index
    %c0_6 = arith.constant 0 : index
    %10 = vector.load %arg4[%c0_5, %c0_6] : memref<512x128xbf16, #tpu.memory_space<vmem>>, vector<512x128xbf16>
    %11 = arith.extf %10 : vector<512x128xbf16> to vector<512x128xf32>
    %12 = arith.addf %9, %11 : vector<512x128xf32>
    %cst_7 = arith.constant 0.000000e+00 : f32
    %13 = vector.broadcast %cst_7 : f32 to vector<512x128xf32>
    %14 = arith.maximumf %12, %13 : vector<512x128xf32>
    %15 = arith.truncf %14 : vector<512x128xf32> to vector<512x128xbf16>
    %c0_8 = arith.constant 0 : index
    %c0_9 = arith.constant 0 : index
    %16 = vector.load %arg5[%c0_8, %c0_9] : memref<512x128xbf16, #tpu.memory_space<vmem>>, vector<512x128xbf16>
    tpu.vector_store %arg5[%c0_8, %c0_9], %15 {strides = array<i32>} : memref<512x128xbf16, #tpu.memory_space<vmem>>, vector<512x128xbf16>,
    return
  }
  func.func @transform_0(%arg0: i32) -> (i32, i32) {
    %c0_i32 = arith.constant 0 : i32
    %c0_i32_0 = arith.constant 0 : i32
    return %arg0, %c0_i32 : i32, i32
  }
  func.func @transform_1(%arg0: i32) -> (i32, i32) {
    %c0_i32 = arith.constant 0 : i32
    %c0_i32_0 = arith.constant 0 : i32
    %c0_i32_1 = arith.constant 0 : i32
    return %c0_i32, %c0_i32_0 : i32, i32
  }
  func.func @transform_2(%arg0: i32) -> (i32, i32) {
    %c0_i32 = arith.constant 0 : i32
    %c0_i32_0 = arith.constant 0 : i32
    %c0_i32_1 = arith.constant 0 : i32
    return %c0_i32, %c0_i32_0 : i32, i32
  }
  func.func @transform_3(%arg0: i32) -> (i32, i32) {
    %c0_i32 = arith.constant 0 : i32
    %c0_i32_0 = arith.constant 0 : i32
    return %arg0, %c0_i32 : i32, i32
  }
  func.func @transform_4(%arg0: i32) -> (i32, i32) {
    %c0_i32 = arith.constant 0 : i32
    %c0_i32_0 = arith.constant 0 : i32
    return %arg0, %c0_i32 : i32, i32
  }
}

module attributes {stable_mosaic.version = 11 : i64} {
  func.func @_bn_relu_conv3x3_stats_kernel(%arg0: i32, %arg1: memref<1x16x16x128xbf16, #tpu.memory_space<vmem>>, %arg2: memref<1x128xf32, #tpu.memory_space<vmem>>, %arg3: memref<1x128xf32, #tpu.memory_space<vmem>>, %arg4: memref<3x384x128xbf16, #tpu.memory_space<vmem>>, %arg5: memref<256x128xbf16, #tpu.memory_space<vmem>>, %arg6: memref<1x8x128xf32, #tpu.memory_space<vmem>>, %arg7: memref<18x18x128xbf16, #tpu.memory_space<vmem>>) attributes {dimension_semantics = [#tpu.dimension_semantics<parallel>], iteration_bounds = array<i64: 2>, scalar_prefetch = 0 : i64, scratch_operands = 1 : i64, tpu.core_type = #tpu.core_type<tc>, window_params = [{transform_indices = @transform_0, window_bounds = array<i64: 1, 16, 16, 128>}, {pipeline_mode = #tpu.pipeline_mode<synchronous>, transform_indices = @transform_1, window_bounds = array<i64: 1, 128>}, {pipeline_mode = #tpu.pipeline_mode<synchronous>, transform_indices = @transform_2, window_bounds = array<i64: 1, 128>}, {pipeline_mode = #tpu.pipeline_mode<synchronous>, transform_indices = @transform_3, window_bounds = array<i64: 3, 384, 128>}, {transform_indices = @transform_4, window_bounds = array<i64: 256, 128>}, {transform_indices = @transform_5, window_bounds = array<i64: 1, 8, 128>}]} {
    %c0 = arith.constant 0 : index
    %c0_0 = arith.constant 0 : index
    %0 = vector.load %arg2[%c0, %c0_0] : memref<1x128xf32, #tpu.memory_space<vmem>>, vector<1x128xf32>
    %1 = vector.shape_cast %0 : vector<1x128xf32> to vector<1x1x128xf32>
    %c0_1 = arith.constant 0 : index
    %c0_2 = arith.constant 0 : index
    %2 = vector.load %arg3[%c0_1, %c0_2] : memref<1x128xf32, #tpu.memory_space<vmem>>, vector<1x128xf32>
    %3 = vector.shape_cast %2 : vector<1x128xf32> to vector<1x1x128xf32>
    %c0_3 = arith.constant 0 : index
    %c0_4 = arith.constant 0 : index
    %c0_5 = arith.constant 0 : index
    %c0_6 = arith.constant 0 : index
    %4 = vector.load %arg1[%c0_3, %c0_4, %c0_5, %c0_6] : memref<1x16x16x128xbf16, #tpu.memory_space<vmem>>, vector<1x16x16x128xbf16>
    %5 = vector.shape_cast %4 : vector<1x16x16x128xbf16> to vector<16x16x128xbf16>
    %6 = arith.extf %5 : vector<16x16x128xbf16> to vector<16x16x128xf32>
    %7 = vector.broadcast %1 : vector<1x1x128xf32> to vector<16x16x128xf32>
    %8 = arith.mulf %6, %7 : vector<16x16x128xf32>
    %9 = vector.broadcast %3 : vector<1x1x128xf32> to vector<16x16x128xf32>
    %10 = arith.addf %8, %9 : vector<16x16x128xf32>
    %cst = arith.constant 0.000000e+00 : f32
    %11 = vector.broadcast %cst : f32 to vector<16x16x128xf32>
    %12 = arith.maximumf %10, %11 : vector<16x16x128xf32>
    %13 = arith.truncf %12 : vector<16x16x128xf32> to vector<16x16x128xbf16>
    %cst_7 = arith.constant 0.000000e+00 : bf16
    %14 = vector.broadcast %cst_7 : bf16 to vector<16x1x128xbf16>
    %cst_8 = arith.constant 0.000000e+00 : bf16
    %15 = vector.broadcast %cst_8 : bf16 to vector<1x18x128xbf16>
    %16 = tpu.concatenate %14, %13, %14 in 1 : vector<16x1x128xbf16>, vector<16x16x128xbf16>, vector<16x1x128xbf16> -> vector<16x18x128xbf16>
    %17 = tpu.concatenate %15, %16, %15 in 0 : vector<1x18x128xbf16>, vector<16x18x128xbf16>, vector<1x18x128xbf16> -> vector<18x18x128xbf16>
    %c0_9 = arith.constant 0 : index
    %c0_10 = arith.constant 0 : index
    %c0_11 = arith.constant 0 : index
    %18 = vector.load %arg7[%c0_9, %c0_10, %c0_11] : memref<18x18x128xbf16, #tpu.memory_space<vmem>>, vector<18x18x128xbf16>
    tpu.vector_store %arg7[%c0_9, %c0_10, %c0_11], %17 {strides = array<i32>} : memref<18x18x128xbf16, #tpu.memory_space<vmem>>, vector<18x18x128xbf16>,
    %cst_12 = arith.constant 0.000000e+00 : f32
    %19 = vector.broadcast %cst_12 : f32 to vector<256x128xf32>
    %c0_13 = arith.constant 0 : index
    %c0_14 = arith.constant 0 : index
    %c0_15 = arith.constant 0 : index
    %20 = vector.load %arg7[%c0_13, %c0_14, %c0_15] : memref<18x18x128xbf16, #tpu.memory_space<vmem>>, vector<16x16x128xbf16>
    %c0_16 = arith.constant 0 : index
    %c1 = arith.constant 1 : index
    %c0_17 = arith.constant 0 : index
    %21 = vector.load %arg7[%c0_16, %c1, %c0_17] : memref<18x18x128xbf16, #tpu.memory_space<vmem>>, vector<16x16x128xbf16>
    %c0_18 = arith.constant 0 : index
    %c2 = arith.constant 2 : index
    %c0_19 = arith.constant 0 : index
    %22 = vector.load %arg7[%c0_18, %c2, %c0_19] : memref<18x18x128xbf16, #tpu.memory_space<vmem>>, vector<16x16x128xbf16>
    %23 = tpu.concatenate %20, %21, %22 in 2 : vector<16x16x128xbf16>, vector<16x16x128xbf16>, vector<16x16x128xbf16> -> vector<16x16x384xbf16>
    %24 = vector.shape_cast %23 : vector<16x16x384xbf16> to vector<256x384xbf16>
    %c0_20 = arith.constant 0 : index
    %c0_21 = arith.constant 0 : index
    %c0_22 = arith.constant 0 : index
    %25 = vector.load %arg4[%c0_20, %c0_21, %c0_22] : memref<3x384x128xbf16, #tpu.memory_space<vmem>>, vector<1x384x128xbf16>
    %26 = vector.shape_cast %25 : vector<1x384x128xbf16> to vector<384x128xbf16>
    %cst_23 = arith.constant dense<0.000000e+00> : vector<256x128xf32>
    %27 = tpu.matmul %24, %26, %cst_23 {dimension_numbers = #tpu.dot_dimension_numbers<[1], [0], [0], [1], [0, 0, 1, 1], [], []>} : vector<256x384xbf16>, vector<384x128xbf16>, vector<256x128xf32> -> vector<256x128xf32>
    %28 = arith.addf %19, %27 : vector<256x128xf32>
    %c1_24 = arith.constant 1 : index
    %c0_25 = arith.constant 0 : index
    %c0_26 = arith.constant 0 : index
    %29 = vector.load %arg7[%c1_24, %c0_25, %c0_26] : memref<18x18x128xbf16, #tpu.memory_space<vmem>>, vector<16x16x128xbf16>
    %c1_27 = arith.constant 1 : index
    %c1_28 = arith.constant 1 : index
    %c0_29 = arith.constant 0 : index
    %30 = vector.load %arg7[%c1_27, %c1_28, %c0_29] : memref<18x18x128xbf16, #tpu.memory_space<vmem>>, vector<16x16x128xbf16>
    %c1_30 = arith.constant 1 : index
    %c2_31 = arith.constant 2 : index
    %c0_32 = arith.constant 0 : index
    %31 = vector.load %arg7[%c1_30, %c2_31, %c0_32] : memref<18x18x128xbf16, #tpu.memory_space<vmem>>, vector<16x16x128xbf16>
    %32 = tpu.concatenate %29, %30, %31 in 2 : vector<16x16x128xbf16>, vector<16x16x128xbf16>, vector<16x16x128xbf16> -> vector<16x16x384xbf16>
    %33 = vector.shape_cast %32 : vector<16x16x384xbf16> to vector<256x384xbf16>
    %c1_33 = arith.constant 1 : index
    %c0_34 = arith.constant 0 : index
    %c0_35 = arith.constant 0 : index
    %34 = vector.load %arg4[%c1_33, %c0_34, %c0_35] : memref<3x384x128xbf16, #tpu.memory_space<vmem>>, vector<1x384x128xbf16>
    %35 = vector.shape_cast %34 : vector<1x384x128xbf16> to vector<384x128xbf16>
    %cst_36 = arith.constant dense<0.000000e+00> : vector<256x128xf32>
    %36 = tpu.matmul %33, %35, %cst_36 {dimension_numbers = #tpu.dot_dimension_numbers<[1], [0], [0], [1], [0, 0, 1, 1], [], []>} : vector<256x384xbf16>, vector<384x128xbf16>, vector<256x128xf32> -> vector<256x128xf32>
    %37 = arith.addf %28, %36 : vector<256x128xf32>
    %c2_37 = arith.constant 2 : index
    %c0_38 = arith.constant 0 : index
    %c0_39 = arith.constant 0 : index
    %38 = vector.load %arg7[%c2_37, %c0_38, %c0_39] : memref<18x18x128xbf16, #tpu.memory_space<vmem>>, vector<16x16x128xbf16>
    %c2_40 = arith.constant 2 : index
    %c1_41 = arith.constant 1 : index
    %c0_42 = arith.constant 0 : index
    %39 = vector.load %arg7[%c2_40, %c1_41, %c0_42] : memref<18x18x128xbf16, #tpu.memory_space<vmem>>, vector<16x16x128xbf16>
    %c2_43 = arith.constant 2 : index
    %c2_44 = arith.constant 2 : index
    %c0_45 = arith.constant 0 : index
    %40 = vector.load %arg7[%c2_43, %c2_44, %c0_45] : memref<18x18x128xbf16, #tpu.memory_space<vmem>>, vector<16x16x128xbf16>
    %41 = tpu.concatenate %38, %39, %40 in 2 : vector<16x16x128xbf16>, vector<16x16x128xbf16>, vector<16x16x128xbf16> -> vector<16x16x384xbf16>
    %42 = vector.shape_cast %41 : vector<16x16x384xbf16> to vector<256x384xbf16>
    %c2_46 = arith.constant 2 : index
    %c0_47 = arith.constant 0 : index
    %c0_48 = arith.constant 0 : index
    %43 = vector.load %arg4[%c2_46, %c0_47, %c0_48] : memref<3x384x128xbf16, #tpu.memory_space<vmem>>, vector<1x384x128xbf16>
    %44 = vector.shape_cast %43 : vector<1x384x128xbf16> to vector<384x128xbf16>
    %cst_49 = arith.constant dense<0.000000e+00> : vector<256x128xf32>
    %45 = tpu.matmul %42, %44, %cst_49 {dimension_numbers = #tpu.dot_dimension_numbers<[1], [0], [0], [1], [0, 0, 1, 1], [], []>} : vector<256x384xbf16>, vector<384x128xbf16>, vector<256x128xf32> -> vector<256x128xf32>
    %46 = arith.addf %37, %45 : vector<256x128xf32>
    %47 = arith.truncf %46 : vector<256x128xf32> to vector<256x128xbf16>
    %c0_50 = arith.constant 0 : index
    %c0_51 = arith.constant 0 : index
    %48 = vector.load %arg5[%c0_50, %c0_51] : memref<256x128xbf16, #tpu.memory_space<vmem>>, vector<256x128xbf16>
    tpu.vector_store %arg5[%c0_50, %c0_51], %47 {strides = array<i32>} : memref<256x128xbf16, #tpu.memory_space<vmem>>, vector<256x128xbf16>,
    %cst_52 = arith.constant dense<0.000000e+00> : vector<128xf32>
    %49 = vector.multi_reduction <add>, %46, %cst_52 [0] : vector<256x128xf32> to vector<128xf32>
    %50 = vector.shape_cast %49 : vector<128xf32> to vector<1x128xf32>
    %51 = arith.mulf %46, %46 : vector<256x128xf32>
    %cst_53 = arith.constant dense<0.000000e+00> : vector<128xf32>
    %52 = vector.multi_reduction <add>, %51, %cst_53 [0] : vector<256x128xf32> to vector<128xf32>
    %53 = vector.shape_cast %52 : vector<128xf32> to vector<1x128xf32>
    %cst_54 = arith.constant 0.000000e+00 : f32
    %54 = vector.broadcast %cst_54 : f32 to vector<6x128xf32>
    %55 = tpu.concatenate %50, %53, %54 in 0 : vector<1x128xf32>, vector<1x128xf32>, vector<6x128xf32> -> vector<8x128xf32>
    %c0_55 = arith.constant 0 : index
    %c0_56 = arith.constant 0 : index
    %c0_57 = arith.constant 0 : index
    %56 = vector.load %arg6[%c0_55, %c0_56, %c0_57] : memref<1x8x128xf32, #tpu.memory_space<vmem>>, vector<1x8x128xf32>
    %57 = vector.shape_cast %56 : vector<1x8x128xf32> to vector<8x128xf32>
    %58 = vector.shape_cast %55 : vector<8x128xf32> to vector<1x8x128xf32>
    tpu.vector_store %arg6[%c0_55, %c0_56, %c0_57], %58 {strides = array<i32>} : memref<1x8x128xf32, #tpu.memory_space<vmem>>, vector<1x8x128xf32>,
    return
  }
  func.func @transform_0(%arg0: i32) -> (i32, i32, i32, i32) {
    %c0_i32 = arith.constant 0 : i32
    %c0_i32_0 = arith.constant 0 : i32
    %c0_i32_1 = arith.constant 0 : i32
    %c0_i32_2 = arith.constant 0 : i32
    return %arg0, %c0_i32, %c0_i32_0, %c0_i32_1 : i32, i32, i32, i32
  }
  func.func @transform_1(%arg0: i32) -> (i32, i32) {
    %c0_i32 = arith.constant 0 : i32
    %c0_i32_0 = arith.constant 0 : i32
    %c0_i32_1 = arith.constant 0 : i32
    return %c0_i32, %c0_i32_0 : i32, i32
  }
  func.func @transform_2(%arg0: i32) -> (i32, i32) {
    %c0_i32 = arith.constant 0 : i32
    %c0_i32_0 = arith.constant 0 : i32
    %c0_i32_1 = arith.constant 0 : i32
    return %c0_i32, %c0_i32_0 : i32, i32
  }
  func.func @transform_3(%arg0: i32) -> (i32, i32, i32) {
    %c0_i32 = arith.constant 0 : i32
    %c0_i32_0 = arith.constant 0 : i32
    %c0_i32_1 = arith.constant 0 : i32
    %c0_i32_2 = arith.constant 0 : i32
    return %c0_i32, %c0_i32_0, %c0_i32_1 : i32, i32, i32
  }
  func.func @transform_4(%arg0: i32) -> (i32, i32) {
    %c0_i32 = arith.constant 0 : i32
    %c0_i32_0 = arith.constant 0 : i32
    return %arg0, %c0_i32 : i32, i32
  }
  func.func @transform_5(%arg0: i32) -> (i32, i32, i32) {
    %c0_i32 = arith.constant 0 : i32
    %c0_i32_0 = arith.constant 0 : i32
    %c0_i32_1 = arith.constant 0 : i32
    return %arg0, %c0_i32, %c0_i32_0 : i32, i32, i32
  }
}

</mosaic_0001>

<bundles_post_ra>
// kernel: res_block_forward.4
= control target key start
LH: loop header
LB: loop body
LE: loop exit
PB: predicated region body
PF: predicated region fallthrough
CT: control target
= control target key end

     0   :  { %s1015_s12 = smov 0   ;;  %s1221_s0 = inlined_call_operand.vmem [shape: bf16[512,128], index: 0, kind: input, shape index: {}]   ;;  %s1222_s1 = inlined_call_operand.vmem [shape: bf16[128,128], index: 1, kind: input, shape index: {}]   ;;  %s1223_s2 = inlined_call_operand.vmem [shape: bf16[512,128], index: 2, kind: output, shape index: {0}]   ;;  %s1224_s3 = inlined_call_operand.vmem [shape: f32[2,8,128], index: 3, kind: output, shape index: {1}]  }
   0x1 LB: > { %s1021_s13 = sadd.s32 4294967295, %s993_s12   ;;  %p732_p0 = scmp.ge.s32.totalorder %s993_s12, 1  ;;  %s993_s12 = sphi %s1015_s12, %s14_s12  }
   0x2   : > { %p141_p1 = scmp.lt.s32.totalorder %s993_s12, 3 }
   0x4   : > { %p142_p2 = pnand %p732_p0, %p141_p1 }
   0x5   : > { %s733_s22 = sshll.u32 (!%p142_p2), %s1021_s13, 5  ;;  %p181_p4 = scmp.lt.s32.totalorder (!%p142_p2), %s1021_s13, 1 }
   0x6   : > { %145 = sbr.rel (%p142_p2) target bundleno = 292 (0x124), region = 28  ;;  %p170_p3 = scmp.lt.s32.totalorder (!%p142_p2), %s733_s22, 63 }
   0xb   : > { %v859_v0 = vld [vmem:[%s1222_s1 + $0x38] sm:$0xff]  ;;  %v858_v1 = vld [vmem:[%s1222_s1 + $0x30] sm:$0xff]  ;;  %v857_v2 = vld [vmem:[%s1222_s1 + $0x28] sm:$0xff]  ;;  %s1226_s22 = smov (!%p170_p3, %s733_s22), 63  ;;  %s1228_s13 = smov (!%p181_p4, %s1021_s13), 1  ;;  %vm636_vm0 = vcmask 1040384  }
   0xc   : > { %377 = vmatpush.bf16.msra.mxu0 %v859_v0  ;;  %955 = vmatpush.bf16.msra.mxu1 %v859_v0  ;;  %v856_v3 = vld [vmem:[%s1222_s1 + $0x20] sm:$0xff]  ;;  %v855_v4 = vld [vmem:[%s1222_s1 + $0x18] sm:$0xff]  ;;  %v854_v5 = vld [vmem:[%s1222_s1 + $0x10] sm:$0xff]  ;;  %s734_s29 = sshll.u32 %s1226_s22, 2  ;;  %s737_s11 = sshll.u32 %s1228_s13, 3  ;;  %vm638_vm1 = vcmask 1041408  }
   0xd   : > { %956 = vmatpush.bf16.msra.mxu2 %v859_v0  ;;  %957 = vmatpush.bf16.msra.mxu3 %v859_v0  ;;  %v853_v6 = vld [vmem:[%s1222_s1 + $0x8] sm:$0xff]  ;;  %v852_v7 = vld [vmem:[%s1222_s1] sm:$0xff]  ;;  %s1058_s7 = scalar_lea.vmem %s1221_s0, %s734_s29  ;;  %s1085_s10 = scalar_lea.vmem %s1223_s2, %s734_s29 }
   0xe   : > { %v836_v8 = vld [vmem:[%s1058_s7] sm:$0xff]  ;;  %v837_v12 = vld [vmem:[%s1058_s7 + $0x8] sm:$0xff]  ;;  %v838_v16 = vld [vmem:[%s1058_s7 + $0x10] sm:$0xff]  ;;  %s184_s16 = scalar_lea.vmem %s1224_s3, %s737_s11 }
   0xf   : > { %v840_v9 = vld [vmem:[%s1058_s7 + $0x20] sm:$0xff]  ;;  %v841_v13 = vld [vmem:[%s1058_s7 + $0x28] sm:$0xff]  ;;  %v842_v17 = vld [vmem:[%s1058_s7 + $0x30] sm:$0xff] }
  0x10   : > { %378 = vmatpush.bf16.msra.mxu0 %v858_v1  ;;  %958 = vmatpush.bf16.msra.mxu1 %v858_v1  ;;  %v844_v10 = vld [vmem:[%s1058_s7 + $0x40] sm:$0xff]  ;;  %v845_v14 = vld [vmem:[%s1058_s7 + $0x48] sm:$0xff]  ;;  %v846_v18 = vld [vmem:[%s1058_s7 + $0x50] sm:$0xff] }
  0x11   : > { %959 = vmatpush.bf16.msra.mxu2 %v858_v1  ;;  %960 = vmatpush.bf16.msra.mxu3 %v858_v1  ;;  %v848_v11 = vld [vmem:[%s1058_s7 + $0x60] sm:$0xff]  ;;  %v849_v15 = vld [vmem:[%s1058_s7 + $0x68] sm:$0xff]  ;;  %v850_v19 = vld [vmem:[%s1058_s7 + $0x70] sm:$0xff] }
  0x12   : > { %v839_v20 = vld [vmem:[%s1058_s7 + $0x18] sm:$0xff] }
  0x13   : > { %v843_v21 = vld [vmem:[%s1058_s7 + $0x38] sm:$0xff] }
  0x14   : > { %379 = vmatpush.bf16.msra.mxu0 %v857_v2  ;;  %961 = vmatpush.bf16.msra.mxu1 %v857_v2  ;;  %v847_v22 = vld [vmem:[%s1058_s7 + $0x58] sm:$0xff] }
  0x15   : > { %962 = vmatpush.bf16.msra.mxu2 %v857_v2  ;;  %963 = vmatpush.bf16.msra.mxu3 %v857_v2  ;;  %v851_v23 = vld [vmem:[%s1058_s7 + $0x78] sm:$0xff] }
  0x18   : > { %380 = vmatpush.bf16.msra.mxu0 %v856_v3  ;;  %964 = vmatpush.bf16.msra.mxu1 %v856_v3 }
  0x19   : > { %965 = vmatpush.bf16.msra.mxu2 %v856_v3  ;;  %966 = vmatpush.bf16.msra.mxu3 %v856_v3 }
  0x1c   : > { %381 = vmatpush.bf16.msra.mxu0 %v855_v4  ;;  %967 = vmatpush.bf16.msra.mxu1 %v855_v4 }
  0x1d   : > { %968 = vmatpush.bf16.msra.mxu2 %v855_v4  ;;  %969 = vmatpush.bf16.msra.mxu3 %v855_v4 }
  0x20   : > { %382 = vmatpush.bf16.msra.mxu0 %v854_v5  ;;  %970 = vmatpush.bf16.msra.mxu1 %v854_v5 }
  0x21   : > { %971 = vmatpush.bf16.msra.mxu2 %v854_v5  ;;  %972 = vmatpush.bf16.msra.mxu3 %v854_v5 }
  0x24   : > { %383 = vmatpush.bf16.msra.mxu0 %v853_v6  ;;  %973 = vmatpush.bf16.msra.mxu1 %v853_v6 }
  0x25   : > { %974 = vmatpush.bf16.msra.mxu2 %v853_v6  ;;  %975 = vmatpush.bf16.msra.mxu3 %v853_v6 }
  0x28   : > { %384 = vmatpush.bf16.msra.mxu0 %v852_v7  ;;  %976 = vmatpush.bf16.msra.mxu1 %v852_v7 }
  0x29   : > { %977 = vmatpush.bf16.msra.mxu2 %v852_v7  ;;  %978 = vmatpush.bf16.msra.mxu3 %v852_v7 }
  0x2b   : > { %385 = vmatmul.bf16.vlgmr.msra.gmra.mxu0 %v836_v8  ;;  %405 = vmatmul.bf16.vlgmr.msra.gmra.mxu1 %v840_v9 }
  0x2c   : > { %425 = vmatmul.bf16.vlgmr.msra.gmra.mxu2 %v844_v10  ;;  %445 = vmatmul.bf16.vlgmr.msra.gmra.mxu3 %v848_v11 }
  0x3b   : > { %390 = vmatmul.bf16.gmra.mxu0 %v837_v12  ;;  %410 = vmatmul.bf16.gmra.mxu1 %v841_v13 }
  0x3c   : > { %430 = vmatmul.bf16.gmra.mxu2 %v845_v14  ;;  %450 = vmatmul.bf16.gmra.mxu3 %v849_v15 }
  0x4b   : > { %395 = vmatmul.bf16.gmra.mxu0 %v838_v16  ;;  %415 = vmatmul.bf16.gmra.mxu1 %v842_v17 }
  0x4c   : > { %435 = vmatmul.bf16.gmra.mxu2 %v846_v18  ;;  %455 = vmatmul.bf16.gmra.mxu3 %v850_v19 }
  0x5b   : > { %400 = vmatmul.bf16.gmra.mxu0 %v839_v20  ;;  %420 = vmatmul.bf16.gmra.mxu1 %v843_v21 }
  0x5c   : > { %440 = vmatmul.bf16.gmra.mxu2 %v847_v22  ;;  %460 = vmatmul.bf16.gmra.mxu3 %v851_v23 }
  0xa8   : > { %v386_v24 = vpop.f32.mrf.mxu0  ;;  %v1076_v25 = vpop.f32.mrf.mxu1 }
  0xa9   : > { %v567_v57 = vmul.f32 %v386_v24, %v386_v24 }
  0xaf   : > { %v1078_v26 = vpop.f32.mrf.mxu2  ;;  %v1091_v31 = vpop.f32.mrf.mxu3 }
  0xb0   : > { %v388_v27 = vpop.f32.mrf.mxu0  ;;  %v1087_v28 = vpop.f32.mrf.mxu1 }
  0xb1   : > { %v863_v29 = vpack.c.bf16 %v388_v27, %v386_v24  ;;  %v883_v30 = vpack.c.bf16 %v1087_v28, %v1076_v25  ;;  %v568_v56 = vmul.f32 %v388_v27, %v388_v27  ;;  %v530_v59 = vadd.f32 %v388_v27, %v386_v24 }
  0xb2   : > { %v575_v27 = vmul.f32 %v1076_v25, %v1076_v25 }
  0xb3   : > { %864 = vst [vmem:[%s1085_s10] sm:$0xff] %v863_v29   ;;  %v599_v60 = vadd.f32 %v568_v56, %v567_v57 }
  0xb4   : > { %943 = vst [vmem:[%s1085_s10 + $0x20] sm:$0xff] %v883_v30  }
  0xb7   : > { %v1095_v32 = vpop.f32.mrf.mxu2  ;;  %v1101_v36 = vpop.f32.mrf.mxu3 }
  0xb8   : > { %v391_v33 = vpop.f32.mrf.mxu0  ;;  %v1097_v34 = vpop.f32.mrf.mxu1  ;;  %v903_v35 = vpack.c.bf16 %v1095_v32, %v1078_v26  ;;  %v923_v37 = vpack.c.bf16 %v1101_v36, %v1091_v31 }
  0xb9   : > { %v569_v58 = vmul.f32 %v391_v33, %v391_v33  ;;  %v531_v62 = vadd.f32 %v530_v59, %v391_v33 }
  0xba   : > { %947 = vst [vmem:[%s1085_s10 + $0x40] sm:$0xff] %v903_v35  }
  0xbb   : > { %951 = vst [vmem:[%s1085_s10 + $0x60] sm:$0xff] %v923_v37   ;;  %v600_v0 = vadd.f32 %v599_v60, %v569_v58 }
  0xbf   : > { %v1107_v38 = vpop.f32.mrf.mxu2  ;;  %v1113_v43 = vpop.f32.mrf.mxu3 }
  0xc0   : > { %v393_v39 = vpop.f32.mrf.mxu0  ;;  %v1109_v40 = vpop.f32.mrf.mxu1 }
  0xc1   : > { %v868_v41 = vpack.c.bf16 %v393_v39, %v391_v33  ;;  %v888_v42 = vpack.c.bf16 %v1109_v40, %v1097_v34  ;;  %v570_v61 = vmul.f32 %v393_v39, %v393_v39  ;;  %v532_v5 = vadd.f32 %v531_v62, %v393_v39 }
  0xc2   : > { %v576_v33 = vmul.f32 %v1087_v28, %v1087_v28  ;;  %v577_v39 = vmul.f32 %v1097_v34, %v1097_v34 }
  0xc3   : > { %940 = vst [vmem:[%s1085_s10 + $0x8] sm:$0xff] %v868_v41   ;;  %v601_v7 = vadd.f32 %v600_v0, %v570_v61 }
  0xc4   : > { %944 = vst [vmem:[%s1085_s10 + $0x28] sm:$0xff] %v888_v42  }
  0xc7   : > { %v1117_v44 = vpop.f32.mrf.mxu2  ;;  %v1123_v48 = vpop.f32.mrf.mxu3 }
  0xc8   : > { %v396_v45 = vpop.f32.mrf.mxu0  ;;  %v1119_v46 = vpop.f32.mrf.mxu1  ;;  %v908_v47 = vpack.c.bf16 %v1117_v44, %v1107_v38  ;;  %v928_v49 = vpack.c.bf16 %v1123_v48, %v1113_v43 }
  0xc9   : > { %v571_v1 = vmul.f32 %v396_v45, %v396_v45  ;;  %v533_v10 = vadd.f32 %v532_v5, %v396_v45  ;;  %v584_v5 = vmul.f32 %v1095_v32, %v1095_v32 }
  0xca   : > { %948 = vst [vmem:[%s1085_s10 + $0x48] sm:$0xff] %v908_v47  }
  0xcb   : > { %952 = vst [vmem:[%s1085_s10 + $0x68] sm:$0xff] %v928_v49   ;;  %v602_v11 = vadd.f32 %v601_v7, %v571_v1 }
  0xcf   : > { %v1129_v50 = vpop.f32.mrf.mxu2  ;;  %v1135_v55 = vpop.f32.mrf.mxu3 }
  0xd0   : > { %v398_v51 = vpop.f32.mrf.mxu0  ;;  %v1131_v52 = vpop.f32.mrf.mxu1 }
  0xd1   : > { %v873_v53 = vpack.c.bf16 %v398_v51, %v396_v45  ;;  %v893_v54 = vpack.c.bf16 %v1131_v52, %v1119_v46  ;;  %v572_v8 = vmul.f32 %v398_v51, %v398_v51  ;;  %v534_v13 = vadd.f32 %v533_v10, %v398_v51 }
  0xd2   : > { %v586_v10 = vmul.f32 %v1117_v44, %v1117_v44 }
  0xd3   : > { %941 = vst [vmem:[%s1085_s10 + $0x10] sm:$0xff] %v873_v53   ;;  %v603_v14 = vadd.f32 %v602_v11, %v572_v8 }
  0xd4   : > { %945 = vst [vmem:[%s1085_s10 + $0x30] sm:$0xff] %v893_v54   ;;  %v579_v54 = vmul.f32 %v1119_v46, %v1119_v46 }
  0xd7   : > { %v1139_v63 = vpop.f32.mrf.mxu2  ;;  %v1143_v6 = vpop.f32.mrf.mxu3 }
  0xd8   : > { %v401_v2 = vpop.f32.mrf.mxu0  ;;  %v421_v3 = vpop.f32.mrf.mxu1  ;;  %v913_v4 = vpack.c.bf16 %v1139_v63, %v1129_v50  ;;  %v933_v9 = vpack.c.bf16 %v1143_v6, %v1135_v55 }
  0xd9   : > { %v573_v12 = vmul.f32 %v401_v2, %v401_v2  ;;  %v535_v15 = vadd.f32 %v534_v13, %v401_v2  ;;  %v581_v61 = vmul.f32 %v421_v3, %v421_v3 }
  0xda   : > { %949 = vst [vmem:[%s1085_s10 + $0x50] sm:$0xff] %v913_v4  }
  0xdb   : > { %953 = vst [vmem:[%s1085_s10 + $0x70] sm:$0xff] %v933_v9   ;;  %v604_v17 = vadd.f32 %v603_v14, %v573_v12 }
  0xdf   : > { %v441_v16 = vpop.f32.mrf.mxu2  ;;  %v1149_v24 = vpop.f32.mrf.mxu3 }
  0xe0   : > { %v403_v18 = vpop.f32.mrf.mxu0  ;;  %v423_v19 = vpop.f32.mrf.mxu1 }
  0xe1   : > { %v878_v20 = vpack.c.bf16 %v403_v18, %v401_v2  ;;  %v536_v21 = vadd.f32 %v535_v15, %v403_v18  ;;  %v574_v22 = vmul.f32 %v403_v18, %v403_v18  ;;  %v898_v23 = vpack.c.bf16 %v423_v19, %v421_v3 }
  0xe2   : > { %v582_v1 = vmul.f32 %v423_v19, %v423_v19  ;;  %v583_v2 = vmul.f32 %v1078_v26, %v1078_v26  ;;  %v588_v15 = vmul.f32 %v1139_v63, %v1139_v63 }
  0xe3   : > { %942 = vst [vmem:[%s1085_s10 + $0x18] sm:$0xff] %v878_v20   ;;  %v537_v29 = vadd.f32 %v536_v21, %v1076_v25  ;;  %v605_v30 = vadd.f32 %v604_v17, %v574_v22  ;;  %v578_v25 = vmul.f32 %v1109_v40, %v1109_v40 }
  0xe4   : > { %946 = vst [vmem:[%s1085_s10 + $0x38] sm:$0xff] %v898_v23  }
  0xe5   : > { %v538_v35 = vadd.f32 %v537_v29, %v1087_v28  ;;  %v606_v37 = vadd.f32 %v605_v30, %v575_v27 }
  0xe7   : > { %v539_v41 = vadd.f32 %v538_v35, %v1097_v34  ;;  %v607_v42 = vadd.f32 %v606_v37, %v576_v33  ;;  %v443_v45 = vpop.f32.mrf.mxu2  ;;  %v463_v53 = vpop.f32.mrf.mxu3  ;;  %v580_v34 = vmul.f32 %v1131_v52, %v1131_v52  ;;  %v594_v35 = vmul.f32 %v1123_v48, %v1123_v48 }
  0xe8   : > { %v918_v47 = vpack.c.bf16 %v443_v45, %v441_v16  ;;  %v938_v28 = vpack.c.bf16 %v463_v53, %v1149_v24  ;;  %v590_v22 = vmul.f32 %v443_v45, %v443_v45 }
  0xe9   : > { %v608_v49 = vadd.f32 %v607_v42, %v577_v39  ;;  %v540_v51 = vadd.f32 %v539_v41, %v1109_v40  ;;  %v595_v39 = vmul.f32 %v1135_v55, %v1135_v55 }
  0xea   : > { %950 = vst [vmem:[%s1085_s10 + $0x58] sm:$0xff] %v918_v47  }
  0xeb   : > { %v541_v56 = vadd.f32 %v540_v51, %v1119_v46  ;;  %v609_v57 = vadd.f32 %v608_v49, %v578_v25  ;;  %954 = vst [vmem:[%s1085_s10 + $0x78] sm:$0xff] %v938_v28   ;;  %v597_v49 = vmul.f32 %v1149_v24, %v1149_v24  ;;  %v598_v28 = vmul.f32 %v463_v53, %v463_v53 }
  0xed   : > { %v542_v58 = vadd.f32 %v541_v56, %v1131_v52  ;;  %v610_v59 = vadd.f32 %v609_v57, %v579_v54  ;;  %v585_v52 = vmul.f32 %v1107_v38, %v1107_v38 }
  0xef   : > { %v543_v60 = vadd.f32 %v542_v58, %v421_v3  ;;  %v611_v40 = vadd.f32 %v610_v59, %v580_v34 }
  0xf1   : > { %v612_v62 = vadd.f32 %v611_v40, %v581_v61  ;;  %v544_v0 = vadd.f32 %v543_v60, %v423_v19  ;;  %v589_v19 = vmul.f32 %v441_v16, %v441_v16 }
  0xf3   : > { %v545_v4 = vadd.f32 %v544_v0, %v1078_v26  ;;  %v613_v46 = vadd.f32 %v612_v62, %v582_v1  ;;  %v587_v26 = vmul.f32 %v1129_v50, %v1129_v50 }
  0xf5   : > { %v546_v7 = vadd.f32 %v545_v4, %v1095_v32  ;;  %v614_v8 = vadd.f32 %v613_v46, %v583_v2 }
  0xf7   : > { %v547_v3 = vadd.f32 %v546_v7, %v1107_v38  ;;  %v615_v9 = vadd.f32 %v614_v8, %v584_v5 }
  0xf9   : > { %v616_v11 = vadd.f32 %v615_v9, %v585_v52  ;;  %v548_v12 = vadd.f32 %v547_v3, %v1117_v44  ;;  %v591_v44 = vmul.f32 %v1091_v31, %v1091_v31 }
  0xfb   : > { %v549_v13 = vadd.f32 %v548_v12, %v1129_v50  ;;  %v617_v14 = vadd.f32 %v616_v11, %v586_v10  ;;  %v592_v50 = vmul.f32 %v1101_v36, %v1101_v36 }
  0xfd   : > { %v550_v32 = vadd.f32 %v549_v13, %v1139_v63  ;;  %v618_v17 = vadd.f32 %v617_v14, %v587_v26  ;;  %v593_v63 = vmul.f32 %v1113_v43, %v1113_v43 }
  0xff   : > { %v619_v38 = vadd.f32 %v618_v17, %v588_v15  ;;  %v551_v18 = vadd.f32 %v550_v32, %v441_v16 }
 0x101   : > { %v620_v20 = vadd.f32 %v619_v38, %v589_v19  ;;  %v552_v21 = vadd.f32 %v551_v18, %v443_v45 }
 0x103   : > { %v553_v23 = vadd.f32 %v552_v21, %v1091_v31  ;;  %v621_v27 = vadd.f32 %v620_v20, %v590_v22 }
 0x105   : > { %v554_v29 = vadd.f32 %v553_v23, %v1101_v36  ;;  %v622_v30 = vadd.f32 %v621_v27, %v591_v44 }
 0x107   : > { %v555_v16 = vadd.f32 %v554_v29, %v1113_v43  ;;  %v623_v33 = vadd.f32 %v622_v30, %v592_v50  ;;  %v596_v43 = vmul.f32 %v1143_v6, %v1143_v6 }
 0x109   : > { %v624_v37 = vadd.f32 %v623_v33, %v593_v63  ;;  %v556_v31 = vadd.f32 %v555_v16, %v1123_v48 }
 0x10b   : > { %v557_v41 = vadd.f32 %v556_v31, %v1135_v55  ;;  %v625_v36 = vadd.f32 %v624_v37, %v594_v35 }
 0x10d   : > { %v558_v42 = vadd.f32 %v557_v41, %v1143_v6  ;;  %v626_v45 = vadd.f32 %v625_v36, %v595_v39 }
 0x10f   : > { %v627_v47 = vadd.f32 %v626_v45, %v596_v43  ;;  %v559_v25 = vadd.f32 %v558_v42, %v1149_v24 }
 0x111   : > { %v628_v48 = vadd.f32 %v627_v47, %v597_v49  ;;  %v560_v51 = vadd.f32 %v559_v25, %v463_v53 }
 0x113   : > { %v561_v54 = vrot.slane %v560_v51, 4  ;;  %v629_v56 = vadd.f32 %v628_v48, %v598_v28 }
 0x115   : > { %v562_v55 = vadd.f32 %v561_v54, %v560_v51  ;;  %v630_v57 = vrot.slane %v629_v56, 4 }
 0x117   : > { %v563_v34 = vrot.slane %v562_v55, 2  ;;  %v631_v58 = vadd.f32 %v630_v57, %v629_v56 }
 0x119   : > { %v564_v59 = vadd.f32 %v563_v34, %v562_v55  ;;  %v632_v6 = vrot.slane %v631_v58, 2 }
 0x11b   : > { %v565_v60 = vrot.slane %v564_v59, 1  ;;  %v633_v61 = vadd.f32 %v632_v6, %v631_v58 }
 0x11d   : > { %v634_v40 = vrot.slane %v633_v61, 1  ;;  %v566_v62 = vadd.f32 %v565_v60, %v564_v59 }
 0x11f   : > { %v635_v24 = vadd.f32 %v634_v40, %v633_v61 }
 0x121   : > { %v637_v53 = vsel %vm636_vm0, %v566_v62, %v635_v24 }
 0x122   : > { %v639_v0 = vsel %vm638_vm1, %v637_v53, 0.0 }
 0x123   : > { %640 = vst [vmem:[%s184_s16] sm:$0xff] %v639_v0 }
 0x124 PF: > { %s14_s12 = sadd.s32 1, %s993_s12  }
 0x125   : > { %p11_p5 = scmp.ge.s32.totalorder %s14_s12, 4  }
 0x127   :  { %13 = sbr.rel (!%p11_p5) target bundleno = 1 (0x1), region = 70 }

// kernel: res_block_forward.6
= control target key start
LH: loop header
LB: loop body
LE: loop exit
PB: predicated region body
PF: predicated region fallthrough
CT: control target
= control target key end

     0   :  { %s1136_s18 = smov 0   ;;  %s1416_s0 = inlined_call_operand.vmem [shape: bf16[512,128], index: 0, kind: input, shape index: {}]   ;;  %s1417_s1 = inlined_call_operand.vmem [shape: f32[1,128], index: 1, kind: input, shape index: {}]   ;;  %s1418_s2 = inlined_call_operand.vmem [shape: f32[1,128], index: 2, kind: input, shape index: {}]   ;;  %s1419_s3 = inlined_call_operand.vmem [shape: bf16[128,128], index: 3, kind: input, shape index: {}]   ;;  %s1420_s4 = inlined_call_operand.vmem [shape: bf16[512,128], index: 4, kind: output, shape index: {0}]   ;;  %s1421_s5 = inlined_call_operand.vmem [shape: f32[2,8,128], index: 5, kind: output, shape index: {1}]  }
   0x1 LB: > { %s1142_s19 = sadd.s32 4294967295, %s1104_s18   ;;  %p842_p0 = scmp.ge.s32.totalorder %s1104_s18, 1  ;;  %s1104_s18 = sphi %s1136_s18, %s16_s18  }
   0x2   : > { %p191_p1 = scmp.lt.s32.totalorder %s1104_s18, 3 }
   0x4   : > { %p192_p2 = pnand %p842_p0, %p191_p1 }
   0x5   : > { %s843_s22 = sshll.u32 (!%p192_p2), %s1142_s19, 5  ;;  %p235_p4 = scmp.lt.s32.totalorder (!%p192_p2), %s1142_s19, 1 }
   0x6   : > { %195 = sbr.rel (%p192_p2) target bundleno = 292 (0x124), region = 36  ;;  %p224_p3 = scmp.lt.s32.totalorder (!%p192_p2), %s843_s22, 63 }
   0xb   : > { %v889_v0 = vld [vmem:[%s1419_s3 + $0x38] sm:$0xff]  ;;  %v888_v1 = vld [vmem:[%s1419_s3 + $0x30] sm:$0xff]  ;;  %s1423_s22 = smov (!%p224_p3, %s843_s22), 63  ;;  %v887_v2 = vld [vmem:[%s1419_s3 + $0x28] sm:$0xff]  ;;  %s1425_s19 = smov (!%p235_p4, %s1142_s19), 1  ;;  %vm746_vm0 = vcmask 1040384  }
   0xc   : > { %487 = vmatpush.bf16.msra.mxu0 %v889_v0  ;;  %1064 = vmatpush.bf16.msra.mxu1 %v889_v0  ;;  %s844_s25 = sshll.u32 %s1423_s22, 2  ;;  %v886_v4 = vld [vmem:[%s1419_s3 + $0x20] sm:$0xff]  ;;  %v885_v12 = vld [vmem:[%s1419_s3 + $0x18] sm:$0xff]  ;;  %v884_v20 = vld [vmem:[%s1419_s3 + $0x10] sm:$0xff]  ;;  %s847_s22 = sshll.u32 %s1425_s19, 3  ;;  %vm748_vm1 = vcmask 1041408  }
   0xd   : > { %1065 = vmatpush.bf16.msra.mxu2 %v889_v0  ;;  %1066 = vmatpush.bf16.msra.mxu3 %v889_v0  ;;  %s1164_s30 = scalar_lea.vmem %s1416_s0, %s844_s25  ;;  %v1175_v9 = vld [vmem:[%s1417_s1] ss:$0 sm:$0xff]  ;;  %v883_v27 = vld [vmem:[%s1419_s3 + $0x8] sm:$0xff]  ;;  %s1280_s26 = scalar_lea.vmem %s1420_s4, %s844_s25 }
   0xe   : > { %v891_v3 = vld [vmem:[%s1164_s30] sm:$0xff]   ;;  %v1034_v32 = vld [vmem:[%s1164_s30 + $0x8] sm:$0xff]   ;;  %s238_s28 = scalar_lea.vmem %s1421_s5, %s847_s22 }
   0xf   : > { %v1037_v5 = vld [vmem:[%s1164_s30 + $0x20] sm:$0xff]   ;;  %v892_v7 = vunpack.c.l.bf16 %v891_v3  ;;  %v893_v8 = vunpack.c.h.bf16 %v891_v3  ;;  %v1038_v36 = vld [vmem:[%s1164_s30 + $0x28] sm:$0xff]   ;;  %v896_v42 = vunpack.c.l.bf16 %v1034_v32  ;;  %v897_v45 = vunpack.c.h.bf16 %v1034_v32 }
  0x10   : > { %488 = vmatpush.bf16.msra.mxu0 %v888_v1  ;;  %1067 = vmatpush.bf16.msra.mxu1 %v888_v1  ;;  %v1041_v6 = vld [vmem:[%s1164_s30 + $0x40] sm:$0xff]   ;;  %v908_v10 = vunpack.c.l.bf16 %v1037_v5  ;;  %v909_v11 = vunpack.c.h.bf16 %v1037_v5  ;;  %v1042_v43 = vld [vmem:[%s1164_s30 + $0x48] sm:$0xff]   ;;  %v912_v46 = vunpack.c.l.bf16 %v1038_v36  ;;  %v913_v47 = vunpack.c.h.bf16 %v1038_v36 }
  0x11   : > { %1068 = vmatpush.bf16.msra.mxu2 %v888_v1  ;;  %1069 = vmatpush.bf16.msra.mxu3 %v888_v1  ;;  %v924_v13 = vunpack.c.l.bf16 %v1041_v6  ;;  %v925_v14 = vunpack.c.h.bf16 %v1041_v6  ;;  %v307_v15 = vmul.f32 %v1175_v9, %v892_v7  ;;  %v308_v16 = vmul.f32 %v1175_v9, %v893_v8  ;;  %v1185_v17 = vld [vmem:[%s1418_s2] ss:$0 sm:$0xff] }
  0x12   : > { %v315_v18 = vmul.f32 %v1175_v9, %v908_v10  ;;  %v316_v19 = vmul.f32 %v1175_v9, %v909_v11  ;;  %v1045_v33 = vld [vmem:[%s1164_s30 + $0x60] sm:$0xff]   ;;  %v928_v53 = vunpack.c.l.bf16 %v1042_v43  ;;  %v929_v54 = vunpack.c.h.bf16 %v1042_v43  ;;  %v1047_v43 = vld [vmem:[%s1164_s30 + $0x70] sm:$0xff]  }
  0x13   : > { %v323_v21 = vmul.f32 %v1175_v9, %v924_v13  ;;  %v324_v22 = vmul.f32 %v1175_v9, %v925_v14  ;;  %v343_v23 = vadd.f32 %v1185_v17, %v307_v15  ;;  %v344_v24 = vadd.f32 %v1185_v17, %v308_v16  ;;  %v882_v39 = vld [vmem:[%s1419_s3] sm:$0xff]  ;;  %v1035_v13 = vld [vmem:[%s1164_s30 + $0x10] sm:$0xff]  }
  0x14   : > { %489 = vmatpush.bf16.msra.mxu0 %v887_v2  ;;  %1070 = vmatpush.bf16.msra.mxu1 %v887_v2  ;;  %v351_v25 = vadd.f32 %v1185_v17, %v315_v18  ;;  %v352_v26 = vadd.f32 %v1185_v17, %v316_v19  ;;  %v940_v37 = vunpack.c.l.bf16 %v1045_v33  ;;  %v941_v38 = vunpack.c.h.bf16 %v1045_v33  ;;  %v1039_v19 = vld [vmem:[%s1164_s30 + $0x30] sm:$0xff]  }
  0x15   : > { %1071 = vmatpush.bf16.msra.mxu2 %v887_v2  ;;  %1072 = vmatpush.bf16.msra.mxu3 %v887_v2  ;;  %v359_v28 = vadd.f32 %v1185_v17, %v323_v21  ;;  %v360_v29 = vadd.f32 %v1185_v17, %v324_v22  ;;  %v375_v30 = vmax.f32 %v343_v23, 0.0  ;;  %v376_v31 = vmax.f32 %v344_v24, 0.0 }
  0x16   : > { %v383_v34 = vmax.f32 %v351_v25, 0.0  ;;  %v384_v35 = vmax.f32 %v352_v26, 0.0  ;;  %v331_v44 = vmul.f32 %v1175_v9, %v940_v37  ;;  %v332_v48 = vmul.f32 %v1175_v9, %v941_v38 }
  0x17   : > { %v391_v40 = vmax.f32 %v359_v28, 0.0  ;;  %v392_v41 = vmax.f32 %v360_v29, 0.0  ;;  %v407_v49 = vpack.c.bf16 %v376_v31, %v375_v30  ;;  %v309_v56 = vmul.f32 %v1175_v9, %v896_v42 }
  0x18   : > { %490 = vmatpush.bf16.msra.mxu0 %v886_v4  ;;  %1073 = vmatpush.bf16.msra.mxu1 %v886_v4  ;;  %v411_v50 = vpack.c.bf16 %v384_v35, %v383_v34  ;;  %v367_v51 = vadd.f32 %v1185_v17, %v331_v44  ;;  %v368_v55 = vadd.f32 %v1185_v17, %v332_v48  ;;  %v900_v25 = vunpack.c.l.bf16 %v1035_v13 }
  0x19   : > { %1074 = vmatpush.bf16.msra.mxu2 %v886_v4  ;;  %1075 = vmatpush.bf16.msra.mxu3 %v886_v4  ;;  %v415_v52 = vpack.c.bf16 %v392_v41, %v391_v40  ;;  %v310_v58 = vmul.f32 %v1175_v9, %v897_v45  ;;  %v317_v59 = vmul.f32 %v1175_v9, %v912_v46  ;;  %v901_v26 = vunpack.c.h.bf16 %v1035_v13 }
  0x1a   : > { %v399_v57 = vmax.f32 %v367_v51, 0.0  ;;  %v318_v60 = vmul.f32 %v1175_v9, %v913_v47  ;;  %v400_v61 = vmax.f32 %v368_v55, 0.0  ;;  %v325_v62 = vmul.f32 %v1175_v9, %v928_v53 }
  0x1b   : > { %v326_v63 = vmul.f32 %v1175_v9, %v929_v54  ;;  %v345_v1 = vadd.f32 %v1185_v17, %v309_v56  ;;  %v346_v2 = vadd.f32 %v1185_v17, %v310_v58  ;;  %v353_v3 = vadd.f32 %v1185_v17, %v317_v59 }
  0x1c   : > { %491 = vmatpush.bf16.msra.mxu0 %v885_v12  ;;  %1076 = vmatpush.bf16.msra.mxu1 %v885_v12  ;;  %v419_v0 = vpack.c.bf16 %v400_v61, %v399_v57  ;;  %v354_v4 = vadd.f32 %v1185_v17, %v318_v60  ;;  %v361_v5 = vadd.f32 %v1185_v17, %v325_v62  ;;  %v917_v28 = vunpack.c.h.bf16 %v1039_v19  ;;  %v1036_v60 = vld [vmem:[%s1164_s30 + $0x18] sm:$0xff]  }
  0x1d   : > { %1077 = vmatpush.bf16.msra.mxu2 %v885_v12  ;;  %1078 = vmatpush.bf16.msra.mxu3 %v885_v12  ;;  %v362_v6 = vadd.f32 %v1185_v17, %v326_v63  ;;  %v377_v7 = vmax.f32 %v345_v1, 0.0  ;;  %v378_v8 = vmax.f32 %v346_v2, 0.0  ;;  %v385_v10 = vmax.f32 %v353_v3, 0.0  ;;  %v1046_v12 = vld [vmem:[%s1164_s30 + $0x68] sm:$0xff]   ;;  %v1040_v63 = vld [vmem:[%s1164_s30 + $0x38] sm:$0xff]  }
  0x1e   : > { %v386_v11 = vmax.f32 %v354_v4, 0.0  ;;  %v944_v14 = vunpack.c.l.bf16 %v1046_v12  ;;  %v945_v15 = vunpack.c.h.bf16 %v1046_v12  ;;  %v393_v16 = vmax.f32 %v361_v5, 0.0 }
  0x1f   : > { %v394_v18 = vmax.f32 %v362_v6, 0.0  ;;  %v408_v23 = vpack.c.bf16 %v378_v8, %v377_v7  ;;  %v311_v36 = vmul.f32 %v1175_v9, %v900_v25  ;;  %v312_v37 = vmul.f32 %v1175_v9, %v901_v26 }
  0x20   : > { %492 = vmatpush.bf16.msra.mxu0 %v884_v20  ;;  %1079 = vmatpush.bf16.msra.mxu1 %v884_v20  ;;  %v333_v21 = vmul.f32 %v1175_v9, %v944_v14  ;;  %v334_v22 = vmul.f32 %v1175_v9, %v945_v15  ;;  %v412_v24 = vpack.c.bf16 %v386_v11, %v385_v10  ;;  %v948_v44 = vunpack.c.l.bf16 %v1047_v43  ;;  %v1048_v10 = vld [vmem:[%s1164_s30 + $0x78] sm:$0xff]  }
  0x21   : > { %1080 = vmatpush.bf16.msra.mxu2 %v884_v20  ;;  %1081 = vmatpush.bf16.msra.mxu3 %v884_v20  ;;  %v1043_v20 = vld [vmem:[%s1164_s30 + $0x50] sm:$0xff]   ;;  %v416_v31 = vpack.c.bf16 %v394_v18, %v393_v16  ;;  %v949_v45 = vunpack.c.h.bf16 %v1047_v43  ;;  %v347_v46 = vadd.f32 %v1185_v17, %v311_v36  ;;  %v348_v47 = vadd.f32 %v1185_v17, %v312_v37 }
  0x22   : > { %v369_v29 = vadd.f32 %v1185_v17, %v333_v21  ;;  %v370_v30 = vadd.f32 %v1185_v17, %v334_v22  ;;  %v932_v32 = vunpack.c.l.bf16 %v1043_v20  ;;  %v933_v33 = vunpack.c.h.bf16 %v1043_v20 }
  0x23   : > { %v336_v51 = vmul.f32 %v1175_v9, %v949_v45  ;;  %v379_v54 = vmax.f32 %v347_v46, 0.0  ;;  %v380_v55 = vmax.f32 %v348_v47, 0.0  ;;  %v904_v2 = vunpack.c.l.bf16 %v1036_v60 }
  0x24   : > { %493 = vmatpush.bf16.msra.mxu0 %v883_v27  ;;  %1082 = vmatpush.bf16.msra.mxu1 %v883_v27  ;;  %v401_v34 = vmax.f32 %v369_v29, 0.0  ;;  %v402_v35 = vmax.f32 %v370_v30, 0.0  ;;  %v327_v41 = vmul.f32 %v1175_v9, %v932_v32  ;;  %v328_v42 = vmul.f32 %v1175_v9, %v933_v33 }
  0x25   : > { %1083 = vmatpush.bf16.msra.mxu2 %v883_v27  ;;  %1084 = vmatpush.bf16.msra.mxu3 %v883_v27  ;;  %v916_v27 = vunpack.c.l.bf16 %v1039_v19  ;;  %v372_v57 = vadd.f32 %v1185_v17, %v336_v51  ;;  %v409_v1 = vpack.c.bf16 %v380_v55, %v379_v54  ;;  %v905_v6 = vunpack.c.h.bf16 %v1036_v60 }
  0x26   : > { %v420_v40 = vpack.c.bf16 %v402_v35, %v401_v34  ;;  %v364_v53 = vadd.f32 %v1185_v17, %v328_v42  ;;  %v920_v7 = vunpack.c.l.bf16 %v1040_v63  ;;  %v921_v8 = vunpack.c.h.bf16 %v1040_v63 }
  0x27   : > { %v319_v38 = vmul.f32 %v1175_v9, %v916_v27  ;;  %v404_v4 = vmax.f32 %v372_v57, 0.0  ;;  %v313_v14 = vmul.f32 %v1175_v9, %v904_v2  ;;  %v952_v16 = vunpack.c.l.bf16 %v1048_v10 }
  0x28   : > { %494 = vmatpush.bf16.msra.mxu0 %v882_v39  ;;  %1085 = vmatpush.bf16.msra.mxu1 %v882_v39  ;;  %v396_v62 = vmax.f32 %v364_v53, 0.0  ;;  %v953_v18 = vunpack.c.h.bf16 %v1048_v10  ;;  %v314_v19 = vmul.f32 %v1175_v9, %v905_v6  ;;  %v321_v20 = vmul.f32 %v1175_v9, %v920_v7 }
  0x29   : > { %1086 = vmatpush.bf16.msra.mxu2 %v882_v39  ;;  %1087 = vmatpush.bf16.msra.mxu3 %v882_v39  ;;  %v320_v39 = vmul.f32 %v1175_v9, %v917_v28  ;;  %v355_v48 = vadd.f32 %v1185_v17, %v319_v38  ;;  %v322_v21 = vmul.f32 %v1175_v9, %v921_v8 }
  0x2a   : > { %v338_v25 = vmul.f32 %v1175_v9, %v953_v18  ;;  %v349_v26 = vadd.f32 %v1185_v17, %v313_v14  ;;  %v350_v27 = vadd.f32 %v1185_v17, %v314_v19  ;;  %v357_v28 = vadd.f32 %v1185_v17, %v321_v20 }
  0x2b   : > { %495 = vmatmul.bf16.vlgmr.msra.gmra.mxu0 %v407_v49  ;;  %515 = vmatmul.bf16.vlgmr.msra.gmra.mxu1 %v411_v50  ;;  %v356_v49 = vadd.f32 %v1185_v17, %v320_v39  ;;  %v335_v50 = vmul.f32 %v1175_v9, %v948_v44  ;;  %v387_v58 = vmax.f32 %v355_v48, 0.0  ;;  %v358_v29 = vadd.f32 %v1185_v17, %v322_v21 }
  0x2c   : > { %535 = vmatmul.bf16.vlgmr.msra.gmra.mxu2 %v415_v52  ;;  %555 = vmatmul.bf16.vlgmr.msra.gmra.mxu3 %v419_v0  ;;  %v363_v52 = vadd.f32 %v1185_v17, %v327_v41  ;;  %v1044_v0 = vld [vmem:[%s1164_s30 + $0x58] sm:$0xff]   ;;  %v374_v33 = vadd.f32 %v1185_v17, %v338_v25  ;;  %v381_v34 = vmax.f32 %v349_v26, 0.0  ;;  %v382_v35 = vmax.f32 %v350_v27, 0.0 }
  0x2d   : > { %v371_v56 = vadd.f32 %v1185_v17, %v335_v50  ;;  %v388_v59 = vmax.f32 %v356_v49, 0.0  ;;  %v936_v12 = vunpack.c.l.bf16 %v1044_v0  ;;  %v937_v13 = vunpack.c.h.bf16 %v1044_v0 }
  0x2e   : > { %v395_v61 = vmax.f32 %v363_v52, 0.0  ;;  %v389_v36 = vmax.f32 %v357_v28, 0.0  ;;  %v410_v41 = vpack.c.bf16 %v382_v35, %v381_v34 }
  0x2f   : > { %v403_v3 = vmax.f32 %v371_v56, 0.0  ;;  %v413_v5 = vpack.c.bf16 %v388_v59, %v387_v58  ;;  %v329_v22 = vmul.f32 %v1175_v9, %v936_v12 }
  0x30   : > { %v417_v11 = vpack.c.bf16 %v396_v62, %v395_v61 }
  0x31   : > { %v421_v15 = vpack.c.bf16 %v404_v4, %v403_v3  ;;  %v365_v30 = vadd.f32 %v1185_v17, %v329_v22 }
  0x33   : > { %v397_v37 = vmax.f32 %v365_v30, 0.0 }
  0x3b   : > { %500 = vmatmul.bf16.gmra.mxu0 %v408_v23  ;;  %520 = vmatmul.bf16.gmra.mxu1 %v412_v24  ;;  %v330_v23 = vmul.f32 %v1175_v9, %v937_v13  ;;  %v337_v24 = vmul.f32 %v1175_v9, %v952_v16  ;;  %v390_v9 = vmax.f32 %v358_v29, 0.0 }
  0x3c   : > { %540 = vmatmul.bf16.gmra.mxu2 %v416_v31  ;;  %560 = vmatmul.bf16.gmra.mxu3 %v420_v40  ;;  %v406_v40 = vmax.f32 %v374_v33, 0.0 }
  0x3d   : > { %v366_v31 = vadd.f32 %v1185_v17, %v330_v23  ;;  %v373_v32 = vadd.f32 %v1185_v17, %v337_v24  ;;  %v414_v42 = vpack.c.bf16 %v390_v9, %v389_v36 }
  0x3f   : > { %v398_v38 = vmax.f32 %v366_v31, 0.0  ;;  %v405_v39 = vmax.f32 %v373_v32, 0.0 }
  0x41   : > { %v418_v43 = vpack.c.bf16 %v398_v38, %v397_v37  ;;  %v422_v44 = vpack.c.bf16 %v406_v40, %v405_v39 }
  0x4b   : > { %505 = vmatmul.bf16.gmra.mxu0 %v409_v1  ;;  %525 = vmatmul.bf16.gmra.mxu1 %v413_v5 }
  0x4c   : > { %545 = vmatmul.bf16.gmra.mxu2 %v417_v11  ;;  %565 = vmatmul.bf16.gmra.mxu3 %v421_v15 }
  0x5b   : > { %510 = vmatmul.bf16.gmra.mxu0 %v410_v41  ;;  %530 = vmatmul.bf16.gmra.mxu1 %v414_v42 }
  0x5c   : > { %550 = vmatmul.bf16.gmra.mxu2 %v418_v43  ;;  %570 = vmatmul.bf16.gmra.mxu3 %v422_v44 }
  0xa8   : > { %v496_v45 = vpop.f32.mrf.mxu0  ;;  %v1271_v46 = vpop.f32.mrf.mxu1 }
  0xa9   : > { %v677_v14 = vmul.f32 %v496_v45, %v496_v45 }
  0xaf   : > { %v1273_v17 = vpop.f32.mrf.mxu2  ;;  %v1286_v51 = vpop.f32.mrf.mxu3 }
  0xb0   : > { %v498_v47 = vpop.f32.mrf.mxu0  ;;  %v1282_v48 = vpop.f32.mrf.mxu1 }
  0xb1   : > { %v957_v49 = vpack.c.bf16 %v498_v47, %v496_v45  ;;  %v977_v50 = vpack.c.bf16 %v1282_v48, %v1271_v46  ;;  %v678_v13 = vmul.f32 %v498_v47, %v498_v47  ;;  %v640_v16 = vadd.f32 %v498_v47, %v496_v45 }
  0xb2   : > { %v685_v47 = vmul.f32 %v1271_v46, %v1271_v46 }
  0xb3   : > { %958 = vst [vmem:[%s1280_s26] sm:$0xff] %v957_v49   ;;  %v709_v18 = vadd.f32 %v678_v13, %v677_v14 }
  0xb4   : > { %1052 = vst [vmem:[%s1280_s26 + $0x20] sm:$0xff] %v977_v50  }
  0xb7   : > { %v1290_v52 = vpop.f32.mrf.mxu2  ;;  %v1296_v56 = vpop.f32.mrf.mxu3 }
  0xb8   : > { %v501_v53 = vpop.f32.mrf.mxu0  ;;  %v1292_v54 = vpop.f32.mrf.mxu1  ;;  %v997_v55 = vpack.c.bf16 %v1290_v52, %v1273_v17  ;;  %v1017_v57 = vpack.c.bf16 %v1296_v56, %v1286_v51 }
  0xb9   : > { %v679_v15 = vmul.f32 %v501_v53, %v501_v53  ;;  %v641_v20 = vadd.f32 %v640_v16, %v501_v53 }
  0xba   : > { %1056 = vst [vmem:[%s1280_s26 + $0x40] sm:$0xff] %v997_v55  }
  0xbb   : > { %1060 = vst [vmem:[%s1280_s26 + $0x60] sm:$0xff] %v1017_v57   ;;  %v710_v22 = vadd.f32 %v709_v18, %v679_v15 }
  0xbf   : > { %v1302_v58 = vpop.f32.mrf.mxu2  ;;  %v1308_v63 = vpop.f32.mrf.mxu3 }
  0xc0   : > { %v503_v59 = vpop.f32.mrf.mxu0  ;;  %v1304_v60 = vpop.f32.mrf.mxu1 }
  0xc1   : > { %v962_v61 = vpack.c.bf16 %v503_v59, %v501_v53  ;;  %v982_v62 = vpack.c.bf16 %v1304_v60, %v1292_v54  ;;  %v680_v19 = vmul.f32 %v503_v59, %v503_v59  ;;  %v642_v27 = vadd.f32 %v641_v20, %v503_v59 }
  0xc2   : > { %v686_v53 = vmul.f32 %v1282_v48, %v1282_v48  ;;  %v687_v59 = vmul.f32 %v1292_v54, %v1292_v54 }
  0xc3   : > { %1049 = vst [vmem:[%s1280_s26 + $0x8] sm:$0xff] %v962_v61   ;;  %v711_v29 = vadd.f32 %v710_v22, %v680_v19 }
  0xc4   : > { %1053 = vst [vmem:[%s1280_s26 + $0x28] sm:$0xff] %v982_v62  }
  0xc7   : > { %v1312_v0 = vpop.f32.mrf.mxu2  ;;  %v1318_v4 = vpop.f32.mrf.mxu3 }
  0xc8   : > { %v506_v1 = vpop.f32.mrf.mxu0  ;;  %v1314_v2 = vpop.f32.mrf.mxu1  ;;  %v1002_v3 = vpack.c.bf16 %v1312_v0, %v1302_v58  ;;  %v1022_v5 = vpack.c.bf16 %v1318_v4, %v1308_v63 }
  0xc9   : > { %v681_v23 = vmul.f32 %v506_v1, %v506_v1  ;;  %v643_v32 = vadd.f32 %v642_v27, %v506_v1  ;;  %v694_v27 = vmul.f32 %v1290_v52, %v1290_v52 }
  0xca   : > { %1057 = vst [vmem:[%s1280_s26 + $0x48] sm:$0xff] %v1002_v3  }
  0xcb   : > { %1061 = vst [vmem:[%s1280_s26 + $0x68] sm:$0xff] %v1022_v5   ;;  %v712_v33 = vadd.f32 %v711_v29, %v681_v23 }
  0xcf   : > { %v1324_v6 = vpop.f32.mrf.mxu2  ;;  %v1330_v12 = vpop.f32.mrf.mxu3 }
  0xd0   : > { %v508_v7 = vpop.f32.mrf.mxu0  ;;  %v1326_v8 = vpop.f32.mrf.mxu1 }
  0xd1   : > { %v967_v10 = vpack.c.bf16 %v508_v7, %v506_v1  ;;  %v987_v11 = vpack.c.bf16 %v1326_v8, %v1314_v2  ;;  %v682_v30 = vmul.f32 %v508_v7, %v508_v7  ;;  %v644_v35 = vadd.f32 %v643_v32, %v508_v7 }
  0xd2   : > { %v696_v32 = vmul.f32 %v1312_v0, %v1312_v0 }
  0xd3   : > { %1050 = vst [vmem:[%s1280_s26 + $0x10] sm:$0xff] %v967_v10   ;;  %v713_v36 = vadd.f32 %v712_v33, %v682_v30 }
  0xd4   : > { %1054 = vst [vmem:[%s1280_s26 + $0x30] sm:$0xff] %v987_v11   ;;  %v689_v11 = vmul.f32 %v1314_v2, %v1314_v2 }
  0xd7   : > { %v1334_v21 = vpop.f32.mrf.mxu2  ;;  %v1338_v28 = vpop.f32.mrf.mxu3 }
  0xd8   : > { %v511_v24 = vpop.f32.mrf.mxu0  ;;  %v531_v25 = vpop.f32.mrf.mxu1  ;;  %v1007_v26 = vpack.c.bf16 %v1334_v21, %v1324_v6  ;;  %v1027_v31 = vpack.c.bf16 %v1338_v28, %v1330_v12 }
  0xd9   : > { %v683_v34 = vmul.f32 %v511_v24, %v511_v24  ;;  %v645_v9 = vadd.f32 %v644_v35, %v511_v24  ;;  %v691_v19 = vmul.f32 %v531_v25, %v531_v25 }
  0xda   : > { %1058 = vst [vmem:[%s1280_s26 + $0x50] sm:$0xff] %v1007_v26  }
  0xdb   : > { %1062 = vst [vmem:[%s1280_s26 + $0x70] sm:$0xff] %v1027_v31   ;;  %v714_v38 = vadd.f32 %v713_v36, %v683_v34 }
  0xdf   : > { %v551_v37 = vpop.f32.mrf.mxu2  ;;  %v1344_v45 = vpop.f32.mrf.mxu3 }
  0xe0   : > { %v513_v39 = vpop.f32.mrf.mxu0  ;;  %v533_v40 = vpop.f32.mrf.mxu1 }
  0xe1   : > { %v972_v41 = vpack.c.bf16 %v513_v39, %v511_v24  ;;  %v646_v42 = vadd.f32 %v645_v9, %v513_v39  ;;  %v684_v43 = vmul.f32 %v513_v39, %v513_v39  ;;  %v992_v44 = vpack.c.bf16 %v533_v40, %v531_v25 }
  0xe2   : > { %v692_v23 = vmul.f32 %v533_v40, %v533_v40  ;;  %v693_v24 = vmul.f32 %v1273_v17, %v1273_v17  ;;  %v698_v9 = vmul.f32 %v1334_v21, %v1334_v21 }
  0xe3   : > { %1051 = vst [vmem:[%s1280_s26 + $0x18] sm:$0xff] %v972_v41   ;;  %v647_v49 = vadd.f32 %v646_v42, %v1271_v46  ;;  %v715_v50 = vadd.f32 %v714_v38, %v684_v43  ;;  %v688_v46 = vmul.f32 %v1304_v60, %v1304_v60 }
  0xe4   : > { %1055 = vst [vmem:[%s1280_s26 + $0x38] sm:$0xff] %v992_v44  }
  0xe5   : > { %v648_v55 = vadd.f32 %v647_v49, %v1282_v48  ;;  %v716_v57 = vadd.f32 %v715_v50, %v685_v47 }
  0xe7   : > { %v649_v61 = vadd.f32 %v648_v55, %v1292_v54  ;;  %v717_v62 = vadd.f32 %v716_v57, %v686_v53  ;;  %v553_v1 = vpop.f32.mrf.mxu2  ;;  %v573_v10 = vpop.f32.mrf.mxu3  ;;  %v690_v54 = vmul.f32 %v1326_v8, %v1326_v8  ;;  %v704_v55 = vmul.f32 %v1318_v4, %v1318_v4 }
  0xe8   : > { %v1012_v3 = vpack.c.bf16 %v553_v1, %v551_v37  ;;  %v1032_v48 = vpack.c.bf16 %v573_v10, %v1344_v45  ;;  %v700_v43 = vmul.f32 %v553_v1, %v553_v1 }
  0xe9   : > { %v718_v5 = vadd.f32 %v717_v62, %v687_v59  ;;  %v650_v7 = vadd.f32 %v649_v61, %v1304_v60  ;;  %v705_v59 = vmul.f32 %v1330_v12, %v1330_v12 }
  0xea   : > { %1059 = vst [vmem:[%s1280_s26 + $0x58] sm:$0xff] %v1012_v3  }
  0xeb   : > { %v651_v13 = vadd.f32 %v650_v7, %v1314_v2  ;;  %v719_v14 = vadd.f32 %v718_v5, %v688_v46  ;;  %1063 = vst [vmem:[%s1280_s26 + $0x78] sm:$0xff] %v1032_v48   ;;  %v707_v5 = vmul.f32 %v1344_v45, %v1344_v45  ;;  %v708_v48 = vmul.f32 %v573_v10, %v573_v10 }
  0xed   : > { %v652_v15 = vadd.f32 %v651_v13, %v1326_v8  ;;  %v720_v16 = vadd.f32 %v719_v14, %v689_v11  ;;  %v695_v8 = vmul.f32 %v1302_v58, %v1302_v58 }
  0xef   : > { %v653_v18 = vadd.f32 %v652_v15, %v531_v25  ;;  %v721_v60 = vadd.f32 %v720_v16, %v690_v54 }
  0xf1   : > { %v722_v20 = vadd.f32 %v721_v60, %v691_v19  ;;  %v654_v22 = vadd.f32 %v653_v18, %v533_v40  ;;  %v699_v40 = vmul.f32 %v551_v37, %v551_v37 }
  0xf3   : > { %v655_v26 = vadd.f32 %v654_v22, %v1273_v17  ;;  %v723_v2 = vadd.f32 %v722_v20, %v692_v23  ;;  %v697_v17 = vmul.f32 %v1324_v6, %v1324_v6 }
  0xf5   : > { %v656_v29 = vadd.f32 %v655_v26, %v1290_v52  ;;  %v724_v30 = vadd.f32 %v723_v2, %v693_v24 }
  0xf7   : > { %v657_v25 = vadd.f32 %v656_v29, %v1302_v58  ;;  %v725_v31 = vadd.f32 %v724_v30, %v694_v27 }
  0xf9   : > { %v726_v33 = vadd.f32 %v725_v31, %v695_v8  ;;  %v658_v34 = vadd.f32 %v657_v25, %v1312_v0  ;;  %v701_v0 = vmul.f32 %v1286_v51, %v1286_v51 }
  0xfb   : > { %v659_v35 = vadd.f32 %v658_v34, %v1324_v6  ;;  %v727_v36 = vadd.f32 %v726_v33, %v696_v32  ;;  %v702_v6 = vmul.f32 %v1296_v56, %v1296_v56 }
  0xfd   : > { %v660_v52 = vadd.f32 %v659_v35, %v1334_v21  ;;  %v728_v38 = vadd.f32 %v727_v36, %v697_v17  ;;  %v703_v21 = vmul.f32 %v1308_v63, %v1308_v63 }
  0xff   : > { %v729_v58 = vadd.f32 %v728_v38, %v698_v9  ;;  %v661_v39 = vadd.f32 %v660_v52, %v551_v37 }
 0x101   : > { %v730_v41 = vadd.f32 %v729_v58, %v699_v40  ;;  %v662_v42 = vadd.f32 %v661_v39, %v553_v1 }
 0x103   : > { %v663_v44 = vadd.f32 %v662_v42, %v1286_v51  ;;  %v731_v47 = vadd.f32 %v730_v41, %v700_v43 }
 0x105   : > { %v664_v49 = vadd.f32 %v663_v44, %v1296_v56  ;;  %v732_v50 = vadd.f32 %v731_v47, %v701_v0 }
 0x107   : > { %v665_v37 = vadd.f32 %v664_v49, %v1308_v63  ;;  %v733_v53 = vadd.f32 %v732_v50, %v702_v6  ;;  %v706_v63 = vmul.f32 %v1338_v28, %v1338_v28 }
 0x109   : > { %v734_v57 = vadd.f32 %v733_v53, %v703_v21  ;;  %v666_v51 = vadd.f32 %v665_v37, %v1318_v4 }
 0x10b   : > { %v667_v61 = vadd.f32 %v666_v51, %v1330_v12  ;;  %v735_v56 = vadd.f32 %v734_v57, %v704_v55 }
 0x10d   : > { %v668_v62 = vadd.f32 %v667_v61, %v1338_v28  ;;  %v736_v1 = vadd.f32 %v735_v56, %v705_v59 }
 0x10f   : > { %v737_v3 = vadd.f32 %v736_v1, %v706_v63  ;;  %v669_v46 = vadd.f32 %v668_v62, %v1344_v45 }
 0x111   : > { %v738_v4 = vadd.f32 %v737_v3, %v707_v5  ;;  %v670_v7 = vadd.f32 %v669_v46, %v573_v10 }
 0x113   : > { %v671_v11 = vrot.slane %v670_v7, 4  ;;  %v739_v13 = vadd.f32 %v738_v4, %v708_v48 }
 0x115   : > { %v672_v12 = vadd.f32 %v671_v11, %v670_v7  ;;  %v740_v14 = vrot.slane %v739_v13, 4 }
 0x117   : > { %v673_v54 = vrot.slane %v672_v12, 2  ;;  %v741_v15 = vadd.f32 %v740_v14, %v739_v13 }
 0x119   : > { %v674_v16 = vadd.f32 %v673_v54, %v672_v12  ;;  %v742_v28 = vrot.slane %v741_v15, 2 }
 0x11b   : > { %v675_v18 = vrot.slane %v674_v16, 1  ;;  %v743_v19 = vadd.f32 %v742_v28, %v741_v15 }
 0x11d   : > { %v744_v60 = vrot.slane %v743_v19, 1  ;;  %v676_v20 = vadd.f32 %v675_v18, %v674_v16 }
 0x11f   : > { %v745_v45 = vadd.f32 %v744_v60, %v743_v19 }
 0x121   : > { %v747_v10 = vsel %vm746_vm0, %v676_v20, %v745_v45 }
 0x122   : > { %v749_v22 = vsel %vm748_vm1, %v747_v10, 0.0 }
 0x123   : > { %750 = vst [vmem:[%s238_s28] sm:$0xff] %v749_v22 }
 0x124 PF: > { %s16_s18 = sadd.s32 1, %s1104_s18  }
 0x125   : > { %p13_p5 = scmp.ge.s32.totalorder %s16_s18, 4  }
 0x127   :  { %15 = sbr.rel (!%p13_p5) target bundleno = 1 (0x1), region = 78 }

// kernel: res_block_forward.7
= control target key start
LH: loop header
LB: loop body
LE: loop exit
PB: predicated region body
PF: predicated region fallthrough
CT: control target
= control target key end

     0   :  { %s1690_s0 = inlined_call_operand.vmem [shape: bf16[512,128], index: 0, kind: input, shape index: {}]   ;;  %s1691_s1 = inlined_call_operand.vmem [shape: f32[1,128], index: 1, kind: input, shape index: {}]   ;;  %s1692_s2 = inlined_call_operand.vmem [shape: f32[1,128], index: 2, kind: input, shape index: {}]   ;;  %s1693_s3 = inlined_call_operand.vmem [shape: bf16[512,128], index: 3, kind: input, shape index: {}]   ;;  %s1694_s4 = inlined_call_operand.vmem [shape: bf16[512,128], index: 4, kind: output, shape index: {}]  }
   0x1   :  { %v734_v0 = vld [vmem:[%s1690_s0] sm:$0xff]   ;;  %v1149_v8 = vld [vmem:[%s1690_s0 + $0x8] sm:$0xff]   ;;  %v1150_v10 = vld [vmem:[%s1690_s0 + $0x10] sm:$0xff]  }
   0x2   :  { %v1277_v1 = vld [vmem:[%s1691_s1] ss:$0 sm:$0xff]  ;;  %v735_v2 = vunpack.c.l.bf16 %v734_v0  ;;  %v736_v3 = vunpack.c.h.bf16 %v734_v0  ;;  %v1180_v9 = vld [vmem:[%s1693_s3 + $0x8] sm:$0xff]   ;;  %v739_v13 = vunpack.c.l.bf16 %v1149_v8  ;;  %v740_v14 = vunpack.c.h.bf16 %v1149_v8  ;;  %v1181_v15 = vld [vmem:[%s1693_s3 + $0x10] sm:$0xff]  }
   0x3   :  { %v1282_v4 = vld [vmem:[%s1692_s2] ss:$0 sm:$0xff]  ;;  %v867_v16 = vunpack.c.l.bf16 %v1180_v9  ;;  %v868_v17 = vunpack.c.h.bf16 %v1180_v9  ;;  %v743_v18 = vunpack.c.l.bf16 %v1150_v10  ;;  %v744_v19 = vunpack.c.h.bf16 %v1150_v10  ;;  %v1151_v24 = vld [vmem:[%s1690_s0 + $0x18] sm:$0xff]   ;;  %v1153_v0 = vld [vmem:[%s1690_s0 + $0x28] sm:$0xff]  }
   0x4   :  { %v862_v5 = vld [vmem:[%s1693_s3] sm:$0xff]   ;;  %v149_v11 = vmul.f32 %v1277_v1, %v735_v2  ;;  %v150_v12 = vmul.f32 %v1277_v1, %v736_v3  ;;  %v151_v22 = vmul.f32 %v1277_v1, %v739_v13  ;;  %v152_v23 = vmul.f32 %v1277_v1, %v740_v14  ;;  %v1182_v45 = vld [vmem:[%s1693_s3 + $0x18] sm:$0xff]  }
   0x5   :  { %v863_v6 = vunpack.c.l.bf16 %v862_v5  ;;  %v864_v7 = vunpack.c.h.bf16 %v862_v5  ;;  %v153_v25 = vmul.f32 %v1277_v1, %v743_v18  ;;  %v154_v26 = vmul.f32 %v1277_v1, %v744_v19  ;;  %v1152_v54 = vld [vmem:[%s1690_s0 + $0x20] sm:$0xff]  }
   0x6   :  { %v217_v20 = vadd.f32 %v1282_v4, %v149_v11  ;;  %v218_v21 = vadd.f32 %v1282_v4, %v150_v12  ;;  %v871_v27 = vunpack.c.l.bf16 %v1181_v15  ;;  %v872_v28 = vunpack.c.h.bf16 %v1181_v15  ;;  %v1183_v59 = vld [vmem:[%s1693_s3 + $0x20] sm:$0xff]  }
   0x7   :  { %v219_v31 = vadd.f32 %v1282_v4, %v151_v22  ;;  %v220_v32 = vadd.f32 %v1282_v4, %v152_v23  ;;  %v221_v33 = vadd.f32 %v1282_v4, %v153_v25  ;;  %v222_v34 = vadd.f32 %v1282_v4, %v154_v26 }
   0x8   :  { %v281_v29 = vmax.f32 %v217_v20, 0.0  ;;  %v282_v30 = vmax.f32 %v218_v21, 0.0  ;;  %v747_v35 = vunpack.c.l.bf16 %v1151_v24  ;;  %v748_v36 = vunpack.c.h.bf16 %v1151_v24 }
   0x9   :  { %v283_v39 = vmax.f32 %v219_v31, 0.0  ;;  %v284_v40 = vmax.f32 %v220_v32, 0.0  ;;  %v285_v41 = vmax.f32 %v221_v33, 0.0  ;;  %v286_v42 = vmax.f32 %v222_v34, 0.0 }
   0xa   :  { %v473_v37 = vadd.f32 %v863_v6, %v281_v29  ;;  %v474_v38 = vadd.f32 %v864_v7, %v282_v30  ;;  %v155_v43 = vmul.f32 %v1277_v1, %v747_v35  ;;  %v156_v44 = vmul.f32 %v1277_v1, %v748_v36  ;;  %v1184_v7 = vld [vmem:[%s1693_s3 + $0x28] sm:$0xff]   ;;  %v1155_v30 = vld [vmem:[%s1690_s0 + $0x38] sm:$0xff]  }
   0xb   :  { %v475_v48 = vadd.f32 %v867_v16, %v283_v39  ;;  %v476_v49 = vadd.f32 %v868_v17, %v284_v40  ;;  %v477_v50 = vadd.f32 %v871_v27, %v285_v41  ;;  %v478_v51 = vadd.f32 %v872_v28, %v286_v42  ;;  %v1154_v16 = vld [vmem:[%s1690_s0 + $0x30] sm:$0xff]  }
   0xc   :  { %v537_v46 = vmax.f32 %v473_v37, 0.0  ;;  %v538_v47 = vmax.f32 %v474_v38, 0.0  ;;  %v223_v52 = vadd.f32 %v1282_v4, %v155_v43  ;;  %v224_v53 = vadd.f32 %v1282_v4, %v156_v44  ;;  %v1185_v17 = vld [vmem:[%s1693_s3 + $0x30] sm:$0xff]  }
   0xd   :  { %v539_v56 = vmax.f32 %v475_v48, 0.0  ;;  %v540_v57 = vmax.f32 %v476_v49, 0.0  ;;  %v875_v58 = vunpack.c.l.bf16 %v1182_v45  ;;  %v541_v60 = vmax.f32 %v477_v50, 0.0 }
   0xe   :  { %v992_v55 = vpack.c.bf16 %v538_v47, %v537_v46  ;;  %v542_v61 = vmax.f32 %v478_v51, 0.0  ;;  %v287_v62 = vmax.f32 %v223_v52, 0.0  ;;  %v288_v63 = vmax.f32 %v224_v53, 0.0  ;;  %v1186_v47 = vld [vmem:[%s1693_s3 + $0x38] sm:$0xff]  }
   0xf   :  { %v997_v2 = vpack.c.bf16 %v540_v57, %v539_v56  ;;  %v876_v3 = vunpack.c.h.bf16 %v1182_v45  ;;  %v751_v5 = vunpack.c.l.bf16 %v1152_v54  ;;  %v752_v6 = vunpack.c.h.bf16 %v1152_v54  ;;  %v1156_v56 = vld [vmem:[%s1690_s0 + $0x40] sm:$0xff]  }
  0x10   :  { %993 = vst [vmem:[%s1694_s4] sm:$0xff] %v992_v55   ;;  %v1002_v8 = vpack.c.bf16 %v542_v61, %v541_v60  ;;  %v479_v9 = vadd.f32 %v875_v58, %v287_v62  ;;  %v879_v10 = vunpack.c.l.bf16 %v1183_v59  ;;  %v880_v11 = vunpack.c.h.bf16 %v1183_v59 }
  0x11   :  { %1211 = vst [vmem:[%s1694_s4 + $0x8] sm:$0xff] %v997_v2   ;;  %v480_v12 = vadd.f32 %v876_v3, %v288_v63  ;;  %v157_v13 = vmul.f32 %v1277_v1, %v751_v5  ;;  %v158_v14 = vmul.f32 %v1277_v1, %v752_v6  ;;  %v755_v15 = vunpack.c.l.bf16 %v1153_v0  ;;  %v1187_v2 = vld [vmem:[%s1693_s3 + $0x40] sm:$0xff]  }
  0x12   :  { %1212 = vst [vmem:[%s1694_s4 + $0x10] sm:$0xff] %v1002_v8   ;;  %v543_v18 = vmax.f32 %v479_v9, 0.0  ;;  %v756_v19 = vunpack.c.h.bf16 %v1153_v0  ;;  %v883_v20 = vunpack.c.l.bf16 %v1184_v7  ;;  %v884_v21 = vunpack.c.h.bf16 %v1184_v7  ;;  %v1157_v8 = vld [vmem:[%s1690_s0 + $0x48] sm:$0xff]  }
  0x13   :  { %v544_v22 = vmax.f32 %v480_v12, 0.0  ;;  %v225_v23 = vadd.f32 %v1282_v4, %v157_v13  ;;  %v226_v24 = vadd.f32 %v1282_v4, %v158_v14  ;;  %v159_v25 = vmul.f32 %v1277_v1, %v755_v15 }
  0x14   :  { %v160_v26 = vmul.f32 %v1277_v1, %v756_v19  ;;  %v759_v27 = vunpack.c.l.bf16 %v1154_v16  ;;  %v760_v28 = vunpack.c.h.bf16 %v1154_v16  ;;  %v887_v29 = vunpack.c.l.bf16 %v1185_v17 }
  0x15   :  { %v1007_v31 = vpack.c.bf16 %v544_v22, %v543_v18  ;;  %v289_v32 = vmax.f32 %v225_v23, 0.0  ;;  %v290_v33 = vmax.f32 %v226_v24, 0.0  ;;  %v227_v34 = vadd.f32 %v1282_v4, %v159_v25  ;;  %v1158_v22 = vld [vmem:[%s1690_s0 + $0x50] sm:$0xff]  }
  0x16   :  { %v228_v35 = vadd.f32 %v1282_v4, %v160_v26  ;;  %v161_v36 = vmul.f32 %v1277_v1, %v759_v27  ;;  %v162_v37 = vmul.f32 %v1277_v1, %v760_v28  ;;  %v888_v38 = vunpack.c.h.bf16 %v1185_v17  ;;  %v1188_v17 = vld [vmem:[%s1693_s3 + $0x48] sm:$0xff]   ;;  %v1189_v27 = vld [vmem:[%s1693_s3 + $0x50] sm:$0xff]  }
  0x17   :  { %1213 = vst [vmem:[%s1694_s4 + $0x18] sm:$0xff] %v1007_v31   ;;  %v481_v39 = vadd.f32 %v879_v10, %v289_v32  ;;  %v482_v40 = vadd.f32 %v880_v11, %v290_v33  ;;  %v291_v41 = vmax.f32 %v227_v34, 0.0  ;;  %v763_v42 = vunpack.c.l.bf16 %v1155_v30 }
  0x18   :  { %v292_v43 = vmax.f32 %v228_v35, 0.0  ;;  %v229_v44 = vadd.f32 %v1282_v4, %v161_v36  ;;  %v230_v45 = vadd.f32 %v1282_v4, %v162_v37  ;;  %v764_v46 = vunpack.c.h.bf16 %v1155_v30  ;;  %v1159_v36 = vld [vmem:[%s1690_s0 + $0x58] sm:$0xff]  }
  0x19   :  { %v545_v48 = vmax.f32 %v481_v39, 0.0  ;;  %v546_v49 = vmax.f32 %v482_v40, 0.0  ;;  %v483_v50 = vadd.f32 %v883_v20, %v291_v41  ;;  %v163_v51 = vmul.f32 %v1277_v1, %v763_v42 }
  0x1a   :  { %v484_v52 = vadd.f32 %v884_v21, %v292_v43  ;;  %v293_v53 = vmax.f32 %v229_v44, 0.0  ;;  %v294_v54 = vmax.f32 %v230_v45, 0.0  ;;  %v164_v55 = vmul.f32 %v1277_v1, %v764_v46 }
  0x1b   :  { %v1012_v57 = vpack.c.bf16 %v546_v49, %v545_v48  ;;  %v547_v58 = vmax.f32 %v483_v50, 0.0  ;;  %v231_v59 = vadd.f32 %v1282_v4, %v163_v51  ;;  %v891_v60 = vunpack.c.l.bf16 %v1186_v47  ;;  %v1190_v49 = vld [vmem:[%s1693_s3 + $0x58] sm:$0xff]  }
  0x1c   :  { %v548_v61 = vmax.f32 %v484_v52, 0.0  ;;  %v485_v62 = vadd.f32 %v887_v29, %v293_v53  ;;  %v486_v63 = vadd.f32 %v888_v38, %v294_v54  ;;  %v232_v0 = vadd.f32 %v1282_v4, %v164_v55 }
  0x1d   :  { %1214 = vst [vmem:[%s1694_s4 + $0x20] sm:$0xff] %v1012_v57   ;;  %v295_v3 = vmax.f32 %v231_v59, 0.0  ;;  %v892_v5 = vunpack.c.h.bf16 %v1186_v47  ;;  %v767_v6 = vunpack.c.l.bf16 %v1156_v56  ;;  %v768_v7 = vunpack.c.h.bf16 %v1156_v56 }
  0x1e   :  { %v1017_v9 = vpack.c.bf16 %v548_v61, %v547_v58  ;;  %v549_v10 = vmax.f32 %v485_v62, 0.0  ;;  %v550_v11 = vmax.f32 %v486_v63, 0.0  ;;  %v296_v12 = vmax.f32 %v232_v0, 0.0  ;;  %v1160_v58 = vld [vmem:[%s1690_s0 + $0x60] sm:$0xff]  }
  0x1f   :  { %v487_v13 = vadd.f32 %v891_v60, %v295_v3  ;;  %v165_v14 = vmul.f32 %v1277_v1, %v767_v6  ;;  %v166_v15 = vmul.f32 %v1277_v1, %v768_v7  ;;  %v895_v16 = vunpack.c.l.bf16 %v1187_v2 }
  0x20   :  { %1215 = vst [vmem:[%s1694_s4 + $0x28] sm:$0xff] %v1017_v9   ;;  %v1022_v18 = vpack.c.bf16 %v550_v11, %v549_v10  ;;  %v488_v19 = vadd.f32 %v892_v5, %v296_v12  ;;  %v896_v20 = vunpack.c.h.bf16 %v1187_v2  ;;  %v771_v21 = vunpack.c.l.bf16 %v1157_v8  ;;  %v1191_v5 = vld [vmem:[%s1693_s3 + $0x60] sm:$0xff]  }
  0x21   :  { %v551_v23 = vmax.f32 %v487_v13, 0.0  ;;  %v233_v24 = vadd.f32 %v1282_v4, %v165_v14  ;;  %v234_v25 = vadd.f32 %v1282_v4, %v166_v15  ;;  %v772_v26 = vunpack.c.h.bf16 %v1157_v8  ;;  %v1161_v14 = vld [vmem:[%s1690_s0 + $0x68] sm:$0xff]  }
  0x22   :  { %1216 = vst [vmem:[%s1694_s4 + $0x30] sm:$0xff] %v1022_v18   ;;  %v552_v28 = vmax.f32 %v488_v19, 0.0  ;;  %v167_v29 = vmul.f32 %v1277_v1, %v771_v21  ;;  %v899_v30 = vunpack.c.l.bf16 %v1188_v17  ;;  %v900_v31 = vunpack.c.h.bf16 %v1188_v17 }
  0x23   :  { %v297_v32 = vmax.f32 %v233_v24, 0.0  ;;  %v298_v33 = vmax.f32 %v234_v25, 0.0  ;;  %v168_v34 = vmul.f32 %v1277_v1, %v772_v26  ;;  %v775_v35 = vunpack.c.l.bf16 %v1158_v22 }
  0x24   :  { %v1027_v37 = vpack.c.bf16 %v552_v28, %v551_v23  ;;  %v235_v38 = vadd.f32 %v1282_v4, %v167_v29  ;;  %v776_v39 = vunpack.c.h.bf16 %v1158_v22  ;;  %v903_v40 = vunpack.c.l.bf16 %v1189_v27  ;;  %v1192_v23 = vld [vmem:[%s1693_s3 + $0x68] sm:$0xff]   ;;  %v1162_v28 = vld [vmem:[%s1690_s0 + $0x70] sm:$0xff]  }
  0x25   :  { %v489_v41 = vadd.f32 %v895_v16, %v297_v32  ;;  %v490_v42 = vadd.f32 %v896_v20, %v298_v33  ;;  %v236_v43 = vadd.f32 %v1282_v4, %v168_v34  ;;  %v169_v44 = vmul.f32 %v1277_v1, %v775_v35 }
  0x26   :  { %1217 = vst [vmem:[%s1694_s4 + $0x38] sm:$0xff] %v1027_v37   ;;  %v299_v45 = vmax.f32 %v235_v38, 0.0  ;;  %v170_v46 = vmul.f32 %v1277_v1, %v776_v39  ;;  %v904_v47 = vunpack.c.h.bf16 %v1189_v27  ;;  %v779_v48 = vunpack.c.l.bf16 %v1159_v36  ;;  %v1193_v37 = vld [vmem:[%s1693_s3 + $0x70] sm:$0xff]  }
  0x27   :  { %v553_v50 = vmax.f32 %v489_v41, 0.0  ;;  %v554_v51 = vmax.f32 %v490_v42, 0.0  ;;  %v300_v52 = vmax.f32 %v236_v43, 0.0  ;;  %v237_v53 = vadd.f32 %v1282_v4, %v169_v44 }
  0x28   :  { %v491_v54 = vadd.f32 %v899_v30, %v299_v45  ;;  %v238_v55 = vadd.f32 %v1282_v4, %v170_v46  ;;  %v780_v56 = vunpack.c.h.bf16 %v1159_v36  ;;  %v171_v57 = vmul.f32 %v1277_v1, %v779_v48  ;;  %v1163_v46 = vld [vmem:[%s1690_s0 + $0x78] sm:$0xff]  }
  0x29   :  { %v1032_v59 = vpack.c.bf16 %v554_v51, %v553_v50  ;;  %v492_v60 = vadd.f32 %v900_v31, %v300_v52  ;;  %v301_v61 = vmax.f32 %v237_v53, 0.0  ;;  %v907_v62 = vunpack.c.l.bf16 %v1190_v49 }
  0x2a   :  { %v555_v63 = vmax.f32 %v491_v54, 0.0  ;;  %v302_v0 = vmax.f32 %v238_v55, 0.0  ;;  %v172_v2 = vmul.f32 %v1277_v1, %v780_v56  ;;  %v239_v3 = vadd.f32 %v1282_v4, %v171_v57  ;;  %v1194_v55 = vld [vmem:[%s1693_s3 + $0x78] sm:$0xff]  }
  0x2b   :  { %1218 = vst [vmem:[%s1694_s4 + $0x40] sm:$0xff] %v1032_v59   ;;  %v556_v6 = vmax.f32 %v492_v60, 0.0  ;;  %v493_v7 = vadd.f32 %v903_v40, %v301_v61  ;;  %v908_v8 = vunpack.c.h.bf16 %v1190_v49  ;;  %v783_v9 = vunpack.c.l.bf16 %v1160_v58 }
  0x2c   :  { %v494_v10 = vadd.f32 %v904_v47, %v302_v0  ;;  %v240_v11 = vadd.f32 %v1282_v4, %v172_v2  ;;  %v303_v12 = vmax.f32 %v239_v3, 0.0  ;;  %v784_v13 = vunpack.c.h.bf16 %v1160_v58  ;;  %v1164_v0 = vld [vmem:[%s1690_s0 + $0x80] sm:$0xff]  }
  0x2d   :  { %v1037_v15 = vpack.c.bf16 %v556_v6, %v555_v63  ;;  %v557_v16 = vmax.f32 %v493_v7, 0.0  ;;  %v173_v17 = vmul.f32 %v1277_v1, %v783_v9  ;;  %v911_v18 = vunpack.c.l.bf16 %v1191_v5 }
  0x2e   :  { %v558_v19 = vmax.f32 %v494_v10, 0.0  ;;  %v304_v20 = vmax.f32 %v240_v11, 0.0  ;;  %v495_v21 = vadd.f32 %v907_v62, %v303_v12  ;;  %v174_v22 = vmul.f32 %v1277_v1, %v784_v13  ;;  %v1195_v11 = vld [vmem:[%s1693_s3 + $0x80] sm:$0xff]  }
  0x2f   :  { %1219 = vst [vmem:[%s1694_s4 + $0x48] sm:$0xff] %v1037_v15   ;;  %v241_v24 = vadd.f32 %v1282_v4, %v173_v17  ;;  %v912_v25 = vunpack.c.h.bf16 %v1191_v5  ;;  %v787_v26 = vunpack.c.l.bf16 %v1161_v14  ;;  %v788_v27 = vunpack.c.h.bf16 %v1161_v14 }
  0x30   :  { %v1042_v29 = vpack.c.bf16 %v558_v19, %v557_v16  ;;  %v496_v30 = vadd.f32 %v908_v8, %v304_v20  ;;  %v559_v31 = vmax.f32 %v495_v21, 0.0  ;;  %v242_v32 = vadd.f32 %v1282_v4, %v174_v22  ;;  %v1165_v20 = vld [vmem:[%s1690_s0 + $0x88] sm:$0xff]  }
  0x31   :  { %v305_v33 = vmax.f32 %v241_v24, 0.0  ;;  %v175_v34 = vmul.f32 %v1277_v1, %v787_v26  ;;  %v176_v35 = vmul.f32 %v1277_v1, %v788_v27  ;;  %v915_v36 = vunpack.c.l.bf16 %v1192_v23 }
  0x32   :  { %1220 = vst [vmem:[%s1694_s4 + $0x50] sm:$0xff] %v1042_v29   ;;  %v560_v38 = vmax.f32 %v496_v30, 0.0  ;;  %v306_v39 = vmax.f32 %v242_v32, 0.0  ;;  %v916_v40 = vunpack.c.h.bf16 %v1192_v23  ;;  %v791_v41 = vunpack.c.l.bf16 %v1162_v28 }
  0x33   :  { %v497_v42 = vadd.f32 %v911_v18, %v305_v33  ;;  %v243_v43 = vadd.f32 %v1282_v4, %v175_v34  ;;  %v244_v44 = vadd.f32 %v1282_v4, %v176_v35  ;;  %v792_v45 = vunpack.c.h.bf16 %v1162_v28  ;;  %v1166_v34 = vld [vmem:[%s1690_s0 + $0x90] sm:$0xff]  }
  0x34   :  { %v1047_v47 = vpack.c.bf16 %v560_v38, %v559_v31  ;;  %v498_v48 = vadd.f32 %v912_v25, %v306_v39  ;;  %v177_v49 = vmul.f32 %v1277_v1, %v791_v41  ;;  %v919_v50 = vunpack.c.l.bf16 %v1193_v37  ;;  %v1196_v25 = vld [vmem:[%s1693_s3 + $0x88] sm:$0xff]  }
  0x35   :  { %v561_v51 = vmax.f32 %v497_v42, 0.0  ;;  %v307_v52 = vmax.f32 %v243_v43, 0.0  ;;  %v308_v53 = vmax.f32 %v244_v44, 0.0  ;;  %v178_v54 = vmul.f32 %v1277_v1, %v792_v45  ;;  %v1197_v43 = vld [vmem:[%s1693_s3 + $0x90] sm:$0xff]  }
  0x36   :  { %1221 = vst [vmem:[%s1694_s4 + $0x58] sm:$0xff] %v1047_v47   ;;  %v562_v56 = vmax.f32 %v498_v48, 0.0  ;;  %v245_v57 = vadd.f32 %v1282_v4, %v177_v49  ;;  %v920_v58 = vunpack.c.h.bf16 %v1193_v37  ;;  %v795_v59 = vunpack.c.l.bf16 %v1163_v46 }
  0x37   :  { %v499_v60 = vadd.f32 %v915_v36, %v307_v52  ;;  %v500_v61 = vadd.f32 %v916_v40, %v308_v53  ;;  %v246_v62 = vadd.f32 %v1282_v4, %v178_v54  ;;  %v796_v63 = vunpack.c.h.bf16 %v1163_v46  ;;  %v1167_v52 = vld [vmem:[%s1690_s0 + $0x98] sm:$0xff]  }
  0x38   :  { %v1052_v2 = vpack.c.bf16 %v562_v56, %v561_v51  ;;  %v309_v3 = vmax.f32 %v245_v57, 0.0  ;;  %v179_v5 = vmul.f32 %v1277_v1, %v795_v59  ;;  %v923_v6 = vunpack.c.l.bf16 %v1194_v55 }
  0x39   :  { %v563_v7 = vmax.f32 %v499_v60, 0.0  ;;  %v564_v8 = vmax.f32 %v500_v61, 0.0  ;;  %v310_v9 = vmax.f32 %v246_v62, 0.0  ;;  %v180_v10 = vmul.f32 %v1277_v1, %v796_v63  ;;  %v1198_v61 = vld [vmem:[%s1693_s3 + $0x98] sm:$0xff]  }
  0x3a   :  { %1222 = vst [vmem:[%s1694_s4 + $0x60] sm:$0xff] %v1052_v2   ;;  %v501_v12 = vadd.f32 %v919_v50, %v309_v3  ;;  %v247_v13 = vadd.f32 %v1282_v4, %v179_v5  ;;  %v924_v14 = vunpack.c.h.bf16 %v1194_v55  ;;  %v799_v15 = vunpack.c.l.bf16 %v1164_v0 }
  0x3b   :  { %v1057_v16 = vpack.c.bf16 %v564_v8, %v563_v7  ;;  %v502_v17 = vadd.f32 %v920_v58, %v310_v9  ;;  %v248_v18 = vadd.f32 %v1282_v4, %v180_v10  ;;  %v800_v19 = vunpack.c.h.bf16 %v1164_v0  ;;  %v1168_v8 = vld [vmem:[%s1690_s0 + $0xa0] sm:$0xff]  }
  0x3c   :  { %v565_v21 = vmax.f32 %v501_v12, 0.0  ;;  %v311_v22 = vmax.f32 %v247_v13, 0.0  ;;  %v181_v23 = vmul.f32 %v1277_v1, %v799_v15  ;;  %v927_v24 = vunpack.c.l.bf16 %v1195_v11 }
  0x3d   :  { %1223 = vst [vmem:[%s1694_s4 + $0x68] sm:$0xff] %v1057_v16   ;;  %v566_v26 = vmax.f32 %v502_v17, 0.0  ;;  %v312_v27 = vmax.f32 %v248_v18, 0.0  ;;  %v182_v28 = vmul.f32 %v1277_v1, %v800_v19  ;;  %v928_v29 = vunpack.c.h.bf16 %v1195_v11  ;;  %v1199_v17 = vld [vmem:[%s1693_s3 + $0xa0] sm:$0xff]  }
  0x3e   :  { %v503_v30 = vadd.f32 %v923_v6, %v311_v22  ;;  %v249_v31 = vadd.f32 %v1282_v4, %v181_v23  ;;  %v803_v32 = vunpack.c.l.bf16 %v1165_v20  ;;  %v804_v33 = vunpack.c.h.bf16 %v1165_v20 }
  0x3f   :  { %v1062_v35 = vpack.c.bf16 %v566_v26, %v565_v21  ;;  %v504_v36 = vadd.f32 %v924_v14, %v312_v27  ;;  %v250_v37 = vadd.f32 %v1282_v4, %v182_v28  ;;  %v931_v38 = vunpack.c.l.bf16 %v1196_v25  ;;  %v1169_v26 = vld [vmem:[%s1690_s0 + $0xa8] sm:$0xff]  }
  0x40   :  { %v567_v39 = vmax.f32 %v503_v30, 0.0  ;;  %v313_v40 = vmax.f32 %v249_v31, 0.0  ;;  %v183_v41 = vmul.f32 %v1277_v1, %v803_v32  ;;  %v184_v42 = vmul.f32 %v1277_v1, %v804_v33  ;;  %v1200_v31 = vld [vmem:[%s1693_s3 + $0xa8] sm:$0xff]  }
  0x41   :  { %1224 = vst [vmem:[%s1694_s4 + $0x70] sm:$0xff] %v1062_v35   ;;  %v568_v44 = vmax.f32 %v504_v36, 0.0  ;;  %v314_v45 = vmax.f32 %v250_v37, 0.0  ;;  %v932_v46 = vunpack.c.h.bf16 %v1196_v25  ;;  %v807_v47 = vunpack.c.l.bf16 %v1166_v34 }
  0x42   :  { %v505_v48 = vadd.f32 %v927_v24, %v313_v40  ;;  %v251_v49 = vadd.f32 %v1282_v4, %v183_v41  ;;  %v252_v50 = vadd.f32 %v1282_v4, %v184_v42  ;;  %v808_v51 = vunpack.c.h.bf16 %v1166_v34  ;;  %v1170_v40 = vld [vmem:[%s1690_s0 + $0xb0] sm:$0xff]  }
  0x43   :  { %v1067_v53 = vpack.c.bf16 %v568_v44, %v567_v39  ;;  %v506_v54 = vadd.f32 %v928_v29, %v314_v45  ;;  %v185_v55 = vmul.f32 %v1277_v1, %v807_v47  ;;  %v935_v56 = vunpack.c.l.bf16 %v1197_v43 }
  0x44   :  { %v569_v57 = vmax.f32 %v505_v48, 0.0  ;;  %v315_v58 = vmax.f32 %v251_v49, 0.0  ;;  %v316_v59 = vmax.f32 %v252_v50, 0.0  ;;  %v186_v60 = vmul.f32 %v1277_v1, %v808_v51  ;;  %v1201_v49 = vld [vmem:[%s1693_s3 + $0xb0] sm:$0xff]  }
  0x45   :  { %1225 = vst [vmem:[%s1694_s4 + $0x78] sm:$0xff] %v1067_v53   ;;  %v570_v62 = vmax.f32 %v506_v54, 0.0  ;;  %v253_v63 = vadd.f32 %v1282_v4, %v185_v55  ;;  %v936_v0 = vunpack.c.h.bf16 %v1197_v43  ;;  %v811_v2 = vunpack.c.l.bf16 %v1167_v52 }
  0x46   :  { %v507_v3 = vadd.f32 %v931_v38, %v315_v58  ;;  %v508_v5 = vadd.f32 %v932_v46, %v316_v59  ;;  %v254_v6 = vadd.f32 %v1282_v4, %v186_v60  ;;  %v812_v7 = vunpack.c.h.bf16 %v1167_v52  ;;  %v1171_v58 = vld [vmem:[%s1690_s0 + $0xb8] sm:$0xff]  }
  0x47   :  { %v1072_v9 = vpack.c.bf16 %v570_v62, %v569_v57  ;;  %v317_v10 = vmax.f32 %v253_v63, 0.0  ;;  %v187_v11 = vmul.f32 %v1277_v1, %v811_v2  ;;  %v939_v12 = vunpack.c.l.bf16 %v1198_v61 }
  0x48   :  { %v571_v13 = vmax.f32 %v507_v3, 0.0  ;;  %v572_v14 = vmax.f32 %v508_v5, 0.0  ;;  %v318_v15 = vmax.f32 %v254_v6, 0.0  ;;  %v188_v16 = vmul.f32 %v1277_v1, %v812_v7  ;;  %v1202_v5 = vld [vmem:[%s1693_s3 + $0xb8] sm:$0xff]  }
  0x49   :  { %1226 = vst [vmem:[%s1694_s4 + $0x80] sm:$0xff] %v1072_v9   ;;  %v509_v18 = vadd.f32 %v935_v56, %v317_v10  ;;  %v255_v19 = vadd.f32 %v1282_v4, %v187_v11  ;;  %v940_v20 = vunpack.c.h.bf16 %v1198_v61  ;;  %v815_v21 = vunpack.c.l.bf16 %v1168_v8 }
  0x4a   :  { %v1077_v22 = vpack.c.bf16 %v572_v14, %v571_v13  ;;  %v510_v23 = vadd.f32 %v936_v0, %v318_v15  ;;  %v256_v24 = vadd.f32 %v1282_v4, %v188_v16  ;;  %v816_v25 = vunpack.c.h.bf16 %v1168_v8  ;;  %v1172_v14 = vld [vmem:[%s1690_s0 + $0xc0] sm:$0xff]  }
  0x4b   :  { %v573_v27 = vmax.f32 %v509_v18, 0.0  ;;  %v319_v28 = vmax.f32 %v255_v19, 0.0  ;;  %v189_v29 = vmul.f32 %v1277_v1, %v815_v21  ;;  %v943_v30 = vunpack.c.l.bf16 %v1199_v17 }
  0x4c   :  { %1227 = vst [vmem:[%s1694_s4 + $0x88] sm:$0xff] %v1077_v22   ;;  %v574_v32 = vmax.f32 %v510_v23, 0.0  ;;  %v320_v33 = vmax.f32 %v256_v24, 0.0  ;;  %v190_v34 = vmul.f32 %v1277_v1, %v816_v25  ;;  %v944_v35 = vunpack.c.h.bf16 %v1199_v17  ;;  %v1203_v23 = vld [vmem:[%s1693_s3 + $0xc0] sm:$0xff]  }
  0x4d   :  { %v511_v36 = vadd.f32 %v939_v12, %v319_v28  ;;  %v257_v37 = vadd.f32 %v1282_v4, %v189_v29  ;;  %v819_v38 = vunpack.c.l.bf16 %v1169_v26  ;;  %v820_v39 = vunpack.c.h.bf16 %v1169_v26 }
  0x4e   :  { %v1082_v41 = vpack.c.bf16 %v574_v32, %v573_v27  ;;  %v512_v42 = vadd.f32 %v940_v20, %v320_v33  ;;  %v258_v43 = vadd.f32 %v1282_v4, %v190_v34  ;;  %v947_v44 = vunpack.c.l.bf16 %v1200_v31  ;;  %v1173_v32 = vld [vmem:[%s1690_s0 + $0xc8] sm:$0xff]  }
  0x4f   :  { %v575_v45 = vmax.f32 %v511_v36, 0.0  ;;  %v321_v46 = vmax.f32 %v257_v37, 0.0  ;;  %v191_v47 = vmul.f32 %v1277_v1, %v819_v38  ;;  %v192_v48 = vmul.f32 %v1277_v1, %v820_v39  ;;  %v1204_v37 = vld [vmem:[%s1693_s3 + $0xc8] sm:$0xff]  }
  0x50   :  { %1228 = vst [vmem:[%s1694_s4 + $0x90] sm:$0xff] %v1082_v41   ;;  %v576_v50 = vmax.f32 %v512_v42, 0.0  ;;  %v322_v51 = vmax.f32 %v258_v43, 0.0  ;;  %v948_v52 = vunpack.c.h.bf16 %v1200_v31  ;;  %v823_v53 = vunpack.c.l.bf16 %v1170_v40 }
  0x51   :  { %v513_v54 = vadd.f32 %v943_v30, %v321_v46  ;;  %v259_v55 = vadd.f32 %v1282_v4, %v191_v47  ;;  %v260_v56 = vadd.f32 %v1282_v4, %v192_v48  ;;  %v824_v57 = vunpack.c.h.bf16 %v1170_v40  ;;  %v1174_v46 = vld [vmem:[%s1690_s0 + $0xd0] sm:$0xff]  }
  0x52   :  { %v1087_v59 = vpack.c.bf16 %v576_v50, %v575_v45  ;;  %v514_v60 = vadd.f32 %v944_v35, %v322_v51  ;;  %v193_v61 = vmul.f32 %v1277_v1, %v823_v53  ;;  %v951_v62 = vunpack.c.l.bf16 %v1201_v49 }
  0x53   :  { %v577_v63 = vmax.f32 %v513_v54, 0.0  ;;  %v323_v0 = vmax.f32 %v259_v55, 0.0  ;;  %v324_v2 = vmax.f32 %v260_v56, 0.0  ;;  %v194_v3 = vmul.f32 %v1277_v1, %v824_v57  ;;  %v1205_v55 = vld [vmem:[%s1693_s3 + $0xd0] sm:$0xff]  }
  0x54   :  { %1229 = vst [vmem:[%s1694_s4 + $0x98] sm:$0xff] %v1087_v59   ;;  %v578_v6 = vmax.f32 %v514_v60, 0.0  ;;  %v261_v7 = vadd.f32 %v1282_v4, %v193_v61  ;;  %v952_v8 = vunpack.c.h.bf16 %v1201_v49  ;;  %v827_v9 = vunpack.c.l.bf16 %v1171_v58 }
  0x55   :  { %v515_v10 = vadd.f32 %v947_v44, %v323_v0  ;;  %v516_v11 = vadd.f32 %v948_v52, %v324_v2  ;;  %v262_v12 = vadd.f32 %v1282_v4, %v194_v3  ;;  %v828_v13 = vunpack.c.h.bf16 %v1171_v58  ;;  %v1175_v0 = vld [vmem:[%s1690_s0 + $0xd8] sm:$0xff]  }
  0x56   :  { %v1092_v15 = vpack.c.bf16 %v578_v6, %v577_v63  ;;  %v325_v16 = vmax.f32 %v261_v7, 0.0  ;;  %v195_v17 = vmul.f32 %v1277_v1, %v827_v9  ;;  %v955_v18 = vunpack.c.l.bf16 %v1202_v5 }
  0x57   :  { %v579_v19 = vmax.f32 %v515_v10, 0.0  ;;  %v580_v20 = vmax.f32 %v516_v11, 0.0  ;;  %v326_v21 = vmax.f32 %v262_v12, 0.0  ;;  %v196_v22 = vmul.f32 %v1277_v1, %v828_v13  ;;  %v1206_v11 = vld [vmem:[%s1693_s3 + $0xd8] sm:$0xff]  }
  0x58   :  { %1230 = vst [vmem:[%s1694_s4 + $0xa0] sm:$0xff] %v1092_v15   ;;  %v517_v24 = vadd.f32 %v951_v62, %v325_v16  ;;  %v263_v25 = vadd.f32 %v1282_v4, %v195_v17  ;;  %v956_v26 = vunpack.c.h.bf16 %v1202_v5  ;;  %v831_v27 = vunpack.c.l.bf16 %v1172_v14 }
  0x59   :  { %v1097_v28 = vpack.c.bf16 %v580_v20, %v579_v19  ;;  %v518_v29 = vadd.f32 %v952_v8, %v326_v21  ;;  %v264_v30 = vadd.f32 %v1282_v4, %v196_v22  ;;  %v832_v31 = vunpack.c.h.bf16 %v1172_v14  ;;  %v1176_v20 = vld [vmem:[%s1690_s0 + $0xe0] sm:$0xff]  }
  0x5a   :  { %v581_v33 = vmax.f32 %v517_v24, 0.0  ;;  %v327_v34 = vmax.f32 %v263_v25, 0.0  ;;  %v197_v35 = vmul.f32 %v1277_v1, %v831_v27  ;;  %v959_v36 = vunpack.c.l.bf16 %v1203_v23 }
  0x5b   :  { %1231 = vst [vmem:[%s1694_s4 + $0xa8] sm:$0xff] %v1097_v28   ;;  %v582_v38 = vmax.f32 %v518_v29, 0.0  ;;  %v328_v39 = vmax.f32 %v264_v30, 0.0  ;;  %v198_v40 = vmul.f32 %v1277_v1, %v832_v31  ;;  %v960_v41 = vunpack.c.h.bf16 %v1203_v23  ;;  %v1207_v29 = vld [vmem:[%s1693_s3 + $0xe0] sm:$0xff]  }
  0x5c   :  { %v519_v42 = vadd.f32 %v955_v18, %v327_v34  ;;  %v265_v43 = vadd.f32 %v1282_v4, %v197_v35  ;;  %v835_v44 = vunpack.c.l.bf16 %v1173_v32  ;;  %v836_v45 = vunpack.c.h.bf16 %v1173_v32 }
  0x5d   :  { %v1102_v47 = vpack.c.bf16 %v582_v38, %v581_v33  ;;  %v520_v48 = vadd.f32 %v956_v26, %v328_v39  ;;  %v266_v49 = vadd.f32 %v1282_v4, %v198_v40  ;;  %v963_v50 = vunpack.c.l.bf16 %v1204_v37  ;;  %v1177_v38 = vld [vmem:[%s1690_s0 + $0xe8] sm:$0xff]  }
  0x5e   :  { %v583_v51 = vmax.f32 %v519_v42, 0.0  ;;  %v329_v52 = vmax.f32 %v265_v43, 0.0  ;;  %v199_v53 = vmul.f32 %v1277_v1, %v835_v44  ;;  %v200_v54 = vmul.f32 %v1277_v1, %v836_v45  ;;  %v1208_v43 = vld [vmem:[%s1693_s3 + $0xe8] sm:$0xff]  }
  0x5f   :  { %1232 = vst [vmem:[%s1694_s4 + $0xb0] sm:$0xff] %v1102_v47   ;;  %v584_v56 = vmax.f32 %v520_v48, 0.0  ;;  %v330_v57 = vmax.f32 %v266_v49, 0.0  ;;  %v964_v58 = vunpack.c.h.bf16 %v1204_v37  ;;  %v839_v59 = vunpack.c.l.bf16 %v1174_v46 }
  0x60   :  { %v521_v60 = vadd.f32 %v959_v36, %v329_v52  ;;  %v267_v61 = vadd.f32 %v1282_v4, %v199_v53  ;;  %v268_v62 = vadd.f32 %v1282_v4, %v200_v54  ;;  %v840_v63 = vunpack.c.h.bf16 %v1174_v46  ;;  %v1178_v52 = vld [vmem:[%s1690_s0 + $0xf0] sm:$0xff]  }
  0x61   :  { %v1107_v2 = vpack.c.bf16 %v584_v56, %v583_v51  ;;  %v522_v3 = vadd.f32 %v960_v41, %v330_v57  ;;  %v201_v5 = vmul.f32 %v1277_v1, %v839_v59  ;;  %v967_v6 = vunpack.c.l.bf16 %v1205_v55 }
  0x62   :  { %v585_v7 = vmax.f32 %v521_v60, 0.0  ;;  %v331_v8 = vmax.f32 %v267_v61, 0.0  ;;  %v332_v9 = vmax.f32 %v268_v62, 0.0  ;;  %v202_v10 = vmul.f32 %v1277_v1, %v840_v63  ;;  %v1209_v61 = vld [vmem:[%s1693_s3 + $0xf0] sm:$0xff]  }
  0x63   :  { %1233 = vst [vmem:[%s1694_s4 + $0xb8] sm:$0xff] %v1107_v2   ;;  %v586_v12 = vmax.f32 %v522_v3, 0.0  ;;  %v269_v13 = vadd.f32 %v1282_v4, %v201_v5  ;;  %v968_v14 = vunpack.c.h.bf16 %v1205_v55  ;;  %v843_v15 = vunpack.c.l.bf16 %v1175_v0  ;;  %v1244_v55 = vld [vmem:[%s1692_s2] ss:$0 sm:$0xff] }
  0x64   :  { %v523_v16 = vadd.f32 %v963_v50, %v331_v8  ;;  %v524_v17 = vadd.f32 %v964_v58, %v332_v9  ;;  %v270_v18 = vadd.f32 %v1282_v4, %v202_v10  ;;  %v844_v19 = vunpack.c.h.bf16 %v1175_v0  ;;  %v1179_v8 = vld [vmem:[%s1690_s0 + $0xf8] sm:$0xff]  }
  0x65   :  { %v1112_v21 = vpack.c.bf16 %v586_v12, %v585_v7  ;;  %v333_v22 = vmax.f32 %v269_v13, 0.0  ;;  %v203_v23 = vmul.f32 %v1277_v1, %v843_v15  ;;  %v971_v24 = vunpack.c.l.bf16 %v1206_v11 }
  0x66   :  { %v587_v25 = vmax.f32 %v523_v16, 0.0  ;;  %v588_v26 = vmax.f32 %v524_v17, 0.0  ;;  %v334_v27 = vmax.f32 %v270_v18, 0.0  ;;  %v204_v28 = vmul.f32 %v1277_v1, %v844_v19 }
  0x67   :  { %1234 = vst [vmem:[%s1694_s4 + $0xc0] sm:$0xff] %v1112_v21   ;;  %v525_v30 = vadd.f32 %v967_v6, %v333_v22  ;;  %v271_v31 = vadd.f32 %v1282_v4, %v203_v23  ;;  %v972_v32 = vunpack.c.h.bf16 %v1206_v11  ;;  %v847_v33 = vunpack.c.l.bf16 %v1176_v20 }
  0x68   :  { %v1117_v34 = vpack.c.bf16 %v588_v26, %v587_v25  ;;  %v526_v35 = vadd.f32 %v968_v14, %v334_v27  ;;  %v272_v36 = vadd.f32 %v1282_v4, %v204_v28  ;;  %v848_v37 = vunpack.c.h.bf16 %v1176_v20  ;;  %v1210_v25 = vld [vmem:[%s1693_s3 + $0xf8] sm:$0xff]  }
  0x69   :  { %v589_v39 = vmax.f32 %v525_v30, 0.0  ;;  %v335_v40 = vmax.f32 %v271_v31, 0.0  ;;  %v205_v41 = vmul.f32 %v1277_v1, %v847_v33  ;;  %v975_v42 = vunpack.c.l.bf16 %v1207_v29 }
  0x6a   :  { %1235 = vst [vmem:[%s1694_s4 + $0xc8] sm:$0xff] %v1117_v34   ;;  %v590_v44 = vmax.f32 %v526_v35, 0.0  ;;  %v336_v45 = vmax.f32 %v272_v36, 0.0  ;;  %v206_v46 = vmul.f32 %v1277_v1, %v848_v37  ;;  %v976_v47 = vunpack.c.h.bf16 %v1207_v29 }
  0x6b   :  { %v527_v48 = vadd.f32 %v971_v24, %v335_v40  ;;  %v273_v49 = vadd.f32 %v1282_v4, %v205_v41  ;;  %v851_v50 = vunpack.c.l.bf16 %v1177_v38  ;;  %v852_v51 = vunpack.c.h.bf16 %v1177_v38  ;;  %v1245_v4 = vld [vmem:[%s1691_s1] ss:$0 sm:$0xff] }
  0x6c   :  { %v1122_v53 = vpack.c.bf16 %v590_v44, %v589_v39  ;;  %v528_v54 = vadd.f32 %v972_v32, %v336_v45  ;;  %v274_v56 = vadd.f32 %v1244_v55, %v206_v46  ;;  %v979_v57 = vunpack.c.l.bf16 %v1208_v43 }
  0x6d   :  { %v591_v58 = vmax.f32 %v527_v48, 0.0  ;;  %v337_v1 = vmax.f32 %v273_v49, 0.0  ;;  %v207_v59 = vmul.f32 %v1245_v4, %v851_v50  ;;  %v208_v60 = vmul.f32 %v1245_v4, %v852_v51 }
  0x6e   :  { %1236 = vst [vmem:[%s1694_s4 + $0xd0] sm:$0xff] %v1122_v53   ;;  %v592_v62 = vmax.f32 %v528_v54, 0.0  ;;  %v338_v63 = vmax.f32 %v274_v56, 0.0  ;;  %v980_v0 = vunpack.c.h.bf16 %v1208_v43  ;;  %v855_v2 = vunpack.c.l.bf16 %v1178_v52 }
  0x6f   :  { %v529_v3 = vadd.f32 %v975_v42, %v337_v1  ;;  %v275_v5 = vadd.f32 %v1244_v55, %v207_v59  ;;  %v276_v6 = vadd.f32 %v1244_v55, %v208_v60  ;;  %v856_v7 = vunpack.c.h.bf16 %v1178_v52 }
  0x70   :  { %v1127_v9 = vpack.c.bf16 %v592_v62, %v591_v58  ;;  %v530_v10 = vadd.f32 %v976_v47, %v338_v63  ;;  %v209_v11 = vmul.f32 %v1245_v4, %v855_v2  ;;  %v983_v12 = vunpack.c.l.bf16 %v1209_v61 }
  0x71   :  { %v593_v13 = vmax.f32 %v529_v3, 0.0  ;;  %v339_v14 = vmax.f32 %v275_v5, 0.0  ;;  %v340_v15 = vmax.f32 %v276_v6, 0.0  ;;  %v210_v16 = vmul.f32 %v1245_v4, %v856_v7 }
  0x72   :  { %1237 = vst [vmem:[%s1694_s4 + $0xd8] sm:$0xff] %v1127_v9   ;;  %v594_v17 = vmax.f32 %v530_v10, 0.0  ;;  %v277_v18 = vadd.f32 %v1244_v55, %v209_v11  ;;  %v984_v19 = vunpack.c.h.bf16 %v1209_v61  ;;  %v859_v20 = vunpack.c.l.bf16 %v1179_v8 }
  0x73   :  { %v531_v21 = vadd.f32 %v979_v57, %v339_v14  ;;  %v532_v22 = vadd.f32 %v980_v0, %v340_v15  ;;  %v278_v23 = vadd.f32 %v1244_v55, %v210_v16  ;;  %v860_v24 = vunpack.c.h.bf16 %v1179_v8 }
  0x74   :  { %v1132_v26 = vpack.c.bf16 %v594_v17, %v593_v13  ;;  %v341_v27 = vmax.f32 %v277_v18, 0.0  ;;  %v211_v28 = vmul.f32 %v1245_v4, %v859_v20  ;;  %v987_v35 = vunpack.c.l.bf16 %v1210_v25 }
  0x75   :  { %v595_v29 = vmax.f32 %v531_v21, 0.0  ;;  %v596_v30 = vmax.f32 %v532_v22, 0.0  ;;  %v342_v31 = vmax.f32 %v278_v23, 0.0  ;;  %v212_v32 = vmul.f32 %v1245_v4, %v860_v24 }
  0x76   :  { %1238 = vst [vmem:[%s1694_s4 + $0xe0] sm:$0xff] %v1132_v26   ;;  %v533_v33 = vadd.f32 %v983_v12, %v341_v27  ;;  %v279_v34 = vadd.f32 %v1244_v55, %v211_v28  ;;  %v988_v39 = vunpack.c.h.bf16 %v1210_v25 }
  0x77   :  { %v1137_v36 = vpack.c.bf16 %v596_v30, %v595_v29  ;;  %v534_v37 = vadd.f32 %v984_v19, %v342_v31  ;;  %v280_v38 = vadd.f32 %v1244_v55, %v212_v32 }
  0x78   :  { %v597_v40 = vmax.f32 %v533_v33, 0.0  ;;  %v343_v41 = vmax.f32 %v279_v34, 0.0 }
  0x79   :  { %1239 = vst [vmem:[%s1694_s4 + $0xe8] sm:$0xff] %v1137_v36   ;;  %v598_v42 = vmax.f32 %v534_v37, 0.0  ;;  %v344_v43 = vmax.f32 %v280_v38, 0.0 }
  0x7a   :  { %v535_v44 = vadd.f32 %v987_v35, %v343_v41 }
  0x7b   :  { %v1142_v45 = vpack.c.bf16 %v598_v42, %v597_v40  ;;  %v536_v46 = vadd.f32 %v988_v39, %v344_v43 }
  0x7c   :  { %v599_v47 = vmax.f32 %v535_v44, 0.0 }
  0x7d   :  { %1240 = vst [vmem:[%s1694_s4 + $0xf0] sm:$0xff] %v1142_v45   ;;  %v600_v48 = vmax.f32 %v536_v46, 0.0 }
  0x7f   :  { %v1147_v49 = vpack.c.bf16 %v600_v48, %v599_v47 }
  0x81   :  { %1241 = vst [vmem:[%s1694_s4 + $0xf8] sm:$0xff] %v1147_v49  }

// kernel: res_block_forward.5
= control target key start
LH: loop header
LB: loop body
LE: loop exit
PB: predicated region body
PF: predicated region fallthrough
CT: control target
= control target key end

     0   :  { %s5177_s18 = smov 0   ;;  %s6220_s0 = inlined_call_operand.vmem [shape: bf16[2,16,16,128], index: 0, kind: input, shape index: {}]   ;;  %s6221_s1 = inlined_call_operand.vmem [shape: f32[1,128], index: 1, kind: input, shape index: {}]   ;;  %s6222_s2 = inlined_call_operand.vmem [shape: f32[1,128], index: 2, kind: input, shape index: {}]   ;;  %s6223_s3 = inlined_call_operand.vmem [shape: bf16[3,384,128], index: 3, kind: input, shape index: {}]   ;;  %s6224_s4 = inlined_call_operand.vmem [shape: bf16[512,128], index: 4, kind: output, shape index: {0}]   ;;  %s6225_s5 = inlined_call_operand.vmem [shape: f32[2,8,128], index: 5, kind: output, shape index: {1}]  }
   0x1 LB: > { %s5183_s19 = sadd.s32 4294967295, %s5144_s18   ;;  %p4199_p0 = scmp.ge.s32.totalorder %s5144_s18, 1  ;;  %s5144_s18 = sphi %s5177_s18, %s16_s18  }
   0x2   : > { %p190_p1 = scmp.lt.s32.totalorder %s5144_s18, 3 }
   0x4   : > { %p191_p2 = pnand %p4199_p0, %p190_p1 }
   0x6   : > { %194 = sbr.rel (%p191_p2) target bundleno = 804 (0x324), region = 36 }
   0xb   : > { %v4623_v0 = vld [vmem:[%s6223_s3 + $0xf8] sm:$0xff]  ;;  %p222_p3 = scmp.lt.s32.totalorder %s5183_s19, 1  ;;  %v4622_v1 = vld [vmem:[%s6223_s3 + $0xf0] sm:$0xff]  ;;  %v4621_v2 = vld [vmem:[%s6223_s3 + $0xe8] sm:$0xff]  ;;  %vm662_vm0 = vcmask 1040384   ;;  %vm1399_vm4 = vcmask 1046528  }
   0xc   : > { %2234 = vmatpush.bf16.msra.mxu0 %v4623_v0  ;;  %5028 = vmatpush.bf16.msra.mxu1 %v4623_v0  ;;  %v5209_v3 = vld [vmem:[%s6221_s1] ss:$0 sm:$0xff]  ;;  %vm663_vm1 = vsmask.f32 256  ;;  %v4619_v39 = vld [vmem:[%s6223_s3 + $0xd8] sm:$0xff]  ;;  %v4618_v57 = vld [vmem:[%s6223_s3 + $0xd0] sm:$0xff] }
   0xd   : > { %s5195_s24 = scalar_select %p222_p3, %s5183_s19, 1  ;;  %5029 = vmatpush.bf16.msra.mxu2 %v4623_v0  ;;  %5030 = vmatpush.bf16.msra.mxu3 %v4623_v0  ;;  %v5217_v9 = vld [vmem:[%s6222_s2] ss:$0 sm:$0xff]  ;;  %vm5265_vm2 = vmand %vm662_vm0, %vm663_vm1  ;;  %vm1142_vm3 = vsmask.f32 7424  ;;  %vm4105_vm5 = vcmask 1041408  }
   0xe   : > { %v4620_v22 = vld [vmem:[%s6223_s3 + $0xe0] sm:$0xff]  ;;  %s4202_s20 = sshll.u32 %s5183_s19, 5 }
   0xf   : > { %s4591_s25 = sshll.u32 %s5195_s24, 7  ;;  %p228_p4 = scmp.lt.s32.totalorder %s4202_s20, 63 }
  0x10   : > { %s5204_s30 = scalar_lea.vmem %s6220_s0, %s4591_s25  ;;  %2235 = vmatpush.bf16.msra.mxu0 %v4622_v1  ;;  %5031 = vmatpush.bf16.msra.mxu1 %v4622_v1 }
  0x11   : > { %v4665_v4 = vld [vmem:[%s5204_s30] sm:$0xff]   ;;  %5032 = vmatpush.bf16.msra.mxu2 %v4622_v1  ;;  %5033 = vmatpush.bf16.msra.mxu3 %v4622_v1  ;;  %v5221_v13 = vld [vmem:[%s5204_s30 + $0x8] sm:$0xff]   ;;  %s6296_s20 = smov (!%p228_p4, %s4202_s20), 63 }
  0x12   : > { %v4907_v5 = vld [vmem:[%s5204_s30 + $0x20] sm:$0xff]   ;;  %v4666_v7 = vunpack.c.l.bf16 %v4665_v4  ;;  %v4667_v8 = vunpack.c.h.bf16 %v4665_v4  ;;  %v4670_v26 = vunpack.c.l.bf16 %v5221_v13  ;;  %v4671_v30 = vunpack.c.h.bf16 %v5221_v13  ;;  %v4908_v56 = vld [vmem:[%s5204_s30 + $0x28] sm:$0xff]   ;;  %s4203_s19 = sshll.u32 %s6296_s20, 2 }
  0x13   : > { %v4911_v6 = vld [vmem:[%s5204_s30 + $0x40] sm:$0xff]   ;;  %v4682_v10 = vunpack.c.l.bf16 %v4907_v5  ;;  %v4683_v11 = vunpack.c.h.bf16 %v4907_v5  ;;  %s6137_s23 = scalar_lea.vmem %s6224_s4, %s4203_s19 }
  0x14   : > { %v4915_v12 = vld [vmem:[%s5204_s30 + $0x60] sm:$0xff]   ;;  %v4698_v14 = vunpack.c.l.bf16 %v4911_v6  ;;  %v4699_v15 = vunpack.c.h.bf16 %v4911_v6  ;;  %v307_v18 = vmul.f32 %v5209_v3, %v4666_v7  ;;  %v308_v19 = vmul.f32 %v5209_v3, %v4667_v8  ;;  %2236 = vmatpush.bf16.msra.mxu0 %v4621_v2  ;;  %5034 = vmatpush.bf16.msra.mxu1 %v4621_v2 }
  0x15   : > { %v4714_v16 = vunpack.c.l.bf16 %v4915_v12  ;;  %v4715_v17 = vunpack.c.h.bf16 %v4915_v12  ;;  %v315_v20 = vmul.f32 %v5209_v3, %v4682_v10  ;;  %v316_v21 = vmul.f32 %v5209_v3, %v4683_v11  ;;  %5035 = vmatpush.bf16.msra.mxu2 %v4621_v2  ;;  %5036 = vmatpush.bf16.msra.mxu3 %v4621_v2  ;;  %v4617_v12 = vld [vmem:[%s6223_s3 + $0xc8] sm:$0xff] }
  0x16   : > { %v323_v23 = vmul.f32 %v5209_v3, %v4698_v14  ;;  %v324_v24 = vmul.f32 %v5209_v3, %v4699_v15  ;;  %v342_v27 = vadd.f32 %v5217_v9, %v307_v18  ;;  %v343_v28 = vadd.f32 %v5217_v9, %v308_v19 }
  0x17   : > { %v331_v25 = vmul.f32 %v5209_v3, %v4714_v16  ;;  %v350_v29 = vadd.f32 %v5217_v9, %v315_v20  ;;  %v351_v31 = vadd.f32 %v5217_v9, %v316_v21  ;;  %v332_v34 = vmul.f32 %v5209_v3, %v4715_v17  ;;  %v5261_v21 = vld [vmem:[%s5204_s30 + $0x48] sm:$0xff]  }
  0x18   : > { %v358_v32 = vadd.f32 %v5217_v9, %v323_v23  ;;  %v359_v33 = vadd.f32 %v5217_v9, %v324_v24  ;;  %v374_v35 = vmax.f32 %v342_v27, 0.0  ;;  %v375_v36 = vmax.f32 %v343_v28, 0.0  ;;  %2237 = vmatpush.bf16.msra.mxu0 %v4620_v22  ;;  %5037 = vmatpush.bf16.msra.mxu1 %v4620_v22 }
  0x19   : > { %v382_v37 = vmax.f32 %v350_v29, 0.0  ;;  %v366_v38 = vadd.f32 %v5217_v9, %v331_v25  ;;  %v383_v40 = vmax.f32 %v351_v31, 0.0  ;;  %v367_v43 = vadd.f32 %v5217_v9, %v332_v34  ;;  %5038 = vmatpush.bf16.msra.mxu2 %v4620_v22  ;;  %5039 = vmatpush.bf16.msra.mxu3 %v4620_v22  ;;  %v4616_v31 = vld [vmem:[%s6223_s3 + $0xc0] sm:$0xff] }
  0x1a   : > { %v390_v41 = vmax.f32 %v358_v32, 0.0  ;;  %v391_v42 = vmax.f32 %v359_v33, 0.0  ;;  %v406_v44 = vpack.c.bf16 %v374_v35, %v374_v35  ;;  %v407_v45 = vpack.c.bf16 %v375_v36, %v375_v36 }
  0x1b   : > { %v414_v46 = vpack.c.bf16 %v382_v37, %v382_v37  ;;  %v398_v47 = vmax.f32 %v366_v38, 0.0  ;;  %v415_v48 = vpack.c.bf16 %v383_v40, %v383_v40  ;;  %v399_v51 = vmax.f32 %v367_v43, 0.0 }
  0x1c   : > { %v422_v49 = vpack.c.bf16 %v390_v41, %v390_v41  ;;  %v423_v50 = vpack.c.bf16 %v391_v42, %v391_v42  ;;  %v470_v52 = vunpack.c.l.b16 %v406_v44  ;;  %v471_v53 = vunpack.c.l.b16 %v407_v45  ;;  %2238 = vmatpush.bf16.msra.mxu0 %v4619_v39  ;;  %5040 = vmatpush.bf16.msra.mxu1 %v4619_v39  ;;  %v4639_v44 = vld [vmem:[%s6223_s3 + $0x178] sm:$0xff] }
  0x1d   : > { %v478_v54 = vunpack.c.l.b16 %v414_v46  ;;  %v430_v55 = vpack.c.bf16 %v398_v47, %v398_v47  ;;  %v479_v58 = vunpack.c.l.b16 %v415_v48  ;;  %v431_v61 = vpack.c.bf16 %v399_v51, %v399_v51  ;;  %5041 = vmatpush.bf16.msra.mxu2 %v4619_v39  ;;  %5042 = vmatpush.bf16.msra.mxu3 %v4619_v39  ;;  %v4599_v45 = vld [vmem:[%s6223_s3 + $0x38] sm:$0xff] }
  0x1e   : > { %v486_v59 = vunpack.c.l.b16 %v422_v49  ;;  %v487_v60 = vunpack.c.l.b16 %v423_v50  ;;  %v502_v62 = vpack.c.b16 %v471_v53, %v470_v52  ;;  %v309_v0 = vmul.f32 %v5209_v3, %v4670_v26  ;;  %v4631_v50 = vld [vmem:[%s6223_s3 + $0x138] sm:$0xff]  ;;  %v4916_v52 = vld [vmem:[%s5204_s30 + $0x68] sm:$0xff]  }
  0x1f   : > { %v494_v63 = vunpack.c.l.b16 %v430_v55  ;;  %v310_v1 = vmul.f32 %v5209_v3, %v4671_v30  ;;  %v506_v2 = vpack.c.b16 %v479_v58, %v478_v54  ;;  %v495_v5 = vunpack.c.l.b16 %v431_v61  ;;  %v4607_v51 = vld [vmem:[%s6223_s3 + $0x78] sm:$0xff] }
  0x20   : > { %v510_v4 = vpack.c.b16 %v487_v60, %v486_v59  ;;  %v4686_v6 = vunpack.c.l.bf16 %v4908_v56  ;;  %v519_v7 = vshrl.u32 %v502_v62, 16  ;;  %v522_v8 = vshll.u32 %v502_v62, 16  ;;  %2239 = vmatpush.bf16.msra.mxu0 %v4618_v57  ;;  %5043 = vmatpush.bf16.msra.mxu1 %v4618_v57 }
  0x21   : > { %v344_v10 = vadd.f32 %v5217_v9, %v309_v0  ;;  %v345_v11 = vadd.f32 %v5217_v9, %v310_v1  ;;  %v547_v13 = vshrl.u32 %v506_v2, 16  ;;  %v550_v14 = vshll.u32 %v506_v2, 16  ;;  %5044 = vmatpush.bf16.msra.mxu2 %v4618_v57  ;;  %5045 = vmatpush.bf16.msra.mxu3 %v4618_v57  ;;  %v4598_v0 = vld [vmem:[%s6223_s3 + $0x30] sm:$0xff] }
  0x22   : > { %v575_v15 = vshrl.u32 %v510_v4, 16  ;;  %v578_v16 = vshll.u32 %v510_v4, 16  ;;  %v5258_v17 = vrot.slane %v519_v7, 7  ;;  %v514_v18 = vpack.c.b16 %v495_v5, %v494_v63  ;;  %v4638_v63 = vld [vmem:[%s6223_s3 + $0x170] sm:$0xff] }
  0x23   : > { %v376_v19 = vmax.f32 %v344_v10, 0.0  ;;  %v377_v20 = vmax.f32 %v345_v11, 0.0  ;;  %v5269_v23 = vrot.slane %v547_v13, 7  ;;  %v4687_v25 = vunpack.c.h.bf16 %v4908_v56 }
  0x24   : > { %v5271_v24 = vrot.slane %v575_v15, 7  ;;  %v317_v26 = vmul.f32 %v5209_v3, %v4686_v6  ;;  %v524_v27 = vor.u32 %v522_v8, %v5258_v17  ;;  %v603_v28 = vshrl.u32 %v514_v18, 16  ;;  %2240 = vmatpush.bf16.msra.mxu0 %v4617_v12  ;;  %5046 = vmatpush.bf16.msra.mxu1 %v4617_v12 }
  0x25   : > { %v606_v29 = vshll.u32 %v514_v18, 16  ;;  %v408_v30 = vpack.c.bf16 %v376_v19, %v376_v19  ;;  %v552_v32 = vor.u32 %v550_v14, %v5269_v23  ;;  %v409_v34 = vpack.c.bf16 %v377_v20, %v377_v20  ;;  %5047 = vmatpush.bf16.msra.mxu2 %v4617_v12  ;;  %5048 = vmatpush.bf16.msra.mxu3 %v4617_v12 }
  0x26   : > { %v580_v33 = vor.u32 %v578_v16, %v5271_v24  ;;  %v4702_v35 = vunpack.c.l.bf16 %v5261_v21  ;;  %v665_v36 = vsel %vm5265_vm2, 0, %v524_v27  ;;  %v5283_v37 = vrot.slane %v603_v28, 7 }
  0x27   : > { %v472_v38 = vunpack.c.l.b16 %v408_v30  ;;  %v318_v39 = vmul.f32 %v5209_v3, %v4687_v25  ;;  %v732_v40 = vunpack.c.l.b16 %v665_v36  ;;  %v733_v41 = vunpack.c.h.b16 %v665_v36  ;;  %v4905_v25 = vld [vmem:[%s5204_s30 + $0x10] sm:$0xff]  }
  0x28   : > { %v669_v42 = vsel %vm5265_vm2, 0, %v552_v32  ;;  %v673_v43 = vsel %vm5265_vm2, 0, %v580_v33  ;;  %2241 = vmatpush.bf16.msra.mxu0 %v4616_v31  ;;  %5049 = vmatpush.bf16.msra.mxu1 %v4616_v31  ;;  %v608_v55 = vor.u32 %v606_v29, %v5283_v37  ;;  %v473_v56 = vunpack.c.l.b16 %v409_v34 }
  0x29   : > { %v744_v46 = vunpack.c.l.b16 %v669_v42  ;;  %v745_v47 = vunpack.c.h.b16 %v669_v42  ;;  %v756_v48 = vunpack.c.l.b16 %v673_v43  ;;  %v757_v49 = vunpack.c.h.b16 %v673_v43  ;;  %5050 = vmatpush.bf16.msra.mxu2 %v4616_v31  ;;  %5051 = vmatpush.bf16.msra.mxu3 %v4616_v31 }
  0x2a   : > { %v782_v53 = vpack.c.b16 %v732_v40, %v732_v40  ;;  %v783_v54 = vpack.c.b16 %v733_v41, %v733_v41  ;;  %v4703_v60 = vunpack.c.h.bf16 %v5261_v21  ;;  %v677_v62 = vsel %vm5265_vm2, 0, %v608_v55 }
  0x2b   : > { %v794_v57 = vpack.c.b16 %v744_v46, %v744_v46  ;;  %v795_v58 = vpack.c.b16 %v745_v47, %v745_v47  ;;  %v806_v59 = vpack.c.b16 %v756_v48, %v756_v48  ;;  %v807_v61 = vpack.c.b16 %v757_v49, %v757_v49 }
  0x2c   : > { %883 = vst [vmem:[#allocation2 + $0xc] sm:$0xf] %v782_v53  ;;  %v503_v1 = vpack.c.b16 %v473_v56, %v472_v38  ;;  %v4718_v2 = vunpack.c.l.bf16 %v4916_v52  ;;  %v768_v4 = vunpack.c.l.b16 %v677_v62  ;;  %v769_v5 = vunpack.c.h.b16 %v677_v62  ;;  %2323 = vmatpush.bf16.msrb.mxu1 %v4631_v50  ;;  %2734 = vmatpush.bf16.msrb.mxu0 %v4607_v51 }
  0x2d   : > { %2412 = vmatpush.bf16.msrb.mxu2 %v4639_v44  ;;  %2645 = vmatpush.bf16.msrb.mxu3 %v4599_v45  ;;  %884 = vst [vmem:[#allocation2 + $0x10] sm:$0xf] %v783_v54  ;;  %v352_v6 = vadd.f32 %v5217_v9, %v317_v26  ;;  %v353_v7 = vadd.f32 %v5217_v9, %v318_v39  ;;  %v4719_v21 = vunpack.c.h.bf16 %v4916_v52  ;;  %v4674_v36 = vunpack.c.l.bf16 %v4905_v25 }
  0x2e   : > { %895 = vst [vmem:[#allocation2 + $0x3c] sm:$0xf] %v794_v57  ;;  %v526_v8 = vshrl.u32 %v503_v1, 16  ;;  %v529_v10 = vshll.u32 %v503_v1, 16  ;;  %v325_v11 = vmul.f32 %v5209_v3, %v4702_v35  ;;  %v326_v12 = vmul.f32 %v5209_v3, %v4703_v60 }
  0x2f   : > { %896 = vst [vmem:[#allocation2 + $0x40] sm:$0xf] %v795_v58  ;;  %v818_v13 = vpack.c.b16 %v768_v4, %v768_v4  ;;  %v819_v14 = vpack.c.b16 %v769_v5, %v769_v5  ;;  %v384_v15 = vmax.f32 %v352_v6, 0.0  ;;  %v385_v16 = vmax.f32 %v353_v7, 0.0  ;;  %v4630_v6 = vld [vmem:[%s6223_s3 + $0x130] sm:$0xff]  ;;  %v4637_v7 = vld [vmem:[%s6223_s3 + $0x168] sm:$0xff] }
  0x30   : > { %907 = vst [vmem:[#allocation2 + $0x6c] sm:$0xf] %v806_v59  ;;  %v5317_v18 = vrot.slane %v526_v8, 7  ;;  %v360_v19 = vadd.f32 %v5217_v9, %v325_v11  ;;  %v361_v20 = vadd.f32 %v5217_v9, %v326_v12  ;;  %v333_v28 = vmul.f32 %v5209_v3, %v4718_v2  ;;  %v4597_v8 = vld [vmem:[%s6223_s3 + $0x28] sm:$0xff]  ;;  %v4606_v12 = vld [vmem:[%s6223_s3 + $0x70] sm:$0xff]  ;;  %2324 = vmatpush.bf16.msrb.mxu1 %v4630_v6 }
  0x31   : > { %2413 = vmatpush.bf16.msrb.mxu2 %v4638_v63  ;;  %2646 = vmatpush.bf16.msrb.mxu3 %v4598_v0  ;;  %908 = vst [vmem:[#allocation2 + $0x70] sm:$0xf] %v807_v61  ;;  %v416_v26 = vpack.c.bf16 %v384_v15, %v384_v15  ;;  %v417_v27 = vpack.c.bf16 %v385_v16, %v385_v16  ;;  %v4675_v59 = vunpack.c.h.bf16 %v4905_v25 }
  0x32   : > { %919 = vst [vmem:[#allocation2 + $0x9c] sm:$0xf] %v818_v13  ;;  %v531_v29 = vor.u32 %v529_v10, %v5317_v18  ;;  %v392_v30 = vmax.f32 %v360_v19, 0.0  ;;  %v393_v31 = vmax.f32 %v361_v20, 0.0  ;;  %v334_v32 = vmul.f32 %v5209_v3, %v4719_v21  ;;  %v4629_v19 = vld [vmem:[%s6223_s3 + $0x128] sm:$0xff]  ;;  %v4636_v20 = vld [vmem:[%s6223_s3 + $0x160] sm:$0xff]  ;;  %2735 = vmatpush.bf16.msrb.mxu0 %v4606_v12 }
  0x33   : > { %920 = vst [vmem:[#allocation2 + $0xa0] sm:$0xf] %v819_v14  ;;  %v480_v33 = vunpack.c.l.b16 %v416_v26  ;;  %v481_v34 = vunpack.c.l.b16 %v417_v27  ;;  %v368_v35 = vadd.f32 %v5217_v9, %v333_v28  ;;  %v311_v10 = vmul.f32 %v5209_v3, %v4674_v36  ;;  %v4605_v27 = vld [vmem:[%s6223_s3 + $0x68] sm:$0xff] }
  0x34   : > { %v5326_v38 = vld [vmem:[#allocation2 + $0xc] sm:$0xff]   ;;  %v666_v40 = vsel %vm5265_vm2, 0, %v531_v29  ;;  %v424_v41 = vpack.c.bf16 %v392_v30, %v392_v30  ;;  %v425_v42 = vpack.c.bf16 %v393_v31, %v393_v31  ;;  %v369_v43 = vadd.f32 %v5217_v9, %v334_v32  ;;  %v4596_v30 = vld [vmem:[%s6223_s3 + $0x20] sm:$0xff]  ;;  %2325 = vmatpush.bf16.msrb.mxu1 %v4629_v19 }
  0x35   : > { %v5328_v39 = vld [vmem:[#allocation2 + $0xc] sm:$0xf0]  ;;  %v735_v44 = vunpack.c.l.b16 %v666_v40  ;;  %v736_v45 = vunpack.c.h.b16 %v666_v40  ;;  %v507_v48 = vpack.c.b16 %v481_v34, %v480_v33  ;;  %v400_v51 = vmax.f32 %v368_v35, 0.0  ;;  %2242 = vmatmul.bf16.vlgmr.msra.gmra.mxu0 %v5326_v38  ;;  %2414 = vmatpush.bf16.msrb.mxu2 %v4637_v7 }
  0x36   : > { %v5333_v46 = vld [vmem:[#allocation2 + $0x3c] sm:$0xff]   ;;  %v488_v49 = vunpack.c.l.b16 %v424_v41  ;;  %v489_v50 = vunpack.c.l.b16 %v425_v42  ;;  %v401_v2 = vmax.f32 %v369_v43, 0.0  ;;  %v312_v13 = vmul.f32 %v5209_v3, %v4675_v59  ;;  %2647 = vmatpush.bf16.msrb.mxu3 %v4597_v8  ;;  %v4909_v33 = vld [vmem:[%s5204_s30 + $0x30] sm:$0xff]   ;;  %2736 = vmatpush.bf16.msrb.mxu0 %v4605_v27 }
  0x37   : > { %v5335_v47 = vld [vmem:[#allocation2 + $0x3c] sm:$0xf0]  ;;  %v785_v52 = vpack.c.b16 %v735_v44, %v735_v44  ;;  %v786_v55 = vpack.c.b16 %v736_v45, %v736_v45  ;;  %v554_v56 = vshrl.u32 %v507_v48, 16  ;;  %v557_v57 = vshll.u32 %v507_v48, 16  ;;  %2262 = vmatmul.bf16.vlgmr.msra.gmra.mxu1 %v5333_v46  ;;  %v4913_v43 = vld [vmem:[%s5204_s30 + $0x50] sm:$0xff]  }
  0x38   : > { %v5337_v53 = vld [vmem:[#allocation2 + $0x6c] sm:$0xff]   ;;  %v511_v58 = vpack.c.b16 %v489_v50, %v488_v49  ;;  %v432_v1 = vpack.c.bf16 %v400_v51, %v400_v51  ;;  %v433_v11 = vpack.c.bf16 %v401_v2, %v401_v2  ;;  %v346_v21 = vadd.f32 %v5217_v9, %v311_v10 }
  0x39   : > { %v5339_v54 = vld [vmem:[#allocation2 + $0x6c] sm:$0xf0]  ;;  %886 = vst [vmem:[#allocation2 + $0x18] sm:$0xf] %v785_v52  ;;  %v5346_v62 = vrot.slane %v554_v56, 7  ;;  %2282 = vmatmul.bf16.vlgmr.msra.gmra.mxu2 %v5337_v53  ;;  %v347_v31 = vadd.f32 %v5217_v9, %v312_v13  ;;  %v4690_v49 = vunpack.c.l.bf16 %v4909_v33  ;;  %v4691_v56 = vunpack.c.h.bf16 %v4909_v33 }
  0x3a   : > { %v5342_v60 = vld [vmem:[#allocation2 + $0x9c] sm:$0xff]   ;;  %887 = vst [vmem:[#allocation2 + $0x1c] sm:$0xf] %v786_v55  ;;  %v582_v63 = vshrl.u32 %v511_v58, 16  ;;  %v585_v0 = vshll.u32 %v511_v58, 16  ;;  %v496_v16 = vunpack.c.l.b16 %v432_v1  ;;  %v497_v29 = vunpack.c.l.b16 %v433_v11  ;;  %2415 = vmatpush.bf16.msrb.mxu2 %v4636_v20  ;;  %2648 = vmatpush.bf16.msrb.mxu3 %v4596_v30  ;;  %v4917_v2 = vld [vmem:[%s5204_s30 + $0x70] sm:$0xff]  }
  0x3b   : > { %v5344_v61 = vld [vmem:[#allocation2 + $0x9c] sm:$0xf0]  ;;  %v559_v4 = vor.u32 %v557_v57, %v5346_v62  ;;  %2302 = vmatmul.bf16.vlgmr.msra.gmra.mxu3 %v5342_v60  ;;  %v378_v32 = vmax.f32 %v346_v21, 0.0  ;;  %v379_v42 = vmax.f32 %v347_v31, 0.0  ;;  %v319_v57 = vmul.f32 %v5209_v3, %v4690_v49 }
  0x3c   : > { %v5350_v5 = vrot.slane %v582_v63, 7  ;;  %v515_v41 = vpack.c.b16 %v497_v29, %v496_v16  ;;  %v4706_v58 = vunpack.c.l.bf16 %v4913_v43  ;;  %v4707_v1 = vunpack.c.h.bf16 %v4913_v43 }
  0x3d   : > { %v670_v14 = vsel %vm5265_vm2, 0, %v559_v4  ;;  %v410_v48 = vpack.c.bf16 %v378_v32, %v378_v32  ;;  %v411_v52 = vpack.c.bf16 %v379_v42, %v379_v42  ;;  %v320_v4 = vmul.f32 %v5209_v3, %v4691_v56 }
  0x3e   : > { %v587_v15 = vor.u32 %v585_v0, %v5350_v5  ;;  %v747_v25 = vunpack.c.l.b16 %v670_v14  ;;  %v748_v26 = vunpack.c.h.b16 %v670_v14  ;;  %v610_v50 = vshrl.u32 %v515_v41, 16 }
  0x3f   : > { %v613_v51 = vshll.u32 %v515_v41, 16  ;;  %v474_v55 = vunpack.c.l.b16 %v410_v48  ;;  %v475_v0 = vunpack.c.l.b16 %v411_v52  ;;  %v354_v6 = vadd.f32 %v5217_v9, %v319_v57  ;;  %v4906_v41 = vld [vmem:[%s5204_s30 + $0x18] sm:$0xff]  }
  0x40   : > { %v674_v28 = vsel %vm5265_vm2, 0, %v587_v15  ;;  %v797_v34 = vpack.c.b16 %v747_v25, %v747_v25  ;;  %v798_v35 = vpack.c.b16 %v748_v26, %v748_v26  ;;  %v5392_v63 = vrot.slane %v610_v50, 7 }
  0x41   : > { %v759_v36 = vunpack.c.l.b16 %v674_v28  ;;  %v760_v40 = vunpack.c.h.b16 %v674_v28  ;;  %v5390_v59 = vld [vmem:[#allocation2 + $0x18] sm:$0xff]   ;;  %v327_v7 = vmul.f32 %v5209_v3, %v4706_v58  ;;  %v504_v10 = vpack.c.b16 %v475_v0, %v474_v55 }
  0x42   : > { %898 = vst [vmem:[#allocation2 + $0x48] sm:$0xf] %v797_v34  ;;  %v615_v8 = vor.u32 %v613_v51, %v5392_v63  ;;  %v328_v11 = vmul.f32 %v5209_v3, %v4707_v1  ;;  %v355_v12 = vadd.f32 %v5217_v9, %v320_v4  ;;  %v386_v13 = vmax.f32 %v354_v6, 0.0 }
  0x43   : > { %v809_v44 = vpack.c.b16 %v759_v36, %v759_v36  ;;  %v810_v45 = vpack.c.b16 %v760_v40, %v760_v40  ;;  %899 = vst [vmem:[#allocation2 + $0x4c] sm:$0xf] %v798_v35  ;;  %v362_v14 = vadd.f32 %v5217_v9, %v327_v7  ;;  %v4722_v15 = vunpack.c.l.bf16 %v4917_v2 }
  0x44   : > { %v678_v16 = vsel %vm5265_vm2, 0, %v615_v8  ;;  %v533_v19 = vshrl.u32 %v504_v10, 16  ;;  %v536_v20 = vshll.u32 %v504_v10, 16  ;;  %v363_v21 = vadd.f32 %v5217_v9, %v328_v11 }
  0x45   : > { %910 = vst [vmem:[#allocation2 + $0x78] sm:$0xf] %v809_v44  ;;  %2247 = vmatmul.bf16.gmra.mxu0 %v5390_v59  ;;  %v771_v26 = vunpack.c.l.b16 %v678_v16  ;;  %v772_v27 = vunpack.c.h.b16 %v678_v16  ;;  %v387_v28 = vmax.f32 %v355_v12, 0.0  ;;  %v418_v29 = vpack.c.bf16 %v386_v13, %v386_v13  ;;  %v4635_v16 = vld [vmem:[%s6223_s3 + $0x158] sm:$0xff] }
  0x46   : > { %911 = vst [vmem:[#allocation2 + $0x7c] sm:$0xf] %v810_v45  ;;  %v5409_v30 = vrot.slane %v533_v19, 7  ;;  %v394_v31 = vmax.f32 %v362_v14, 0.0  ;;  %v4723_v32 = vunpack.c.h.bf16 %v4917_v2  ;;  %v395_v44 = vmax.f32 %v363_v21, 0.0  ;;  %v4910_v2 = vld [vmem:[%s5204_s30 + $0x38] sm:$0xff]   ;;  %2416 = vmatpush.bf16.msrb.mxu2 %v4635_v16 }
  0x47   : > { %v821_v34 = vpack.c.b16 %v771_v26, %v771_v26  ;;  %v822_v35 = vpack.c.b16 %v772_v27, %v772_v27  ;;  %v419_v36 = vpack.c.bf16 %v387_v28, %v387_v28  ;;  %v482_v40 = vunpack.c.l.b16 %v418_v29  ;;  %v4595_v19 = vld [vmem:[%s6223_s3 + $0x18] sm:$0xff]  ;;  %v4604_v29 = vld [vmem:[%s6223_s3 + $0x60] sm:$0xff] }
  0x48   : > { %v538_v42 = vor.u32 %v536_v20, %v5409_v30  ;;  %v426_v45 = vpack.c.bf16 %v394_v31, %v394_v31  ;;  %v335_v48 = vmul.f32 %v5209_v3, %v4722_v15  ;;  %v336_v50 = vmul.f32 %v5209_v3, %v4723_v32  ;;  %v4628_v15 = vld [vmem:[%s6223_s3 + $0x120] sm:$0xff]  ;;  %2737 = vmatpush.bf16.msrb.mxu0 %v4604_v29 }
  0x49   : > { %922 = vst [vmem:[#allocation2 + $0xa8] sm:$0xf] %v821_v34  ;;  %v483_v43 = vunpack.c.l.b16 %v419_v36  ;;  %v4678_v51 = vunpack.c.l.bf16 %v4906_v41  ;;  %v427_v57 = vpack.c.bf16 %v395_v44, %v395_v44  ;;  %v4679_v13 = vunpack.c.h.bf16 %v4906_v41  ;;  %2326 = vmatpush.bf16.msrb.mxu1 %v4628_v15  ;;  %v4627_v34 = vld [vmem:[%s6223_s3 + $0x118] sm:$0xff]  ;;  %2649 = vmatpush.bf16.msrb.mxu3 %v4595_v19 }
  0x4a   : > { %v5406_v25 = vld [vmem:[#allocation2 + $0x48] sm:$0xff]   ;;  %923 = vst [vmem:[#allocation2 + $0xac] sm:$0xf] %v822_v35  ;;  %v667_v49 = vsel %vm5265_vm2, 0, %v538_v42  ;;  %v490_v58 = vunpack.c.l.b16 %v426_v45  ;;  %v370_v0 = vadd.f32 %v5217_v9, %v335_v48  ;;  %v371_v1 = vadd.f32 %v5217_v9, %v336_v50  ;;  %v4634_v35 = vld [vmem:[%s6223_s3 + $0x150] sm:$0xff]  ;;  %v4603_v42 = vld [vmem:[%s6223_s3 + $0x58] sm:$0xff] }
  0x4b   : > { %2267 = vmatmul.bf16.gmra.mxu1 %v5406_v25  ;;  %v738_v52 = vunpack.c.l.b16 %v667_v49  ;;  %v739_v55 = vunpack.c.h.b16 %v667_v49  ;;  %v508_v56 = vpack.c.b16 %v483_v43, %v482_v40  ;;  %v491_v10 = vunpack.c.l.b16 %v427_v57  ;;  %v4914_v44 = vld [vmem:[%s5204_s30 + $0x58] sm:$0xff]   ;;  %v4594_v50 = vld [vmem:[%s6223_s3 + $0x10] sm:$0xff]  ;;  %2417 = vmatpush.bf16.msrb.mxu2 %v4634_v35 }
  0x4c   : > { %v402_v11 = vmax.f32 %v370_v0, 0.0  ;;  %v403_v12 = vmax.f32 %v371_v1, 0.0  ;;  %v313_v20 = vmul.f32 %v5209_v3, %v4678_v51  ;;  %v4694_v21 = vunpack.c.l.bf16 %v4910_v2  ;;  %2738 = vmatpush.bf16.msrb.mxu0 %v4603_v42 }
  0x4d   : > { %v4954_v33 = vld [vmem:[#allocation2 + $0x78] sm:$0xff]   ;;  %v788_v4 = vpack.c.b16 %v738_v52, %v738_v52  ;;  %v789_v6 = vpack.c.b16 %v739_v55, %v739_v55  ;;  %v561_v7 = vshrl.u32 %v508_v56, 16  ;;  %v564_v8 = vshll.u32 %v508_v56, 16  ;;  %2327 = vmatpush.bf16.msrb.mxu1 %v4627_v34  ;;  %2650 = vmatpush.bf16.msrb.mxu3 %v4594_v50 }
  0x4e   : > { %2287 = vmatmul.bf16.gmra.mxu2 %v4954_v33  ;;  %v512_v26 = vpack.c.b16 %v491_v10, %v490_v58  ;;  %v434_v27 = vpack.c.bf16 %v402_v11, %v402_v11  ;;  %v435_v28 = vpack.c.bf16 %v403_v12, %v403_v12  ;;  %v314_v31 = vmul.f32 %v5209_v3, %v4679_v13 }
  0x4f   : > { %889 = vst [vmem:[#allocation2 + $0x24] sm:$0xf] %v788_v4  ;;  %v5420_v14 = vrot.slane %v561_v7, 7  ;;  %v348_v36 = vadd.f32 %v5217_v9, %v313_v20  ;;  %v4695_v43 = vunpack.c.h.bf16 %v4910_v2  ;;  %v321_v57 = vmul.f32 %v5209_v3, %v4694_v21 }
  0x50   : > { %890 = vst [vmem:[#allocation2 + $0x28] sm:$0xf] %v789_v6  ;;  %v589_v40 = vshrl.u32 %v512_v26, 16  ;;  %v592_v41 = vshll.u32 %v512_v26, 16  ;;  %v498_v48 = vunpack.c.l.b16 %v434_v27  ;;  %v499_v49 = vunpack.c.l.b16 %v435_v28 }
  0x51   : > { %v4956_v32 = vld [vmem:[#allocation2 + $0xa8] sm:$0xff]   ;;  %v566_v33 = vor.u32 %v564_v8, %v5420_v14  ;;  %v349_v51 = vadd.f32 %v5217_v9, %v314_v31  ;;  %v380_v0 = vmax.f32 %v348_v36, 0.0  ;;  %v4710_v2 = vunpack.c.l.bf16 %v4914_v44 }
  0x52   : > { %2307 = vmatmul.bf16.gmra.mxu3 %v4956_v32  ;;  %v5454_v56 = vrot.slane %v589_v40, 7  ;;  %v516_v58 = vpack.c.b16 %v499_v49, %v498_v48  ;;  %v322_v8 = vmul.f32 %v5209_v3, %v4695_v43  ;;  %v356_v20 = vadd.f32 %v5217_v9, %v321_v57 }
  0x53   : > { %v671_v45 = vsel %vm5265_vm2, 0, %v566_v33  ;;  %v381_v1 = vmax.f32 %v349_v51, 0.0  ;;  %v412_v15 = vpack.c.bf16 %v380_v0, %v380_v0  ;;  %v4918_v33 = vld [vmem:[%s5204_s30 + $0x78] sm:$0xff]   ;;  %v4711_v40 = vunpack.c.h.bf16 %v4914_v44  ;;  %s4204_s30 = sshll.u32 %s5195_s24, 3 }
  0x54   : > { %v750_v52 = vunpack.c.l.b16 %v671_v45  ;;  %v751_v55 = vunpack.c.h.b16 %v671_v45  ;;  %v594_v7 = vor.u32 %v592_v41, %v5454_v56  ;;  %v617_v12 = vshrl.u32 %v516_v58, 16  ;;  %s236_s27 = scalar_lea.vmem %s6225_s5, %s4204_s30 }
  0x55   : > { %v620_v13 = vshll.u32 %v516_v58, 16  ;;  %v413_v16 = vpack.c.bf16 %v381_v1, %v381_v1  ;;  %v476_v28 = vunpack.c.l.b16 %v412_v15  ;;  %v357_v31 = vadd.f32 %v5217_v9, %v322_v8 }
  0x56   : > { %v800_v4 = vpack.c.b16 %v750_v52, %v750_v52  ;;  %v801_v6 = vpack.c.b16 %v751_v55, %v751_v55  ;;  %v675_v19 = vsel %vm5265_vm2, 0, %v594_v7  ;;  %v5466_v27 = vrot.slane %v617_v12, 7 }
  0x57   : > { %v5459_v10 = vld [vmem:[#allocation2 + $0x24] sm:$0xff]   ;;  %v762_v21 = vunpack.c.l.b16 %v675_v19  ;;  %v763_v26 = vunpack.c.h.b16 %v675_v19  ;;  %v477_v29 = vunpack.c.l.b16 %v413_v16  ;;  %v388_v32 = vmax.f32 %v356_v20, 0.0 }
  0x58   : > { %v5461_v11 = vld [vmem:[#allocation2 + $0x24] sm:$0xf0]  ;;  %901 = vst [vmem:[#allocation2 + $0x54] sm:$0xf] %v800_v4  ;;  %v622_v36 = vor.u32 %v620_v13, %v5466_v27  ;;  %2252 = vmatmul.bf16.gmra.mxu0 %v5459_v10  ;;  %v389_v42 = vmax.f32 %v357_v31, 0.0  ;;  %v329_v45 = vmul.f32 %v5209_v3, %v4710_v2  ;;  %v330_v49 = vmul.f32 %v5209_v3, %v4711_v40 }
  0x59   : > { %902 = vst [vmem:[#allocation2 + $0x58] sm:$0xf] %v801_v6  ;;  %v812_v34 = vpack.c.b16 %v762_v21, %v762_v21  ;;  %v813_v35 = vpack.c.b16 %v763_v26, %v763_v26  ;;  %v505_v41 = vpack.c.b16 %v477_v29, %v476_v28  ;;  %v420_v43 = vpack.c.bf16 %v388_v32, %v388_v32 }
  0x5a   : > { %v679_v48 = vsel %vm5265_vm2, 0, %v622_v36  ;;  %v4726_v50 = vunpack.c.l.bf16 %v4918_v33  ;;  %v4727_v51 = vunpack.c.h.bf16 %v4918_v33  ;;  %v421_v58 = vpack.c.bf16 %v389_v42, %v389_v42 }
  0x5b   : > { %913 = vst [vmem:[#allocation2 + $0x84] sm:$0xf] %v812_v34  ;;  %v774_v52 = vunpack.c.l.b16 %v679_v48  ;;  %v775_v55 = vunpack.c.h.b16 %v679_v48  ;;  %v540_v57 = vshrl.u32 %v505_v41, 16  ;;  %v543_v44 = vshll.u32 %v505_v41, 16 }
  0x5c   : > { %914 = vst [vmem:[#allocation2 + $0x88] sm:$0xf] %v813_v35  ;;  %v484_v0 = vunpack.c.l.b16 %v420_v43  ;;  %v364_v1 = vadd.f32 %v5217_v9, %v329_v45  ;;  %v365_v4 = vadd.f32 %v5217_v9, %v330_v49  ;;  %v337_v13 = vmul.f32 %v5209_v3, %v4726_v50 }
  0x5d   : > { %v824_v7 = vpack.c.b16 %v774_v52, %v774_v52  ;;  %v825_v8 = vpack.c.b16 %v775_v55, %v775_v55  ;;  %v5482_v12 = vrot.slane %v540_v57, 7  ;;  %v485_v15 = vunpack.c.l.b16 %v421_v58  ;;  %v4633_v55 = vld [vmem:[%s6223_s3 + $0x148] sm:$0xff] }
  0x5e   : > { %v396_v16 = vmax.f32 %v364_v1, 0.0  ;;  %v397_v20 = vmax.f32 %v365_v4, 0.0  ;;  %v338_v21 = vmul.f32 %v5209_v3, %v4727_v51  ;;  %v372_v26 = vadd.f32 %v5217_v9, %v337_v13  ;;  %v4593_v57 = vld [vmem:[%s6223_s3 + $0x8] sm:$0xff]  ;;  %2418 = vmatpush.bf16.msrb.mxu2 %v4633_v55  ;;  %v4632_v13 = vld [vmem:[%s6223_s3 + $0x140] sm:$0xff] }
  0x5f   : > { %925 = vst [vmem:[#allocation2 + $0xb4] sm:$0xf] %v824_v7  ;;  %v545_v19 = vor.u32 %v543_v44, %v5482_v12  ;;  %v509_v28 = vpack.c.b16 %v485_v15, %v484_v0  ;;  %v681_v31 = vsel %vm5265_vm2, %v5258_v17, 0  ;;  %v4626_v17 = vld [vmem:[%s6223_s3 + $0x110] sm:$0xff]  ;;  %v4625_v0 = vld [vmem:[%s6223_s3 + $0x108] sm:$0xff]  ;;  %2651 = vmatpush.bf16.msrb.mxu3 %v4593_v57  ;;  %v4592_v15 = vld [vmem:[%s6223_s3] sm:$0xff] }
  0x60   : > { %v5478_v2 = vld [vmem:[#allocation2 + $0x54] sm:$0xff]   ;;  %926 = vst [vmem:[#allocation2 + $0xb8] sm:$0xf] %v825_v8  ;;  %v428_v29 = vpack.c.bf16 %v396_v16, %v396_v16  ;;  %v429_v33 = vpack.c.bf16 %v397_v20, %v397_v20  ;;  %v373_v34 = vadd.f32 %v5217_v9, %v338_v21  ;;  %v404_v35 = vmax.f32 %v372_v26, 0.0  ;;  %2328 = vmatpush.bf16.msrb.mxu1 %v4626_v17  ;;  %v4601_v1 = vld [vmem:[%s6223_s3 + $0x48] sm:$0xff] }
  0x61   : > { %v5480_v6 = vld [vmem:[#allocation2 + $0x54] sm:$0xf0]  ;;  %v668_v32 = vsel %vm5265_vm2, 0, %v545_v19  ;;  %2272 = vmatmul.bf16.gmra.mxu1 %v5478_v2  ;;  %v568_v42 = vshrl.u32 %v509_v28, 16  ;;  %v571_v43 = vshll.u32 %v509_v28, 16  ;;  %v4602_v9 = vld [vmem:[%s6223_s3 + $0x50] sm:$0xff]  ;;  %v734_v4 = vunpack.c.l.b16 %v681_v31 }
  0x62   : > { %v741_v40 = vunpack.c.l.b16 %v668_v32  ;;  %v742_v41 = vunpack.c.h.b16 %v668_v32  ;;  %v492_v45 = vunpack.c.l.b16 %v428_v29  ;;  %v493_v48 = vunpack.c.l.b16 %v429_v33  ;;  %2739 = vmatpush.bf16.msrb.mxu0 %v4602_v9  ;;  %2419 = vmatpush.bf16.msrb.mxu2 %v4632_v13 }
  0x63   : > { %v5495_v36 = vld [vmem:[#allocation2 + $0x84] sm:$0xff]   ;;  %v5505_v51 = vrot.slane %v568_v42, 7  ;;  %v405_v52 = vmax.f32 %v373_v34, 0.0  ;;  %v436_v58 = vpack.c.bf16 %v404_v35, %v404_v35  ;;  %2652 = vmatpush.bf16.msrb.mxu3 %v4592_v15  ;;  %v5146_v57 = vmov 0   ;;  %v4663_v15 = vld [vmem:[%s6223_s3 + $0x238] sm:$0xff] }
  0x64   : > { %v5497_v3 = vld [vmem:[#allocation2 + $0x84] sm:$0xf0]  ;;  %v791_v49 = vpack.c.b16 %v741_v40, %v741_v40  ;;  %v792_v50 = vpack.c.b16 %v742_v41, %v742_v41  ;;  %v513_v44 = vpack.c.b16 %v493_v48, %v492_v45  ;;  %2292 = vmatmul.bf16.gmra.mxu2 %v5495_v36  ;;  %2329 = vmatpush.bf16.msrb.mxu1 %v4625_v0  ;;  %v4624_v34 = vld [vmem:[%s6223_s3 + $0x100] sm:$0xff]  ;;  %v731_v13 = vunpack.c.h.b16 %v5146_v57 }
  0x65   : > { %v573_v7 = vor.u32 %v571_v43, %v5505_v51  ;;  %v437_v8 = vpack.c.bf16 %v405_v52, %v405_v52  ;;  %v500_v26 = vunpack.c.l.b16 %v436_v58  ;;  %v4600_v35 = vld [vmem:[%s6223_s3 + $0x40] sm:$0xff]  ;;  %v784_v40 = vpack.c.b16 %v734_v4, %v734_v4  ;;  %v4647_v4 = vld [vmem:[%s6223_s3 + $0x1b8] sm:$0xff] }
  0x66   : > { %892 = vst [vmem:[#allocation2 + $0x30] sm:$0xf] %v791_v49  ;;  %v596_v20 = vshrl.u32 %v513_v44, 16  ;;  %v599_v21 = vshll.u32 %v513_v44, 16  ;;  %2740 = vmatpush.bf16.msrb.mxu0 %v4601_v1  ;;  %v730_v44 = vunpack.c.l.b16 %v5146_v57  ;;  %3634 = vmatpush.bf16.msra.mxu2 %v4647_v4 }
  0x67   : > { %v5527_v16 = vld [vmem:[#allocation2 + $0xb4] sm:$0xff]   ;;  %893 = vst [vmem:[#allocation2 + $0x34] sm:$0xf] %v792_v50  ;;  %v672_v28 = vsel %vm5265_vm2, 0, %v573_v7  ;;  %v501_v29 = vunpack.c.l.b16 %v437_v8 }
  0x68   : > { %v5529_v19 = vld [vmem:[#allocation2 + $0xb4] sm:$0xf0]  ;;  %v753_v31 = vunpack.c.l.b16 %v672_v28  ;;  %v754_v32 = vunpack.c.h.b16 %v672_v28  ;;  %v5533_v33 = vrot.slane %v596_v20, 7  ;;  %885 = vst [vmem:[#allocation2 + $0x14] sm:$0x1] %v784_v40  ;;  %2312 = vmatmul.bf16.gmra.mxu3 %v5527_v16  ;;  %2330 = vmatpush.bf16.msrb.mxu1 %v4624_v34  ;;  %v682_v28 = vsel %vm5265_vm2, %v5317_v18, 0 }
  0x69   : > { %v517_v41 = vpack.c.b16 %v501_v29, %v500_v26  ;;  %v4655_v7 = vld [vmem:[%s6223_s3 + $0x1f8] sm:$0xff]  ;;  %v780_v26 = vpack.c.b16 %v730_v44, %v730_v44  ;;  %v781_v34 = vpack.c.b16 %v731_v13, %v731_v13 }
  0x6a   : > { %v803_v42 = vpack.c.b16 %v753_v31, %v753_v31  ;;  %v804_v43 = vpack.c.b16 %v754_v32, %v754_v32  ;;  %v601_v45 = vor.u32 %v599_v21, %v5533_v33  ;;  %2741 = vmatpush.bf16.msrb.mxu0 %v4600_v35  ;;  %v4615_v8 = vld [vmem:[%s6223_s3 + $0xb8] sm:$0xff]  ;;  %3723 = vmatpush.bf16.msra.mxu3 %v4655_v7  ;;  %v737_v35 = vunpack.c.l.b16 %v682_v28 }
  0x6b   : > { %v624_v48 = vshrl.u32 %v517_v41, 16  ;;  %v627_v17 = vshll.u32 %v517_v41, 16  ;;  %880 = vst [vmem:[#allocation2] sm:$0xf] %v780_v26 }
  0x6c   : > { %904 = vst [vmem:[#allocation2 + $0x60] sm:$0xf] %v803_v42  ;;  %v676_v9 = vsel %vm5265_vm2, 0, %v601_v45  ;;  %2823 = vmatpush.bf16.msra.mxu1 %v4615_v8  ;;  %v787_v45 = vpack.c.b16 %v737_v35, %v737_v35 }
  0x6d   : > { %905 = vst [vmem:[#allocation2 + $0x64] sm:$0xf] %v804_v43  ;;  %v765_v50 = vunpack.c.l.b16 %v676_v9  ;;  %v766_v52 = vunpack.c.h.b16 %v676_v9  ;;  %v5547_v55 = vrot.slane %v624_v48, 7  ;;  %v1724_v43 = vshll.u32 %v5326_v38, 16  ;;  %v5067_v48 = vld [vmem:[#allocation2 + $0xc] sm:$0xe] }
  0x6e   : > { %v5545_v49 = vld [vmem:[#allocation2 + $0x30] sm:$0xff]   ;;  %3812 = vmatpush.bf16.msra.mxu0 %v4663_v15  ;;  %881 = vst [vmem:[#allocation2 + $0x4] sm:$0xf] %v781_v34  ;;  %v683_v9 = vsel %vm5265_vm2, %v5409_v30, 0  ;;  %v5068_v13 = vor.u32 %v5067_v48, %v5328_v39 }
  0x6f   : > { %2257 = vmatmul.bf16.gmra.mxu0 %v5545_v49  ;;  %v815_v58 = vpack.c.b16 %v765_v50, %v765_v50  ;;  %v816_v0 = vpack.c.b16 %v766_v52, %v766_v52  ;;  %v629_v1 = vor.u32 %v627_v17, %v5547_v55  ;;  %v1545_v21 = vld [vmem:[#allocation2 + $0x14] sm:$0x1]  ;;  %932 = vst [vmem:[#allocation2 + $0xd0] sm:$0xf] %v781_v34  ;;  %v1722_v50 = vshrl.u32 %v5326_v38, 16  ;;  %v5580_v15 = vld [vmem:[#allocation2 + $0xc] sm:$0xff]  }
  0x70   : > { %v1689_v32 = vunpack.c.l.b16 %v1545_v21  ;;  %882 = vst [vmem:[#allocation2 + $0x8] sm:$0x1] %v780_v26  ;;  %v1726_v52 = vrot.slane %v1724_v43, 1  ;;  %v1736_v43 = vshll.u32 %v5390_v59, 16 }
  0x71   : > { %916 = vst [vmem:[#allocation2 + $0x90] sm:$0xf] %v815_v58  ;;  %v680_v20 = vsel %vm5265_vm2, 0, %v629_v1  ;;  %v740_v58 = vunpack.c.l.b16 %v683_v9 }
  0x72   : > { %917 = vst [vmem:[#allocation2 + $0x94] sm:$0xf] %v816_v0  ;;  %v777_v29 = vunpack.c.l.b16 %v680_v20  ;;  %v778_v31 = vunpack.c.h.b16 %v680_v20  ;;  %v1705_v18 = vpack.c.b16 %v1689_v32, %v1689_v32  ;;  %v1727_v7 = vor.u32 %v1726_v52, %v1722_v50  ;;  %v5582_v20 = vld [vmem:[#allocation2 + $0xc] sm:$0xf0] }
  0x73   : > { %931 = vst [vmem:[#allocation2 + $0xcc] sm:$0xf] %v780_v26  ;;  %v790_v1 = vpack.c.b16 %v740_v58, %v740_v58  ;;  %v1977_v32 = vrot.slane %v5068_v13, 1  ;;  %v1738_v58 = vrot.slane %v1736_v43, 1  ;;  %v4959_v13 = vld [vmem:[#allocation2 + $0x18] sm:$0xe] }
  0x74   : > { %v5568_v40 = vld [vmem:[#allocation2 + $0x60] sm:$0xff]   ;;  %v827_v41 = vpack.c.b16 %v777_v29, %v777_v29  ;;  %v828_v42 = vpack.c.b16 %v778_v31, %v778_v31  ;;  %v1729_v57 = vshll.u32 %v1705_v18, 16  ;;  %933 = vst [vmem:[#allocation2 + $0xd4] sm:$0x1] %v780_v26  ;;  %v1978_v34 = vrot.slane %v1705_v18, 1 }
  0x75   : > { %2277 = vmatmul.bf16.gmra.mxu1 %v5568_v40  ;;  %v4729_v44 = vld [vmem:[#allocation2] sm:$0xff]   ;;  %888 = vst [vmem:[#allocation2 + $0x20] sm:$0x1] %v787_v45  ;;  %v684_v18 = vsel %vm5265_vm2, %v5482_v12, 0 }
  0x76   : > { %928 = vst [vmem:[#allocation2 + $0xc0] sm:$0xf] %v827_v41  ;;  %v1146_v0 = vshll.u32 %v4729_v44, 16  ;;  %v1731_v8 = vrot.slane %v1729_v57, 1  ;;  %v1144_v38 = vshrl.u32 %v4729_v44, 16  ;;  %v1979_v50 = vsel %vm1399_vm4, %v1977_v32, %v1978_v34  ;;  %v4646_v32 = vld [vmem:[%s6223_s3 + $0x1b0] sm:$0xff] }
  0x77   : > { %929 = vst [vmem:[#allocation2 + $0xc4] sm:$0xf] %v828_v42  ;;  %v966_v30 = vld [vmem:[#allocation2 + $0x8] sm:$0x1]  ;;  %v967_v41 = vld [vmem:[#allocation2 + $0x14] sm:$0x1]  ;;  %3635 = vmatpush.bf16.msra.mxu2 %v4646_v32 }
  0x78   : > { %891 = vst [vmem:[#allocation2 + $0x2c] sm:$0x1] %v790_v1  ;;  %v1148_v21 = vrot.slane %v1146_v0, 1  ;;  %v1110_v26 = vunpack.c.l.b16 %v966_v30  ;;  %v1732_v28 = vsel %vm1142_vm3, %v1727_v7, %v1731_v8  ;;  %v1111_v9 = vunpack.c.l.b16 %v967_v41  ;;  %v4958_v8 = vld [vmem:[#allocation2 + $0x18] sm:$0xf0]  ;;  %v4654_v34 = vld [vmem:[%s6223_s3 + $0x1f0] sm:$0xff] }
  0x79   : > { %v5572_v17 = vld [vmem:[#allocation2 + $0x90] sm:$0xff]   ;;  %v1734_v57 = vshrl.u32 %v5390_v59, 16  ;;  %v743_v7 = vunpack.c.l.b16 %v684_v18  ;;  %v1156_v59 = vshrl.u32 %v5580_v15, 16  ;;  %v4960_v12 = vor.u32 %v4959_v13, %v4958_v8  ;;  %3724 = vmatpush.bf16.msra.mxu3 %v4654_v34 }
  0x7a   : > { %2297 = vmatmul.bf16.gmra.mxu2 %v5572_v17  ;;  %v5585_v29 = vpack.c.b16 %v1110_v26, %v1110_v26  ;;  %v1149_v39 = vor.u32 %v1148_v21, %v1144_v38  ;;  %v5595_v1 = vpack.c.b16 %v1111_v9, %v1111_v9  ;;  %v4662_v41 = vld [vmem:[%s6223_s3 + $0x230] sm:$0xff]  ;;  %v1748_v18 = vshll.u32 %v5459_v10, 16 }
  0x7b   : > { %v1739_v30 = vor.u32 %v1738_v58, %v1734_v57  ;;  %v793_v38 = vpack.c.b16 %v743_v7, %v743_v7  ;;  %3813 = vmatpush.bf16.msra.mxu0 %v4662_v41  ;;  %v1980_v9 = vrot.slane %v4960_v12, 1  ;;  %v5070_v7 = vld [vmem:[#allocation2 + $0x24] sm:$0xe] }
  0x7c   : > { %v1546_v31 = vld [vmem:[#allocation2 + $0x20] sm:$0x1]  ;;  %v1151_v42 = vshll.u32 %v5585_v29, 16 }
  0x7d   : > { %v1690_v35 = vunpack.c.l.b16 %v1546_v31  ;;  %894 = vst [vmem:[#allocation2 + $0x38] sm:$0x1] %v793_v38  ;;  %v1750_v38 = vrot.slane %v1748_v18, 1 }
  0x7e   : > { %v4957_v4 = vld [vmem:[#allocation2 + $0xc0] sm:$0xff]   ;;  %v1153_v45 = vrot.slane %v1151_v42, 1 }
  0x7f   : > { %2317 = vmatmul.bf16.gmra.mxu3 %v4957_v4  ;;  %v1706_v48 = vpack.c.b16 %v1690_v35, %v1690_v35  ;;  %v1158_v4 = vshll.u32 %v5580_v15, 16  ;;  %v1547_v31 = vld [vmem:[#allocation2 + $0x2c] sm:$0x1]  ;;  %v4614_v35 = vld [vmem:[%s6223_s3 + $0xb0] sm:$0xff] }
  0x80   : > { %v1154_v52 = vsel %vm1142_vm3, %v1149_v39, %v1153_v45  ;;  %v1691_v43 = vunpack.c.l.b16 %v1547_v31  ;;  %v968_v45 = vld [vmem:[#allocation2 + $0x20] sm:$0x1]  ;;  %2824 = vmatpush.bf16.msra.mxu1 %v4614_v35  ;;  %v5071_v35 = vor.u32 %v5070_v7, %v5461_v11 }
  0x81   : > { %2742 = vmatmul.bf16.vlgmr.msrb.gmra.mxu0 %v1154_v52  ;;  %v1741_v0 = vshll.u32 %v1706_v48, 16  ;;  %v1160_v26 = vrot.slane %v1158_v4, 1  ;;  %v1112_v52 = vunpack.c.l.b16 %v968_v45 }
  0x82   : > { %v1707_v58 = vpack.c.b16 %v1691_v43, %v1691_v43  ;;  %v1983_v45 = vrot.slane %v5071_v35, 1 }
  0x83   : > { %v1743_v21 = vrot.slane %v1741_v0, 1  ;;  %v1161_v39 = vor.u32 %v1160_v26, %v1156_v59  ;;  %v4919_v0 = vld [vmem:[#allocation2 + $0x18] sm:$0xff]   ;;  %v5616_v13 = vpack.c.b16 %v1112_v52, %v1112_v52  ;;  %v1760_v52 = vshll.u32 %v5545_v49, 16 }
  0x84   : > { %v1170_v8 = vshll.u32 %v4919_v0, 16  ;;  %v1548_v41 = vld [vmem:[#allocation2 + $0x38] sm:$0x1] }
  0x85   : > { %2331 = vmatmul.bf16.vlgmr.msrb.gmra.mxu1 %v1732_v28  ;;  %v1163_v28 = vshll.u32 %v5595_v1, 16  ;;  %v1175_v12 = vshll.u32 %v5616_v13, 16  ;;  %v1692_v43 = vunpack.c.l.b16 %v1548_v41  ;;  %v1762_v7 = vrot.slane %v1760_v52, 1  ;;  %v4645_v41 = vld [vmem:[%s6223_s3 + $0x1a8] sm:$0xff] }
  0x86   : > { %v1172_v31 = vrot.slane %v1170_v8, 1  ;;  %v686_v8 = vsel %vm5265_vm2, %v5346_v62, 0  ;;  %3636 = vmatpush.bf16.msra.mxu2 %v4645_v41 }
  0x87   : > { %v1165_v42 = vrot.slane %v1163_v28, 1  ;;  %v1168_v28 = vshrl.u32 %v4919_v0, 16 }
  0x89   : > { %v1166_v57 = vsel %vm1142_vm3, %v1161_v39, %v1165_v42  ;;  %v1177_v39 = vrot.slane %v1175_v12, 1 }
  0x8a   : > { %2420 = vmatmul.bf16.vlgmr.msrb.gmra.mxu2 %v1979_v50  ;;  %v1981_v50 = vrot.slane %v1706_v48, 1  ;;  %v1746_v48 = vshrl.u32 %v5459_v10, 16  ;;  %v1173_v10 = vor.u32 %v1172_v31, %v1168_v28 }
  0x8c   : > { %v1982_v4 = vsel %vm1399_vm4, %v1980_v9, %v1981_v50  ;;  %v1751_v32 = vor.u32 %v1750_v38, %v1746_v48  ;;  %v1984_v9 = vrot.slane %v1707_v58, 1  ;;  %v969_v50 = vld [vmem:[#allocation2 + $0x2c] sm:$0x1]  ;;  %v749_v38 = vunpack.c.l.b16 %v686_v8 }
  0x8d   : > { %v1113_v11 = vunpack.c.l.b16 %v969_v50  ;;  %v970_v50 = vld [vmem:[#allocation2 + $0x38] sm:$0x1] }
  0x8e   : > { %v1985_v18 = vsel %vm1399_vm4, %v1983_v45, %v1984_v9  ;;  %v799_v28 = vpack.c.b16 %v749_v38, %v749_v38  ;;  %v5073_v38 = vld [vmem:[#allocation2 + $0x3c] sm:$0xe] }
  0x8f   : > { %2653 = vmatmul.bf16.vlgmr.msrb.gmra.mxu3 %v4729_v44  ;;  %v1744_v44 = vsel %vm1142_vm3, %v1739_v30, %v1743_v21  ;;  %v685_v30 = vsel %vm5265_vm2, %v5269_v23, 0  ;;  %v1753_v21 = vshll.u32 %v1707_v58, 16  ;;  %v5625_v23 = vld [vmem:[#allocation2 + $0x24] sm:$0xff]   ;;  %v5074_v41 = vor.u32 %v5073_v38, %v5335_v47 }
  0x90   : > { %v746_v59 = vunpack.c.l.b16 %v685_v30  ;;  %v5637_v30 = vpack.c.b16 %v1113_v11, %v1113_v11  ;;  %v1182_v48 = vshll.u32 %v5625_v23, 16  ;;  %v1180_v12 = vshrl.u32 %v5625_v23, 16  ;;  %900 = vst [vmem:[#allocation2 + $0x50] sm:$0x1] %v799_v28 }
  0x91   : > { %2747 = vmatmul.bf16.gmra.mxu0 %v1166_v57  ;;  %v1755_v34 = vrot.slane %v1753_v21, 1  ;;  %v1708_v57 = vpack.c.b16 %v1692_v43, %v1692_v43  ;;  %v4961_v21 = vld [vmem:[#allocation2 + $0x30] sm:$0xf0]  ;;  %v1114_v11 = vunpack.c.l.b16 %v970_v50  ;;  %v1989_v50 = vrot.slane %v5074_v41, 1 }
  0x92   : > { %v796_v26 = vpack.c.b16 %v746_v59, %v746_v59  ;;  %6235 = vst [vmem:[#allocation3_spill] sm:$0xff] %v5637_v30  ;;  %v4962_v59 = vld [vmem:[#allocation2 + $0x30] sm:$0xe]  ;;  %v1784_v47 = vshll.u32 %v5406_v25, 16  ;;  %v1782_v38 = vshrl.u32 %v5406_v25, 16 }
  0x93   : > { %v1756_v42 = vsel %vm1142_vm3, %v1751_v32, %v1755_v34  ;;  %v1765_v58 = vshll.u32 %v1708_v57, 16  ;;  %v1184_v32 = vrot.slane %v1182_v48, 1  ;;  %v1187_v34 = vshll.u32 %v5637_v30, 16  ;;  %v4964_v25 = vld [vmem:[#allocation2 + $0x48] sm:$0xf0] }
  0x94   : > { %897 = vst [vmem:[#allocation2 + $0x44] sm:$0x1] %v796_v26  ;;  %v4963_v62 = vor.u32 %v4962_v59, %v4961_v21  ;;  %v5665_v21 = vpack.c.b16 %v1114_v11, %v1114_v11  ;;  %v1770_v59 = vshrl.u32 %v5333_v46, 16 }
  0x95   : > { %2336 = vmatmul.bf16.gmra.mxu1 %v1744_v44  ;;  %v5627_v44 = vld [vmem:[#allocation2 + $0x24] sm:$0xf0]  ;;  %v1767_v31 = vrot.slane %v1765_v58, 1  ;;  %v1185_v43 = vor.u32 %v1184_v32, %v1180_v12  ;;  %v1189_v45 = vrot.slane %v1187_v34, 1  ;;  %v1772_v58 = vshll.u32 %v5333_v46, 16 }
  0x96   : > { %v1986_v52 = vrot.slane %v4963_v62, 1  ;;  %6236 = vst [vmem:[#allocation4_spill] sm:$0xff] %v5665_v21  ;;  %v1199_v34 = vshll.u32 %v5665_v21, 16 }
  0x97   : > { %v1774_v28 = vrot.slane %v1772_v58, 1 }
  0x9a   : > { %2425 = vmatmul.bf16.gmra.mxu2 %v1982_v4  ;;  %v1758_v4 = vshrl.u32 %v5545_v49, 16 }
  0x9b   : > { %v1549_v35 = vld [vmem:[#allocation2 + $0x44] sm:$0x1] }
  0x9c   : > { %v5640_v26 = vor.u32 %v1762_v7, %v1758_v4  ;;  %v1693_v9 = vunpack.c.l.b16 %v1549_v35  ;;  %v1775_v35 = vor.u32 %v1774_v28, %v1770_v59 }
  0x9e   : > { %v1709_v8 = vpack.c.b16 %v1693_v9, %v1693_v9 }
  0x9f   : > { %2658 = vmatmul.bf16.gmra.mxu3 %v5580_v15  ;;  %v1178_v15 = vsel %vm1142_vm3, %v1173_v10, %v1177_v39  ;;  %v4653_v10 = vld [vmem:[%s6223_s3 + $0x1e8] sm:$0xff] }
  0xa0   : > { %v4613_v39 = vld [vmem:[%s6223_s3 + $0xa8] sm:$0xff]  ;;  %3725 = vmatpush.bf16.msra.mxu3 %v4653_v10  ;;  %v1550_v10 = vld [vmem:[#allocation2 + $0x50] sm:$0x1] }
  0xa1   : > { %2752 = vmatmul.bf16.gmra.mxu0 %v1178_v15  ;;  %2825 = vmatpush.bf16.msra.mxu1 %v4613_v39  ;;  %v1987_v15 = vrot.slane %v1708_v57, 1  ;;  %v687_v57 = vsel %vm5265_vm2, %v5420_v14, 0  ;;  %v5674_v39 = vld [vmem:[#allocation2 + $0x3c] sm:$0xff]   ;;  %v1694_v9 = vunpack.c.l.b16 %v1550_v10 }
  0xa2   : > { %v752_v12 = vunpack.c.l.b16 %v687_v57  ;;  %v5676_v14 = vld [vmem:[#allocation2 + $0x3c] sm:$0xf0]  ;;  %v1786_v57 = vrot.slane %v1784_v47, 1 }
  0xa3   : > { %v1988_v48 = vsel %vm1399_vm4, %v1986_v52, %v1987_v15  ;;  %6237 = vst [vmem:[#allocation5_spill] sm:$0xff] %v5676_v14  ;;  %v1990_v52 = vrot.slane %v1709_v8, 1  ;;  %v4612_v47 = vld [vmem:[%s6223_s3 + $0xa0] sm:$0xff] }
  0xa4   : > { %v802_v32 = vpack.c.b16 %v752_v12, %v752_v12  ;;  %v1206_v12 = vshll.u32 %v5674_v39, 16 }
  0xa5   : > { %2341 = vmatmul.bf16.gmra.mxu1 %v1756_v42  ;;  %v4661_v42 = vld [vmem:[%s6223_s3 + $0x228] sm:$0xff] }
  0xa6   : > { %3814 = vmatpush.bf16.msra.mxu0 %v4661_v42  ;;  %903 = vst [vmem:[#allocation2 + $0x5c] sm:$0x1] %v802_v32  ;;  %2826 = vmatpush.bf16.msra.mxu1 %v4612_v47  ;;  %v1794_v47 = vshrl.u32 %v5478_v2, 16 }
  0xaa   : > { %2430 = vmatmul.bf16.gmra.mxu2 %v1985_v18  ;;  %v1190_v18 = vsel %vm1142_vm3, %v1185_v43, %v1189_v45 }
  0xaf   : > { %2663 = vmatmul.bf16.gmra.mxu3 %v4919_v0  ;;  %v1768_v0 = vsel %vm1142_vm3, %v5640_v26, %v1767_v31  ;;  %v1777_v31 = vshll.u32 %v1709_v8, 16  ;;  %v688_v8 = vsel %vm5265_vm2, %v5505_v51, 0  ;;  %v1204_v51 = vshrl.u32 %v5674_v39, 16 }
  0xb1   : > { %2757 = vmatmul.bf16.gmra.mxu0 %v1190_v18  ;;  %v1779_v62 = vrot.slane %v1777_v31, 1  ;;  %v1710_v18 = vpack.c.b16 %v1694_v9, %v1694_v9  ;;  %v1551_v9 = vld [vmem:[#allocation2 + $0x5c] sm:$0x1] }
  0xb2   : > { %v5659_v4 = vpop.f32.mrf.mxu0 }
  0xb3   : > { %v1780_v45 = vsel %vm1142_vm3, %v1775_v35, %v1779_v62  ;;  %v4965_v35 = vld [vmem:[#allocation2 + $0x48] sm:$0xe]  ;;  %v1787_v62 = vor.u32 %v1786_v57, %v1782_v38  ;;  %v1695_v57 = vunpack.c.l.b16 %v1551_v9  ;;  %v689_v9 = vsel %vm5265_vm2, %v5271_v24, 0 }
  0xb4   : > { %v5661_v7 = vpop.f32.mrf.mxu1 }
  0xb5   : > { %2346 = vmatmul.bf16.gmra.mxu1 %v1768_v0  ;;  %v1201_v0 = vrot.slane %v1199_v34, 1  ;;  %v755_v34 = vunpack.c.l.b16 %v688_v8  ;;  %v972_v8 = vld [vmem:[#allocation2 + $0x50] sm:$0x1] }
  0xb7   : > { %v1202_v15 = vsel %vm1142_vm3, %v5640_v26, %v1201_v0  ;;  %v1789_v26 = vshll.u32 %v1710_v18, 16  ;;  %v805_v41 = vpack.c.b16 %v755_v34, %v755_v34  ;;  %v1208_v0 = vrot.slane %v1206_v12, 1 }
  0xb8   : > { %v1993_v12 = vrot.slane %v1710_v18, 1 }
  0xb9   : > { %v1791_v10 = vrot.slane %v1789_v26, 1  ;;  %906 = vst [vmem:[#allocation2 + $0x68] sm:$0x1] %v805_v41  ;;  %v1116_v41 = vunpack.c.l.b16 %v972_v8 }
  0xba   : > { %2435 = vmatmul.bf16.gmra.mxu2 %v1988_v48  ;;  %v5678_v42 = vpop.f32.mrf.mxu0  ;;  %v1991_v48 = vsel %vm1399_vm4, %v1989_v50, %v1990_v52  ;;  %v4966_v50 = vor.u32 %v4965_v35, %v4964_v25  ;;  %v4644_v52 = vld [vmem:[%s6223_s3 + $0x1a0] sm:$0xff] }
  0xbb   : > { %3637 = vmatpush.bf16.msra.mxu2 %v4644_v52 }
  0xbc   : > { %v5680_v46 = vpop.f32.mrf.mxu1  ;;  %v5682_v43 = vpop.f32.mrf.mxu2  ;;  %v1992_v26 = vrot.slane %v4966_v50, 1 }
  0xbe   : > { %v5688_v11 = vpop.f32.mrf.mxu3 }
  0xbf   : > { %2668 = vmatmul.bf16.gmra.mxu3 %v5625_v23  ;;  %v971_v23 = vld [vmem:[#allocation2 + $0x44] sm:$0x1]  ;;  %6238 = vst [vmem:[#allocation6_spill] sm:$0xff] %v5688_v11 }
  0xc0   : > { %v1115_v58 = vunpack.c.l.b16 %v971_v23  ;;  %v4652_v23 = vld [vmem:[%s6223_s3 + $0x1e0] sm:$0xff] }
  0xc1   : > { %2762 = vmatmul.bf16.gmra.mxu0 %v1202_v15  ;;  %3726 = vmatpush.bf16.msra.mxu3 %v4652_v23  ;;  %v1711_v23 = vpack.c.b16 %v1695_v57, %v1695_v57 }
  0xc2   : > { %v5695_v59 = vpop.f32.mrf.mxu0  ;;  %v5699_v31 = vpack.c.b16 %v1115_v58, %v1115_v58  ;;  %v1792_v58 = vsel %vm1142_vm3, %v1787_v62, %v1791_v10  ;;  %v1796_v62 = vshll.u32 %v5478_v2, 16  ;;  %v5730_v10 = vld [vmem:[#allocation2 + $0x48] sm:$0xff]  }
  0xc3   : > { %v1218_v18 = vshll.u32 %v5730_v10, 16  ;;  %v1216_v57 = vshrl.u32 %v5730_v10, 16 }
  0xc4   : > { %6239 = vst [vmem:[#allocation7_spill] sm:$0xff] %v5699_v31  ;;  %v5702_v32 = vpop.f32.mrf.mxu2 }
  0xc5   : > { %2351 = vmatmul.bf16.gmra.mxu1 %v1780_v45  ;;  %v1211_v45 = vshll.u32 %v5699_v31, 16  ;;  %v1220_v8 = vrot.slane %v1218_v18, 1 }
  0xc6   : > { %v5716_v15 = vpop.f32.mrf.mxu3 }
  0xc7   : > { %6240 = vst [vmem:[#allocation8_spill] sm:$0xff] %v5716_v15  ;;  %v1213_v38 = vrot.slane %v1211_v45, 1  ;;  %v5734_v45 = vpack.c.b16 %v1116_v41, %v1116_v41  ;;  %v1221_v18 = vor.u32 %v1220_v8, %v1216_v57 }
  0xc8   : > { %v5697_v28 = vpop.f32.mrf.mxu1 }
  0xc9   : > { %6241 = vst [vmem:[#allocation9_spill] sm:$0xff] %v5734_v45 }
  0xca   : > { %2440 = vmatmul.bf16.gmra.mxu2 %v1991_v48  ;;  %v1209_v48 = vor.u32 %v1208_v0, %v1204_v51  ;;  %v5722_v34 = vpop.f32.mrf.mxu0  ;;  %v1994_v51 = vsel %vm1399_vm4, %v1992_v26, %v1993_v12  ;;  %v5076_v0 = vld [vmem:[#allocation2 + $0x54] sm:$0xe]  ;;  %v1223_v26 = vshll.u32 %v5734_v45, 16 }
  0xcb   : > { %v5077_v2 = vor.u32 %v5076_v0, %v5480_v6  ;;  %v1808_v6 = vshll.u32 %v5568_v40, 16 }
  0xcc   : > { %v1214_v52 = vsel %vm1142_vm3, %v1209_v48, %v1213_v38  ;;  %v758_v48 = vunpack.c.l.b16 %v689_v9  ;;  %v5752_v9 = vld [vmem:[#allocation2 + $0x54] sm:$0xff]   ;;  %v1225_v45 = vrot.slane %v1223_v26, 1 }
  0xcd   : > { %v1995_v31 = vrot.slane %v5077_v2, 1  ;;  %v1810_v2 = vrot.slane %v1808_v6, 1 }
  0xce   : > { %v808_v38 = vpack.c.b16 %v758_v48, %v758_v48  ;;  %v5754_v48 = vld [vmem:[#allocation2 + $0x54] sm:$0xf0]  ;;  %v1226_v0 = vsel %vm1142_vm3, %v1221_v18, %v1225_v45  ;;  %v4967_v45 = vld [vmem:[#allocation2 + $0x60] sm:$0xf0]  ;;  %v4968_v18 = vld [vmem:[#allocation2 + $0x60] sm:$0xe] }
  0xcf   : > { %2673 = vmatmul.bf16.gmra.mxu3 %v5545_v49  ;;  %v4660_v49 = vld [vmem:[%s6223_s3 + $0x220] sm:$0xff]  ;;  %6243 = vst [vmem:[#allocation11_spill] sm:$0xff] %v5754_v48  ;;  %v1228_v48 = vshrl.u32 %v5752_v9, 16 }
  0xd0   : > { %3815 = vmatpush.bf16.msra.mxu0 %v4660_v49  ;;  %v5724_v25 = vpop.f32.mrf.mxu1  ;;  %v1798_v49 = vrot.slane %v1796_v62, 1  ;;  %909 = vst [vmem:[#allocation2 + $0x74] sm:$0x1] %v808_v38  ;;  %v1552_v62 = vld [vmem:[#allocation2 + $0x68] sm:$0x1] }
  0xd1   : > { %v5726_v35 = vpop.f32.mrf.mxu2  ;;  %2767 = vmatmul.bf16.gmra.mxu0 %v1214_v52  ;;  %v1696_v15 = vunpack.c.l.b16 %v1552_v62 }
  0xd2   : > { %v1799_v52 = vor.u32 %v1798_v49, %v1794_v47  ;;  %v1996_v47 = vrot.slane %v1711_v23, 1  ;;  %v973_v49 = vld [vmem:[#allocation2 + $0x5c] sm:$0x1] }
  0xd3   : > { %v1712_v38 = vpack.c.b16 %v1696_v15, %v1696_v15  ;;  %v1117_v57 = vunpack.c.l.b16 %v973_v49  ;;  %v1230_v15 = vshll.u32 %v5752_v9, 16 }
  0xd4   : > { %v1997_v8 = vsel %vm1399_vm4, %v1995_v31, %v1996_v47 }
  0xd5   : > { %2356 = vmatmul.bf16.gmra.mxu1 %v1792_v58  ;;  %v5739_v50 = vpop.f32.mrf.mxu3  ;;  %v1801_v58 = vshll.u32 %v1711_v23, 16  ;;  %v5744_v12 = vpop.f32.mrf.mxu0 }
  0xd6   : > { %6242 = vst [vmem:[#allocation10_spill] sm:$0xff] %v5739_v50 }
  0xd7   : > { %v1803_v24 = vrot.slane %v1801_v58, 1 }
  0xd9   : > { %v1804_v50 = vsel %vm1142_vm3, %v1799_v52, %v1803_v24  ;;  %v1806_v24 = vshrl.u32 %v5568_v40, 16  ;;  %v1232_v40 = vrot.slane %v1230_v15, 1 }
  0xda   : > { %2445 = vmatmul.bf16.gmra.mxu2 %v1994_v51  ;;  %v5749_v51 = vpop.f32.mrf.mxu2 }
  0xdb   : > { %v1811_v47 = vor.u32 %v1810_v2, %v1806_v24  ;;  %v1233_v15 = vor.u32 %v1232_v40, %v1228_v48  ;;  %v1820_v48 = vshll.u32 %v5337_v53, 16  ;;  %v5801_v40 = vld [vmem:[#allocation2 + $0x60] sm:$0xff]  }
  0xdd   : > { %v5757_v58 = vpop.f32.mrf.mxu3  ;;  %v5765_v52 = vpop.f32.mrf.mxu0 }
  0xde   : > { %v5746_v41 = vpop.f32.mrf.mxu1  ;;  %6244 = vst [vmem:[#allocation12_spill] sm:$0xff] %v5757_v58  ;;  %v4611_v58 = vld [vmem:[%s6223_s3 + $0x98] sm:$0xff] }
  0xdf   : > { %2678 = vmatmul.bf16.gmra.mxu3 %v5674_v39  ;;  %v690_v39 = vsel %vm5265_vm2, %v5350_v5, 0  ;;  %v1813_v5 = vshll.u32 %v1712_v38, 16  ;;  %2827 = vmatpush.bf16.msra.mxu1 %v4611_v58  ;;  %v1822_v58 = vrot.slane %v1820_v48, 1  ;;  %v5823_v48 = vld [vmem:[#allocation2 + $0x6c] sm:$0xff]  }
  0xe0   : > { %v761_v26 = vunpack.c.l.b16 %v690_v39 }
  0xe1   : > { %2772 = vmatmul.bf16.gmra.mxu0 %v1226_v0  ;;  %v1815_v39 = vrot.slane %v1813_v5, 1  ;;  %v4969_v0 = vor.u32 %v4968_v18, %v4967_v45  ;;  %v974_v18 = vld [vmem:[#allocation2 + $0x68] sm:$0x1] }
  0xe2   : > { %v811_v31 = vpack.c.b16 %v761_v26, %v761_v26  ;;  %v4651_v26 = vld [vmem:[%s6223_s3 + $0x1d8] sm:$0xff] }
  0xe3   : > { %3727 = vmatpush.bf16.msra.mxu3 %v4651_v26  ;;  %v1816_v5 = vsel %vm1142_vm3, %v1811_v47, %v1815_v39  ;;  %v1118_v26 = vunpack.c.l.b16 %v974_v18 }
  0xe4   : > { %912 = vst [vmem:[#allocation2 + $0x80] sm:$0x1] %v811_v31 }
  0xe5   : > { %2361 = vmatmul.bf16.gmra.mxu1 %v1804_v50  ;;  %v5772_v50 = vpack.c.b16 %v1117_v57, %v1117_v57  ;;  %v1553_v57 = vld [vmem:[#allocation2 + $0x74] sm:$0x1]  ;;  %v5807_v11 = vpack.c.b16 %v1118_v26, %v1118_v26 }
  0xe6   : > { %v5767_v23 = vpop.f32.mrf.mxu1  ;;  %v1697_v45 = vunpack.c.l.b16 %v1553_v57  ;;  %v1242_v57 = vshll.u32 %v5801_v40, 16 }
  0xe7   : > { %v5770_v62 = vpop.f32.mrf.mxu2  ;;  %6246 = vst [vmem:[#allocation14_spill] sm:$0xff] %v5772_v50  ;;  %v1235_v6 = vshll.u32 %v5772_v50, 16  ;;  %v1998_v50 = vrot.slane %v4969_v0, 1  ;;  %v5079_v0 = vld [vmem:[#allocation2 + $0x6c] sm:$0xe] }
  0xe8   : > { %6245 = vst [vmem:[#allocation13_spill] sm:$0xff] %v5770_v62  ;;  %v1713_v39 = vpack.c.b16 %v1697_v45, %v1697_v45  ;;  %v1244_v26 = vrot.slane %v1242_v57, 1 }
  0xe9   : > { %6250 = vst [vmem:[#allocation18_spill] sm:$0xff] %v5807_v11 }
  0xea   : > { %2450 = vmatmul.bf16.gmra.mxu2 %v1997_v8  ;;  %v4643_v8 = vld [vmem:[%s6223_s3 + $0x198] sm:$0xff]  ;;  %v1825_v45 = vshll.u32 %v1713_v39, 16 }
  0xeb   : > { %v5775_v49 = vpop.f32.mrf.mxu3  ;;  %3638 = vmatpush.bf16.msra.mxu2 %v4643_v8  ;;  %v4659_v8 = vld [vmem:[%s6223_s3 + $0x218] sm:$0xff] }
  0xec   : > { %6247 = vst [vmem:[#allocation15_spill] sm:$0xff] %v5775_v49  ;;  %v5786_v24 = vpop.f32.mrf.mxu0  ;;  %v1999_v49 = vrot.slane %v1712_v38, 1  ;;  %3816 = vmatpush.bf16.msra.mxu0 %v4659_v8  ;;  %v1240_v8 = vshrl.u32 %v5801_v40, 16 }
  0xee   : > { %v2000_v38 = vsel %vm1399_vm4, %v1998_v50, %v1999_v49  ;;  %v1245_v21 = vor.u32 %v1244_v26, %v1240_v8 }
  0xef   : > { %2683 = vmatmul.bf16.gmra.mxu3 %v5730_v10  ;;  %v1237_v10 = vrot.slane %v1235_v6, 1  ;;  %v5791_v31 = vpop.f32.mrf.mxu2 }
  0xf0   : > { %6248 = vst [vmem:[#allocation16_spill] sm:$0xff] %v5791_v31 }
  0xf1   : > { %v1238_v47 = vsel %vm1142_vm3, %v1233_v15, %v1237_v10  ;;  %v1818_v10 = vshrl.u32 %v5337_v53, 16  ;;  %v1554_v53 = vld [vmem:[#allocation2 + $0x80] sm:$0x1] }
  0xf2   : > { %v5788_v2 = vpop.f32.mrf.mxu1  ;;  %2777 = vmatmul.bf16.gmra.mxu0 %v1238_v47  ;;  %v1247_v47 = vshll.u32 %v5807_v11, 16 }
  0xf3   : > { %v5804_v6 = vpop.f32.mrf.mxu3  ;;  %v1823_v14 = vor.u32 %v1822_v58, %v1818_v10  ;;  %v2002_v58 = vrot.slane %v1713_v39, 1 }
  0xf4   : > { %6249 = vst [vmem:[#allocation17_spill] sm:$0xff] %v5804_v6  ;;  %v5815_v49 = vpop.f32.mrf.mxu0 }
  0xf5   : > { %2366 = vmatmul.bf16.gmra.mxu1 %v1816_v5  ;;  %v691_v5 = vsel %vm5265_vm2, %v5454_v56, 0  ;;  %v1827_v56 = vrot.slane %v1825_v45, 1  ;;  %v975_v45 = vld [vmem:[#allocation2 + $0x74] sm:$0x1] }
  0xf6   : > { %v764_v50 = vunpack.c.l.b16 %v691_v5  ;;  %v5825_v5 = vld [vmem:[#allocation2 + $0x6c] sm:$0xf0] }
  0xf7   : > { %6252 = vst [vmem:[#allocation20_spill] sm:$0xff] %v5825_v5  ;;  %v1828_v11 = vsel %vm1142_vm3, %v1823_v14, %v1827_v56 }
  0xf8   : > { %v814_v6 = vpack.c.b16 %v764_v50, %v764_v50  ;;  %v1698_v50 = vunpack.c.l.b16 %v1554_v53 }
  0xfa   : > { %2455 = vmatmul.bf16.gmra.mxu2 %v2000_v38  ;;  %v5812_v15 = vpop.f32.mrf.mxu1  ;;  %v5080_v38 = vor.u32 %v5079_v0, %v5339_v54  ;;  %915 = vst [vmem:[#allocation2 + $0x8c] sm:$0x1] %v814_v6  ;;  %v692_v54 = vsel %vm5265_vm2, %v5533_v33, 0  ;;  %v1714_v26 = vpack.c.b16 %v1698_v50, %v1698_v50  ;;  %v1254_v33 = vshll.u32 %v5823_v48, 16 }
  0xfb   : > { %v767_v56 = vunpack.c.l.b16 %v692_v54 }
  0xfc   : > { %v2001_v10 = vrot.slane %v5080_v38, 1 }
  0xfd   : > { %v5817_v18 = vpop.f32.mrf.mxu2  ;;  %v817_v50 = vpack.c.b16 %v767_v56, %v767_v56 }
  0xfe   : > { %6251 = vst [vmem:[#allocation19_spill] sm:$0xff] %v5817_v18  ;;  %v1249_v18 = vrot.slane %v1247_v47, 1  ;;  %v2743_v6 = vpop.f32.mrf.mxu0  ;;  %v1119_v47 = vunpack.c.l.b16 %v975_v45  ;;  %v2003_v14 = vsel %vm1399_vm4, %v2001_v10, %v2002_v58  ;;  %v1252_v58 = vshrl.u32 %v5823_v48, 16 }
  0xff   : > { %2688 = vmatmul.bf16.gmra.mxu3 %v5752_v9  ;;  %v5063_v9 = vld [vmem:[#allocation2 + $0x78] sm:$0xff]   ;;  %918 = vst [vmem:[#allocation2 + $0x98] sm:$0x1] %v817_v50  ;;  %v2005_v50 = vrot.slane %v1714_v26, 1 }
 0x100   : > { %v1832_v30 = vshll.u32 %v5063_v9, 16  ;;  %v1250_v8 = vsel %vm1142_vm3, %v1245_v21, %v1249_v18  ;;  %v1830_v38 = vshrl.u32 %v5063_v9, 16  ;;  %v4970_v21 = vld [vmem:[#allocation2 + $0x78] sm:$0xf0]  ;;  %v4971_v18 = vld [vmem:[#allocation2 + $0x78] sm:$0xe] }
 0x102   : > { %v5827_v31 = vpop.f32.mrf.mxu3  ;;  %v2332_v57 = vpop.f32.mrf.mxu1  ;;  %v1834_v39 = vrot.slane %v1832_v30, 1  ;;  %2782 = vmatmul.bf16.gmra.mxu0 %v1250_v8  ;;  %v1256_v8 = vrot.slane %v1254_v33, 1 }
 0x103   : > { %6253 = vst [vmem:[#allocation21_spill] sm:$0xff] %v5827_v31  ;;  %v1837_v31 = vshll.u32 %v1714_v26, 16 }
 0x104   : > { %v1835_v45 = vor.u32 %v1834_v39, %v1830_v38  ;;  %v1257_v39 = vor.u32 %v1256_v8, %v1252_v58 }
 0x105   : > { %v5833_v0 = vpop.f32.mrf.mxu2  ;;  %2371 = vmatmul.bf16.gmra.mxu1 %v1828_v11  ;;  %v2333_v11 = vadd.f32 %v2332_v57, %v5659_v4  ;;  %v1839_v54 = vrot.slane %v1837_v31, 1  ;;  %v4642_v4 = vld [vmem:[%s6223_s3 + $0x190] sm:$0xff] }
 0x106   : > { %6254 = vst [vmem:[#allocation22_spill] sm:$0xff] %v5833_v0  ;;  %v5840_v0 = vpack.c.b16 %v1119_v47, %v1119_v47  ;;  %v2745_v9 = vpop.f32.mrf.mxu0  ;;  %v4972_v47 = vor.u32 %v4971_v18, %v4970_v21  ;;  %v4650_v57 = vld [vmem:[%s6223_s3 + $0x1d0] sm:$0xff]  ;;  %3639 = vmatpush.bf16.msra.mxu2 %v4642_v4 }
 0x107   : > { %3728 = vmatpush.bf16.msra.mxu3 %v4650_v57  ;;  %v1840_v38 = vsel %vm1142_vm3, %v1835_v45, %v1839_v54  ;;  %v4658_v4 = vld [vmem:[%s6223_s3 + $0x210] sm:$0xff] }
 0x108   : > { %6256 = vst [vmem:[#allocation24_spill] sm:$0xff] %v5840_v0  ;;  %v2004_v18 = vrot.slane %v4972_v47, 1  ;;  %3817 = vmatpush.bf16.msra.mxu0 %v4658_v4 }
 0x10a   : > { %v5837_v53 = vpop.f32.mrf.mxu3  ;;  %2460 = vmatmul.bf16.gmra.mxu2 %v2003_v14  ;;  %v2334_v5 = vpop.f32.mrf.mxu1  ;;  %v1259_v14 = vshll.u32 %v5840_v0, 16  ;;  %v2006_v47 = vsel %vm1399_vm4, %v2004_v18, %v2005_v50 }
 0x10b   : > { %6255 = vst [vmem:[#allocation23_spill] sm:$0xff] %v5837_v53  ;;  %v1555_v53 = vld [vmem:[#allocation2 + $0x8c] sm:$0x1]  ;;  %v2335_v57 = vadd.f32 %v2334_v5, %v5678_v42 }
 0x10c   : > { %v1261_v33 = vrot.slane %v1259_v14, 1  ;;  %v5864_v14 = vld [vmem:[#allocation2 + $0x78] sm:$0xff]  }
 0x10d   : > { %v2421_v10 = vpop.f32.mrf.mxu2  ;;  %v1266_v42 = vshll.u32 %v5864_v14, 16 }
 0x10e   : > { %v2422_v30 = vadd.f32 %v2421_v10, %v2333_v11  ;;  %v1699_v11 = vunpack.c.l.b16 %v1555_v53  ;;  %v4610_v10 = vld [vmem:[%s6223_s3 + $0x90] sm:$0xff]  ;;  %v1844_v53 = vshll.u32 %v5495_v36, 16  ;;  %v2748_v26 = vpop.f32.mrf.mxu0  ;;  %v1262_v54 = vsel %vm1142_vm3, %v1257_v39, %v1261_v33 }
 0x10f   : > { %2693 = vmatmul.bf16.gmra.mxu3 %v5801_v40  ;;  %v976_v40 = vld [vmem:[#allocation2 + $0x80] sm:$0x1]  ;;  %2828 = vmatpush.bf16.msra.mxu1 %v4610_v10  ;;  %v1842_v39 = vshrl.u32 %v5495_v36, 16  ;;  %v1264_v10 = vshrl.u32 %v5864_v14, 16  ;;  %v1268_v4 = vrot.slane %v1266_v42, 1 }
 0x110   : > { %v1120_v45 = vunpack.c.l.b16 %v976_v40  ;;  %v1715_v8 = vpack.c.b16 %v1699_v11, %v1699_v11  ;;  %v1846_v33 = vrot.slane %v1844_v53, 1  ;;  %v1556_v53 = vld [vmem:[#allocation2 + $0x98] sm:$0x1] }
 0x112   : > { %v2654_v56 = vpop.f32.mrf.mxu3  ;;  %v2337_v31 = vpop.f32.mrf.mxu1  ;;  %2787 = vmatmul.bf16.gmra.mxu0 %v1262_v54  ;;  %v5868_v5 = vpack.c.b16 %v1120_v45, %v1120_v45  ;;  %v1849_v11 = vshll.u32 %v1715_v8, 16 }
 0x113   : > { %v2655_v21 = vadd.f32 %v2654_v56, %v2422_v30  ;;  %v5082_v56 = vld [vmem:[#allocation2 + $0x84] sm:$0xe] }
 0x114   : > { %v5083_v36 = vor.u32 %v5082_v56, %v5497_v3  ;;  %v694_v3 = vsel %vm5265_vm2, %v5392_v63, 0  ;;  %v1856_v56 = vshll.u32 %v5572_v17, 16 }
 0x115   : > { %v2423_v0 = vpop.f32.mrf.mxu2  ;;  %2376 = vmatmul.bf16.gmra.mxu1 %v1840_v38  ;;  %v5860_v58 = vadd.f32 %v2743_v6, %v2655_v21  ;;  %v693_v6 = vsel %vm5265_vm2, %v5283_v37, 0  ;;  %v2338_v21 = vadd.f32 %v2337_v31, %v5695_v59  ;;  %v5881_v59 = vld [vmem:[#allocation2 + $0x84] sm:$0xff]  }
 0x116   : > { %v2424_v30 = vadd.f32 %v2423_v0, %v2335_v57  ;;  %v770_v18 = vunpack.c.l.b16 %v693_v6  ;;  %v1271_v57 = vshll.u32 %v5868_v5, 16  ;;  %v2750_v54 = vpop.f32.mrf.mxu0  ;;  %v5883_v31 = vld [vmem:[#allocation2 + $0x84] sm:$0xf0] }
 0x117   : > { %6257 = vst [vmem:[#allocation25_spill] sm:$0xff] %v5860_v58  ;;  %v1851_v58 = vrot.slane %v1849_v11, 1  ;;  %v2008_v11 = vrot.slane %v1715_v8, 1 }
 0x118   : > { %v820_v62 = vpack.c.b16 %v770_v18, %v770_v18  ;;  %v1273_v42 = vrot.slane %v1271_v57, 1 }
 0x11a   : > { %v2656_v0 = vpop.f32.mrf.mxu3  ;;  %2465 = vmatmul.bf16.gmra.mxu2 %v2006_v47  ;;  %v2339_v38 = vpop.f32.mrf.mxu1  ;;  %v1847_v47 = vor.u32 %v1846_v33, %v1842_v39  ;;  %921 = vst [vmem:[#allocation2 + $0xa4] sm:$0x1] %v820_v62  ;;  %v2007_v33 = vrot.slane %v5083_v36, 1 }
 0x11b   : > { %v2657_v40 = vadd.f32 %v2656_v0, %v2424_v30  ;;  %v1269_v30 = vor.u32 %v1268_v4, %v1264_v10 }
 0x11c   : > { %v1852_v0 = vsel %vm1142_vm3, %v1847_v47, %v1851_v58  ;;  %v2009_v57 = vsel %vm1399_vm4, %v2007_v33, %v2008_v11  ;;  %v1276_v33 = vshrl.u32 %v5881_v59, 16 }
 0x11d   : > { %v2426_v50 = vpop.f32.mrf.mxu2  ;;  %v5877_v45 = vadd.f32 %v2745_v9, %v2657_v40  ;;  %v1700_v40 = vunpack.c.l.b16 %v1556_v53  ;;  %v1274_v18 = vsel %vm1142_vm3, %v1269_v30, %v1273_v42 }
 0x11e   : > { %v2427_v37 = vadd.f32 %v2426_v50, %v2338_v21  ;;  %v977_v21 = vld [vmem:[#allocation2 + $0x8c] sm:$0x1]  ;;  %v2753_v10 = vpop.f32.mrf.mxu0 }
 0x11f   : > { %2698 = vmatmul.bf16.gmra.mxu3 %v5823_v48  ;;  %v2340_v48 = vadd.f32 %v2339_v38, %v5722_v34  ;;  %v5894_v4 = vpack.c.b16 %v1700_v40, %v1700_v40  ;;  %v1121_v8 = vunpack.c.l.b16 %v977_v21  ;;  %v773_v34 = vunpack.c.l.b16 %v694_v3  ;;  %v4974_v40 = vld [vmem:[#allocation2 + $0x90] sm:$0xe] }
 0x120   : > { %v1854_v38 = vshrl.u32 %v5572_v17, 16 }
 0x121   : > { %v1861_v36 = vshll.u32 %v5894_v4, 16  ;;  %v5900_v53 = vpack.c.b16 %v1121_v8, %v1121_v8  ;;  %v823_v11 = vpack.c.b16 %v773_v34, %v773_v34 }
 0x122   : > { %v2659_v6 = vpop.f32.mrf.mxu3  ;;  %v2342_v9 = vpop.f32.mrf.mxu1  ;;  %2792 = vmatmul.bf16.gmra.mxu0 %v1274_v18 }
 0x123   : > { %v2660_v39 = vadd.f32 %v2659_v6, %v2427_v37  ;;  %v1858_v37 = vrot.slane %v1856_v56, 1  ;;  %v2343_v6 = vadd.f32 %v2342_v9, %v5744_v12  ;;  %v1863_v56 = vrot.slane %v1861_v36, 1  ;;  %v4641_v12 = vld [vmem:[%s6223_s3 + $0x188] sm:$0xff]  ;;  %924 = vst [vmem:[#allocation2 + $0xb0] sm:$0x1] %v823_v11 }
 0x124   : > { %v1283_v18 = vshll.u32 %v5900_v53, 16  ;;  %v4649_v9 = vld [vmem:[%s6223_s3 + $0x1c8] sm:$0xff]  ;;  %3640 = vmatpush.bf16.msra.mxu2 %v4641_v12  ;;  %v1866_v12 = vshrl.u32 %v5342_v60, 16 }
 0x125   : > { %v2428_v62 = vpop.f32.mrf.mxu2  ;;  %2381 = vmatmul.bf16.gmra.mxu1 %v1852_v0  ;;  %v5892_v50 = vadd.f32 %v2748_v26, %v2660_v39  ;;  %v1278_v26 = vshll.u32 %v5881_v59, 16  ;;  %v4973_v0 = vld [vmem:[#allocation2 + $0x90] sm:$0xf0]  ;;  %v1859_v39 = vor.u32 %v1858_v37, %v1854_v38  ;;  %3729 = vmatpush.bf16.msra.mxu3 %v4649_v9  ;;  %v978_v37 = vld [vmem:[#allocation2 + $0x98] sm:$0x1] }
 0x126   : > { %v2429_v58 = vadd.f32 %v2428_v62, %v2340_v48  ;;  %v2755_v3 = vpop.f32.mrf.mxu0  ;;  %v1285_v38 = vrot.slane %v1283_v18, 1 }
 0x127   : > { %v1280_v62 = vrot.slane %v1278_v26, 1  ;;  %v2011_v26 = vrot.slane %v5894_v4, 1 }
 0x129   : > { %v1281_v34 = vor.u32 %v1280_v62, %v1276_v33  ;;  %v5085_v62 = vld [vmem:[#allocation2 + $0x9c] sm:$0xe] }
 0x12a   : > { %v2661_v63 = vpop.f32.mrf.mxu3  ;;  %2470 = vmatmul.bf16.gmra.mxu2 %v2009_v57  ;;  %v2344_v47 = vpop.f32.mrf.mxu1  ;;  %v1864_v57 = vsel %vm1142_vm3, %v1859_v39, %v1863_v56 }
 0x12b   : > { %v2662_v30 = vadd.f32 %v2661_v63, %v2429_v58  ;;  %v2345_v42 = vadd.f32 %v2344_v47, %v5765_v52  ;;  %v4975_v52 = vor.u32 %v4974_v40, %v4973_v0  ;;  %v1557_v58 = vld [vmem:[#allocation2 + $0xa4] sm:$0x1]  ;;  %v1122_v40 = vunpack.c.l.b16 %v978_v37 }
 0x12c   : > { %v1286_v4 = vsel %vm1142_vm3, %v1281_v34, %v1285_v38 }
 0x12d   : > { %v2431_v17 = vpop.f32.mrf.mxu2  ;;  %v5905_v21 = vadd.f32 %v2750_v54, %v2662_v30  ;;  %v2010_v36 = vrot.slane %v4975_v52, 1  ;;  %v4609_v30 = vld [vmem:[%s6223_s3 + $0x88] sm:$0xff]  ;;  %v5932_v52 = vpack.c.b16 %v1122_v40, %v1122_v40  ;;  %v1558_v40 = vld [vmem:[#allocation2 + $0xb0] sm:$0x1] }
 0x12e   : > { %v2432_v48 = vadd.f32 %v2431_v17, %v2343_v6  ;;  %v4657_v6 = vld [vmem:[%s6223_s3 + $0x208] sm:$0xff]  ;;  %v1868_v17 = vshll.u32 %v5342_v60, 16  ;;  %v2758_v33 = vpop.f32.mrf.mxu0  ;;  %2829 = vmatpush.bf16.msra.mxu1 %v4609_v30  ;;  %v5086_v60 = vor.u32 %v5085_v62, %v5344_v61  ;;  %v696_v61 = vsel %vm5265_vm2, %v5547_v55, 0 }
 0x12f   : > { %2703 = vmatmul.bf16.gmra.mxu3 %v5864_v14  ;;  %v1701_v14 = vunpack.c.l.b16 %v1557_v58  ;;  %3818 = vmatpush.bf16.msra.mxu0 %v4657_v6  ;;  %v2012_v56 = vsel %vm1399_vm4, %v2010_v36, %v2011_v26 }
 0x130   : > { %v1870_v9 = vrot.slane %v1868_v17, 1  ;;  %v5947_v17 = vld [vmem:[#allocation2 + $0x9c] sm:$0xf0] }
 0x131   : > { %v1717_v11 = vpack.c.b16 %v1701_v14, %v1701_v14 }
 0x132   : > { %v2664_v54 = vpop.f32.mrf.mxu3  ;;  %v2347_v8 = vpop.f32.mrf.mxu1  ;;  %2797 = vmatmul.bf16.gmra.mxu0 %v1286_v4  ;;  %v1871_v30 = vor.u32 %v1870_v9, %v1866_v12  ;;  %v979_v12 = vld [vmem:[#allocation2 + $0xa4] sm:$0x1] }
 0x133   : > { %v2665_v63 = vadd.f32 %v2664_v54, %v2432_v48  ;;  %v2348_v47 = vadd.f32 %v2347_v8, %v5786_v24  ;;  %v5928_v48 = vld [vmem:[#allocation2 + $0x90] sm:$0xff]   ;;  %v1873_v54 = vshll.u32 %v1717_v11, 16 }
 0x134   : > { %v1290_v18 = vshll.u32 %v5928_v48, 16  ;;  %v1288_v14 = vshrl.u32 %v5928_v48, 16 }
 0x135   : > { %v2433_v0 = vpop.f32.mrf.mxu2  ;;  %2386 = vmatmul.bf16.gmra.mxu1 %v1864_v57  ;;  %v5924_v39 = vadd.f32 %v2753_v10, %v2665_v63  ;;  %v695_v10 = vsel %vm5265_vm2, %v5466_v27, 0  ;;  %v1295_v63 = vshll.u32 %v5932_v52, 16  ;;  %v1875_v6 = vrot.slane %v1873_v54, 1 }
 0x136   : > { %v2434_v24 = vadd.f32 %v2433_v0, %v2345_v42  ;;  %v776_v34 = vunpack.c.l.b16 %v695_v10  ;;  %v1292_v37 = vrot.slane %v1290_v18, 1  ;;  %v2760_v26 = vpop.f32.mrf.mxu0  ;;  %v1702_v18 = vunpack.c.l.b16 %v1558_v40  ;;  %v4976_v40 = vld [vmem:[#allocation2 + $0xa8] sm:$0xf0] }
 0x137   : > { %v1297_v4 = vrot.slane %v1295_v63, 1 }
 0x138   : > { %v826_v0 = vpack.c.b16 %v776_v34, %v776_v34 }
 0x13a   : > { %v2666_v42 = vpop.f32.mrf.mxu3  ;;  %2475 = vmatmul.bf16.gmra.mxu2 %v2012_v56  ;;  %v2349_v58 = vpop.f32.mrf.mxu1  ;;  %927 = vst [vmem:[#allocation2 + $0xbc] sm:$0x1] %v826_v0 }
 0x13b   : > { %v2667_v8 = vadd.f32 %v2666_v42, %v2434_v24  ;;  %v2350_v57 = vadd.f32 %v2349_v58, %v5815_v49  ;;  %v5945_v49 = vld [vmem:[#allocation2 + $0x9c] sm:$0xff]   ;;  %v1293_v24 = vor.u32 %v1292_v37, %v1288_v14  ;;  %v2013_v42 = vrot.slane %v5086_v60, 1 }
 0x13c   : > { %v2014_v58 = vrot.slane %v1717_v11, 1  ;;  %v1718_v14 = vpack.c.b16 %v1702_v18, %v1702_v18  ;;  %v1123_v37 = vunpack.c.l.b16 %v979_v12  ;;  %v1302_v0 = vshll.u32 %v5945_v49, 16 }
 0x13d   : > { %v2436_v38 = vpop.f32.mrf.mxu2  ;;  %v5941_v36 = vadd.f32 %v2755_v3, %v2667_v8  ;;  %v1298_v54 = vsel %vm1142_vm3, %v1293_v24, %v1297_v4  ;;  %v4977_v24 = vld [vmem:[#allocation2 + $0xa8] sm:$0xe] }
 0x13e   : > { %v2437_v27 = vadd.f32 %v2436_v38, %v2348_v47  ;;  %v1876_v47 = vsel %vm1142_vm3, %v1871_v30, %v1875_v6  ;;  %v2763_v38 = vpop.f32.mrf.mxu0  ;;  %v2015_v63 = vsel %vm1399_vm4, %v2013_v42, %v2014_v58  ;;  %v779_v30 = vunpack.c.l.b16 %v696_v61 }
 0x13f   : > { %2708 = vmatmul.bf16.gmra.mxu3 %v5881_v59  ;;  %v5064_v59 = vld [vmem:[#allocation2 + $0xa8] sm:$0xff]   ;;  %v1885_v55 = vshll.u32 %v1718_v14, 16  ;;  %v5958_v60 = vpack.c.b16 %v1123_v37, %v1123_v37  ;;  %v4978_v61 = vor.u32 %v4977_v24, %v4976_v40 }
 0x140   : > { %v1880_v9 = vshll.u32 %v5064_v59, 16  ;;  %v1878_v11 = vshrl.u32 %v5064_v59, 16  ;;  %v829_v18 = vpack.c.b16 %v779_v30, %v779_v30  ;;  %v1304_v59 = vrot.slane %v1302_v0, 1  ;;  %v4656_v0 = vld [vmem:[%s6223_s3 + $0x200] sm:$0xff] }
 0x141   : > { %v1887_v12 = vrot.slane %v1885_v55, 1  ;;  %v2016_v30 = vrot.slane %v4978_v61, 1  ;;  %v4608_v55 = vld [vmem:[%s6223_s3 + $0x80] sm:$0xff]  ;;  %3819 = vmatpush.bf16.msra.mxu0 %v4656_v0  ;;  %v1890_v61 = vshrl.u32 %v5527_v16, 16 }
 0x142   : > { %v2669_v56 = vpop.f32.mrf.mxu3  ;;  %v2352_v3 = vpop.f32.mrf.mxu1  ;;  %2802 = vmatmul.bf16.gmra.mxu0 %v1298_v54  ;;  %930 = vst [vmem:[#allocation2 + $0xc8] sm:$0x1] %v829_v18  ;;  %2830 = vmatpush.bf16.msra.mxu1 %v4608_v55 }
 0x143   : > { %v2670_v10 = vadd.f32 %v2669_v56, %v2437_v27  ;;  %v1882_v27 = vrot.slane %v1880_v9, 1  ;;  %v1307_v9 = vshll.u32 %v5958_v60, 16 }
 0x145   : > { %v2438_v62 = vpop.f32.mrf.mxu2  ;;  %2391 = vmatmul.bf16.gmra.mxu1 %v1876_v47  ;;  %v5954_v8 = vadd.f32 %v2758_v33, %v2670_v10  ;;  %v1883_v4 = vor.u32 %v1882_v27, %v1878_v11  ;;  %v1300_v47 = vshrl.u32 %v5945_v49, 16  ;;  %v980_v11 = vld [vmem:[#allocation2 + $0xb0] sm:$0x1] }
 0x146   : > { %v2439_v34 = vadd.f32 %v2438_v62, %v2350_v57  ;;  %v2353_v57 = vadd.f32 %v2352_v3, %v5661_v7  ;;  %v2765_v58 = vpop.f32.mrf.mxu0  ;;  %v1559_v62 = vld [vmem:[#allocation2 + $0xbc] sm:$0x1]  ;;  %v4640_v7 = vld [vmem:[%s6223_s3 + $0x180] sm:$0xff]  ;;  %v1124_v40 = vunpack.c.l.b16 %v980_v11 }
 0x147   : > { %v4648_v3 = vld [vmem:[%s6223_s3 + $0x1c0] sm:$0xff]  ;;  %3641 = vmatpush.bf16.msra.mxu2 %v4640_v7  ;;  %v1305_v37 = vor.u32 %v1304_v59, %v1300_v47  ;;  %v5088_v59 = vld [vmem:[#allocation2 + $0xb4] sm:$0xe] }
 0x148   : > { %3730 = vmatpush.bf16.msra.mxu3 %v4648_v3 }
 0x149   : > { %v1560_v0 = vld [vmem:[#allocation2 + $0xc8] sm:$0x1] }
 0x14a   : > { %v2671_v6 = vpop.f32.mrf.mxu3  ;;  %2480 = vmatmul.bf16.gmra.mxu2 %v2015_v63  ;;  %v2354_v22 = vpop.f32.mrf.mxu1  ;;  %v1309_v63 = vrot.slane %v1307_v9, 1 }
 0x14b   : > { %v2672_v33 = vadd.f32 %v2671_v6, %v2439_v34  ;;  %v1888_v34 = vsel %vm1142_vm3, %v1883_v4, %v1887_v12  ;;  %v2017_v6 = vrot.slane %v1718_v14, 1  ;;  %v1892_v4 = vshll.u32 %v5527_v16, 16 }
 0x14c   : > { %v1310_v47 = vsel %vm1142_vm3, %v1305_v37, %v1309_v63  ;;  %v5089_v16 = vor.u32 %v5088_v59, %v5529_v19 }
 0x14d   : > { %v2441_v56 = vpop.f32.mrf.mxu2  ;;  %v5962_v10 = vadd.f32 %v2760_v26, %v2672_v33  ;;  %v2355_v33 = vadd.f32 %v2354_v22, %v5680_v46  ;;  %v2018_v12 = vsel %vm1399_vm4, %v2016_v30, %v2017_v6  ;;  %v5988_v22 = vpack.c.b16 %v1124_v40, %v1124_v40 }
 0x14e   : > { %v2442_v42 = vadd.f32 %v2441_v56, %v2353_v57  ;;  %v2768_v14 = vpop.f32.mrf.mxu0 }
 0x14f   : > { %2713 = vmatmul.bf16.gmra.mxu3 %v5928_v48  ;;  %v1703_v48 = vunpack.c.l.b16 %v1559_v62  ;;  %v1894_v62 = vrot.slane %v1892_v4, 1 }
 0x151   : > { %v1719_v18 = vpack.c.b16 %v1703_v48, %v1703_v48  ;;  %v1319_v48 = vshll.u32 %v5988_v22, 16  ;;  %v1895_v6 = vor.u32 %v1894_v62, %v1890_v61  ;;  %v5065_v61 = vld [vmem:[#allocation2 + $0xc0] sm:$0xff]  }
 0x152   : > { %v2674_v26 = vpop.f32.mrf.mxu3  ;;  %v2357_v54 = vpop.f32.mrf.mxu1  ;;  %2807 = vmatmul.bf16.gmra.mxu0 %v1310_v47  ;;  %v1904_v19 = vshll.u32 %v5065_v61, 16 }
 0x153   : > { %v2675_v27 = vadd.f32 %v2674_v26, %v2442_v42  ;;  %v5984_v42 = vld [vmem:[#allocation2 + $0xa8] sm:$0xff]   ;;  %v1897_v7 = vshll.u32 %v1719_v18, 16  ;;  %v2358_v26 = vadd.f32 %v2357_v54, %v5697_v28  ;;  %v6000_v28 = vld [vmem:[#allocation2 + $0xb4] sm:$0xf0] }
 0x154   : > { %v1314_v46 = vshll.u32 %v5984_v42, 16  ;;  %v1312_v37 = vshrl.u32 %v5984_v42, 16 }
 0x155   : > { %v2443_v57 = vpop.f32.mrf.mxu2  ;;  %2396 = vmatmul.bf16.gmra.mxu1 %v1888_v34  ;;  %v5980_v24 = vadd.f32 %v2763_v38, %v2675_v27  ;;  %v1899_v55 = vrot.slane %v1897_v7, 1 }
 0x156   : > { %v2444_v56 = vadd.f32 %v2443_v57, %v2355_v33  ;;  %v1316_v63 = vrot.slane %v1314_v46, 1  ;;  %v2770_v30 = vpop.f32.mrf.mxu0  ;;  %v5998_v33 = vld [vmem:[#allocation2 + $0xb4] sm:$0xff]   ;;  %v1321_v57 = vrot.slane %v1319_v48, 1  ;;  %v2020_v46 = vrot.slane %v1719_v18, 1 }
 0x157   : > { %v1902_v48 = vshrl.u32 %v5065_v61, 16 }
 0x158   : > { %v1317_v54 = vor.u32 %v1316_v63, %v1312_v37 }
 0x15a   : > { %v2676_v38 = vpop.f32.mrf.mxu3  ;;  %2485 = vmatmul.bf16.gmra.mxu2 %v2018_v12  ;;  %v2359_v9 = vpop.f32.mrf.mxu1  ;;  %v2019_v12 = vrot.slane %v5089_v16, 1  ;;  %v1322_v62 = vsel %vm1142_vm3, %v1317_v54, %v1321_v57  ;;  %v4980_v54 = vld [vmem:[#allocation2 + $0xc0] sm:$0xe] }
 0x15b   : > { %v2677_v3 = vadd.f32 %v2676_v38, %v2444_v56  ;;  %v1704_v56 = vunpack.c.l.b16 %v1560_v0  ;;  %v981_v38 = vld [vmem:[#allocation2 + $0xbc] sm:$0x1]  ;;  %v4979_v0 = vld [vmem:[#allocation2 + $0xc0] sm:$0xf0] }
 0x15c   : > { %v1125_v37 = vunpack.c.l.b16 %v981_v38  ;;  %v2021_v63 = vsel %vm1399_vm4, %v2019_v12, %v2020_v46  ;;  %v4981_v61 = vor.u32 %v4980_v54, %v4979_v0  ;;  %v2945_v0 = vld [vmem:[#allocation2 + $0x20] sm:$0x1] }
 0x15d   : > { %v2446_v34 = vpop.f32.mrf.mxu2  ;;  %v5994_v11 = vadd.f32 %v2765_v58, %v2677_v3  ;;  %v1900_v58 = vsel %vm1142_vm3, %v1895_v6, %v1899_v55  ;;  %v1326_v6 = vshll.u32 %v5998_v33, 16 }
 0x15e   : > { %v2447_v27 = vadd.f32 %v2446_v34, %v2358_v26  ;;  %v2773_v26 = vpop.f32.mrf.mxu0  ;;  %v1720_v34 = vpack.c.b16 %v1704_v56, %v1704_v56  ;;  %v6009_v55 = vpack.c.b16 %v1125_v37, %v1125_v37  ;;  %v2022_v37 = vrot.slane %v4981_v61, 1 }
 0x15f   : > { %2718 = vmatmul.bf16.gmra.mxu3 %v5945_v49  ;;  %v2360_v49 = vadd.f32 %v2359_v9, %v5724_v25  ;;  %v1328_v38 = vrot.slane %v1326_v6, 1 }
 0x160   : > { %v1909_v9 = vshll.u32 %v1720_v34, 16 }
 0x162   : > { %v2679_v40 = vpop.f32.mrf.mxu3  ;;  %v2362_v4 = vpop.f32.mrf.mxu1  ;;  %2812 = vmatmul.bf16.gmra.mxu0 %v1322_v62  ;;  %v1911_v46 = vrot.slane %v1909_v9, 1 }
 0x163   : > { %v2680_v47 = vadd.f32 %v2679_v40, %v2447_v27  ;;  %v1906_v27 = vrot.slane %v1904_v19, 1 }
 0x165   : > { %v2448_v59 = vpop.f32.mrf.mxu2  ;;  %2401 = vmatmul.bf16.gmra.mxu1 %v1900_v58  ;;  %v6005_v7 = vadd.f32 %v2768_v14, %v2680_v47  ;;  %v2363_v14 = vadd.f32 %v2362_v4, %v5746_v41  ;;  %v1907_v57 = vor.u32 %v1906_v27, %v1902_v48  ;;  %v1324_v58 = vshrl.u32 %v5998_v33, 16 }
 0x166   : > { %v2449_v3 = vadd.f32 %v2448_v59, %v2360_v49  ;;  %v2775_v12 = vpop.f32.mrf.mxu0  ;;  %v1331_v49 = vshll.u32 %v6009_v55, 16 }
 0x167   : > { %v1912_v41 = vsel %vm1142_vm3, %v1907_v57, %v1911_v46  ;;  %v1329_v4 = vor.u32 %v1328_v38, %v1324_v58  ;;  %v3089_v58 = vunpack.c.l.b16 %v2945_v0  ;;  %v4793_v46 = vld [vmem:[#allocation2 + $0x18] sm:$0xff]   ;;  %v5093_v0 = vld [vmem:[#allocation2 + $0x24] sm:$0xf0] }
 0x168   : > { %v1333_v62 = vrot.slane %v1331_v49, 1 }
 0x16a   : > { %v2681_v18 = vpop.f32.mrf.mxu3  ;;  %2490 = vmatmul.bf16.gmra.mxu2 %v2021_v63  ;;  %v2364_v25 = vpop.f32.mrf.mxu1  ;;  %v2023_v63 = vrot.slane %v1720_v34, 1 }
 0x16b   : > { %v2682_v16 = vadd.f32 %v2681_v18, %v2449_v3 }
 0x16c   : > { %v2024_v6 = vsel %vm1399_vm4, %v2022_v37, %v2023_v63 }
 0x16d   : > { %v2451_v40 = vpop.f32.mrf.mxu2  ;;  %v6013_v56 = vadd.f32 %v2770_v30, %v2682_v16  ;;  %v2365_v30 = vadd.f32 %v2364_v25, %v5767_v23  ;;  %v4926_v16 = vld [vmem:[#allocation2] sm:$0xf0]  ;;  %v4989_v23 = vld [vmem:[#allocation2 + $0x18] sm:$0xf0]  ;;  %v4990_v25 = vld [vmem:[#allocation2 + $0x18] sm:$0xe] }
 0x16e   : > { %v2452_v47 = vadd.f32 %v2451_v40, %v2363_v14  ;;  %v4927_v14 = vld [vmem:[#allocation2] sm:$0xe] }
 0x16f   : > { %2723 = vmatmul.bf16.gmra.mxu3 %v5984_v42  ;;  %v2778_v9 = vpop.f32.mrf.mxu0  ;;  %v1334_v42 = vsel %vm1142_vm3, %v1329_v4, %v1333_v62  ;;  %v4928_v34 = vor.u32 %v4927_v14, %v4926_v16  ;;  %v4991_v4 = vor.u32 %v4990_v25, %v4989_v23  ;;  %v3124_v62 = vshll.u32 %v4793_v46, 16  ;;  %v5094_v23 = vld [vmem:[#allocation2 + $0x24] sm:$0xe] }
 0x172   : > { %v2684_v19 = vpop.f32.mrf.mxu3  ;;  %v2367_v59 = vpop.f32.mrf.mxu1  ;;  %2817 = vmatmul.bf16.gmra.mxu0 %v1334_v42  ;;  %v3122_v42 = vshrl.u32 %v4793_v46, 16 }
 0x173   : > { %v2685_v3 = vadd.f32 %v2684_v19, %v2452_v47  ;;  %v1400_v19 = vrot.slane %v4928_v34, 1 }
 0x175   : > { %v2453_v48 = vpop.f32.mrf.mxu2  ;;  %2406 = vmatmul.bf16.gmra.mxu1 %v1912_v41  ;;  %v6019_v27 = vadd.f32 %v2773_v26, %v2685_v3  ;;  %v2368_v26 = vadd.f32 %v2367_v59, %v5788_v2  ;;  %v1401_v41 = vrot.slane %v5585_v29, 1  ;;  %v3105_v3 = vpack.c.b16 %v3089_v58, %v3089_v58  ;;  %v2915_v29 = vld [vmem:[#allocation2 + $0x24] sm:$0xff]   ;;  %v2946_v58 = vld [vmem:[#allocation2 + $0x2c] sm:$0x1] }
 0x176   : > { %v2454_v18 = vadd.f32 %v2453_v48, %v2365_v30  ;;  %v3377_v2 = vrot.slane %v4991_v4, 1 }
 0x177   : > { %v2780_v61 = vpop.f32.mrf.mxu0  ;;  %v1402_v30 = vsel %vm1399_vm4, %v1400_v19, %v1401_v41  ;;  %v3378_v59 = vrot.slane %v3105_v3, 1  ;;  %v3129_v16 = vshll.u32 %v3105_v3, 16  ;;  %v3090_v41 = vunpack.c.l.b16 %v2946_v58 }
 0x17a   : > { %v2686_v54 = vpop.f32.mrf.mxu3  ;;  %2495 = vmatmul.bf16.gmra.mxu2 %v2024_v6  ;;  %v2369_v57 = vpop.f32.mrf.mxu1  ;;  %v3126_v6 = vrot.slane %v3124_v62, 1 }
 0x17b   : > { %v2687_v40 = vadd.f32 %v2686_v54, %v2454_v18  ;;  %v5091_v18 = vld [vmem:[#allocation2 + $0xc] sm:$0xe] }
 0x17c   : > { %v3127_v25 = vor.u32 %v3126_v6, %v3122_v42 }
 0x17d   : > { %v2456_v47 = vpop.f32.mrf.mxu2  ;;  %v6024_v38 = vadd.f32 %v2775_v12, %v2687_v40  ;;  %v2370_v12 = vadd.f32 %v2369_v57, %v5812_v15  ;;  %v3379_v40 = vsel %vm1399_vm4, %v3377_v2, %v3378_v59  ;;  %v5092_v57 = vor.u32 %v5091_v18, %v5582_v20 }
 0x17e   : > { %v2457_v49 = vadd.f32 %v2456_v47, %v2368_v26  ;;  %v3131_v26 = vrot.slane %v3129_v16, 1  ;;  %v1404_v2 = vrot.slane %v5595_v1, 1  ;;  %v5095_v59 = vor.u32 %v5094_v23, %v5093_v0 }
 0x17f   : > { %2728 = vmatmul.bf16.gmra.mxu3 %v5998_v33  ;;  %v2783_v34 = vpop.f32.mrf.mxu0 }
 0x182   : > { %v2689_v37 = vpop.f32.mrf.mxu3  ;;  %v2372_v63 = vpop.f32.mrf.mxu1  ;;  %3820 = vmatmul.bf16.vlgmr.msra.gmra.mxu0 %v3379_v40 }
 0x183   : > { %v2690_v48 = vadd.f32 %v2689_v37, %v2457_v49  ;;  %v2373_v19 = vadd.f32 %v2372_v63, %v5682_v43  ;;  %v3380_v43 = vrot.slane %v5095_v59, 1 }
 0x185   : > { %v2458_v14 = vpop.f32.mrf.mxu2  ;;  %2831 = vmatmul.bf16.vlgmr.msra.gmra.mxu1 %v1402_v30  ;;  %v6030_v33 = vadd.f32 %v2778_v9, %v2690_v48  ;;  %v3132_v9 = vsel %vm1142_vm3, %v3127_v25, %v3131_v26  ;;  %v1403_v30 = vrot.slane %v5092_v57, 1  ;;  %v3106_v48 = vpack.c.b16 %v3090_v41, %v3090_v41  ;;  %v4929_v25 = vld [vmem:[#allocation2 + $0x18] sm:$0xf0]  ;;  %v4930_v26 = vld [vmem:[#allocation2 + $0x18] sm:$0xe] }
 0x186   : > { %v2459_v54 = vadd.f32 %v2458_v14, %v2370_v12  ;;  %v2947_v57 = vld [vmem:[#allocation2 + $0x38] sm:$0x1]  ;;  %v4993_v41 = vld [vmem:[#allocation2 + $0x30] sm:$0xe] }
 0x187   : > { %v2785_v37 = vpop.f32.mrf.mxu0  ;;  %v1405_v18 = vsel %vm1399_vm4, %v1403_v30, %v1404_v2  ;;  %v3381_v63 = vrot.slane %v3106_v48, 1  ;;  %v3141_v14 = vshll.u32 %v3106_v48, 16  ;;  %v4982_v2 = vld [vmem:[#allocation2 + $0x30] sm:$0xff]  }
 0x189   : > { %v3382_v23 = vsel %vm1399_vm4, %v3380_v43, %v3381_v63  ;;  %v3148_v43 = vshll.u32 %v4982_v2, 16 }
 0x18a   : > { %v2691_v47 = vpop.f32.mrf.mxu3  ;;  %3642 = vmatmul.bf16.vlgmr.msra.gmra.mxu2 %v4793_v46  ;;  %v2374_v15 = vpop.f32.mrf.mxu1  ;;  %v3136_v46 = vshll.u32 %v2915_v29, 16 }
 0x18b   : > { %v2692_v49 = vadd.f32 %v2691_v47, %v2459_v54  ;;  %v2375_v6 = vadd.f32 %v2374_v15, %v5702_v32  ;;  %v3143_v47 = vrot.slane %v3141_v14, 1  ;;  %v4931_v15 = vor.u32 %v4930_v26, %v4929_v25  ;;  %v5097_v14 = vld [vmem:[#allocation2 + $0x24] sm:$0xe]  ;;  %v5099_v26 = vld [vmem:[#allocation2 + $0x3c] sm:$0xf0] }
 0x18c   : > { %v3138_v16 = vrot.slane %v3136_v46, 1 }
 0x18d   : > { %v2461_v4 = vpop.f32.mrf.mxu2  ;;  %v6036_v62 = vadd.f32 %v2780_v61, %v2692_v49  ;;  %v3134_v61 = vshrl.u32 %v2915_v29, 16 }
 0x18e   : > { %v2462_v3 = vadd.f32 %v2461_v4, %v2373_v19 }
 0x18f   : > { %3731 = vmatmul.bf16.vlgmr.msra.gmra.mxu3 %v3132_v9  ;;  %v2788_v0 = vpop.f32.mrf.mxu0  ;;  %v3139_v58 = vor.u32 %v3138_v16, %v3134_v61  ;;  %v4992_v9 = vld [vmem:[#allocation2 + $0x30] sm:$0xf0] }
 0x191   : > { %v3144_v4 = vsel %vm1142_vm3, %v3139_v58, %v3143_v47 }
 0x192   : > { %v2694_v12 = vpop.f32.mrf.mxu3  ;;  %v2377_v20 = vpop.f32.mrf.mxu1  ;;  %3825 = vmatmul.bf16.gmra.mxu0 %v3382_v23 }
 0x193   : > { %v2695_v42 = vadd.f32 %v2694_v12, %v2462_v3  ;;  %v3091_v3 = vunpack.c.l.b16 %v2947_v57  ;;  %v1406_v12 = vrot.slane %v4931_v15, 1  ;;  %v5100_v15 = vld [vmem:[#allocation2 + $0x3c] sm:$0xe] }
 0x195   : > { %v2463_v54 = vpop.f32.mrf.mxu2  ;;  %2836 = vmatmul.bf16.gmra.mxu1 %v1405_v18  ;;  %v6041_v40 = vadd.f32 %v2783_v34, %v2695_v42  ;;  %v2378_v34 = vadd.f32 %v2377_v20, %v5726_v35  ;;  %v1407_v18 = vrot.slane %v5616_v13, 1  ;;  %v3107_v63 = vpack.c.b16 %v3091_v3, %v3091_v3  ;;  %v2919_v13 = vld [vmem:[#allocation2 + $0x3c] sm:$0xff]   ;;  %v6258_v3 = vld [vmem:[#allocation13_spill] sm:$0xff] }
 0x196   : > { %v2464_v1 = vadd.f32 %v2463_v54, %v2375_v6  ;;  %v3146_v54 = vshrl.u32 %v4982_v2, 16 }
 0x197   : > { %v2790_v48 = vpop.f32.mrf.mxu0  ;;  %v1408_v35 = vsel %vm1399_vm4, %v1406_v12, %v1407_v18  ;;  %v3384_v61 = vrot.slane %v3107_v63, 1  ;;  %v3153_v23 = vshll.u32 %v3107_v63, 16 }
 0x19a   : > { %v2696_v49 = vpop.f32.mrf.mxu3  ;;  %3647 = vmatmul.bf16.gmra.mxu2 %v2915_v29  ;;  %v2379_v32 = vpop.f32.mrf.mxu1  ;;  %v4994_v29 = vor.u32 %v4993_v41, %v4992_v9  ;;  %v3155_v9 = vrot.slane %v3153_v23, 1  ;;  %v2948_v41 = vld [vmem:[#allocation2 + $0x44] sm:$0x1] }
 0x19b   : > { %v2697_v19 = vadd.f32 %v2696_v49, %v2464_v1  ;;  %v3150_v1 = vrot.slane %v3148_v43, 1 }
 0x19c   : > { %v3383_v20 = vrot.slane %v4994_v29, 1 }
 0x19d   : > { %v2466_v30 = vpop.f32.mrf.mxu2  ;;  %v6046_v59 = vadd.f32 %v2785_v37, %v2697_v19  ;;  %v2380_v37 = vadd.f32 %v2379_v32, %v5749_v51  ;;  %v3151_v19 = vor.u32 %v3150_v1, %v3146_v54  ;;  %v5098_v32 = vor.u32 %v5097_v14, %v5627_v44  ;;  %v6260_v1 = vld [vmem:[#allocation16_spill] sm:$0xff] }
 0x19e   : > { %v2467_v46 = vadd.f32 %v2466_v30, %v2378_v34  ;;  %v3385_v49 = vsel %vm1399_vm4, %v3383_v20, %v3384_v61  ;;  %v5101_v20 = vor.u32 %v5100_v15, %v5099_v26 }
 0x19f   : > { %3736 = vmatmul.bf16.gmra.mxu3 %v3144_v4  ;;  %v2793_v57 = vpop.f32.mrf.mxu0  ;;  %v1409_v63 = vrot.slane %v5098_v32, 1 }
 0x1a2   : > { %v2699_v42 = vpop.f32.mrf.mxu3  ;;  %v2382_v6 = vpop.f32.mrf.mxu1  ;;  %3830 = vmatmul.bf16.gmra.mxu0 %v3385_v49 }
 0x1a3   : > { %v2700_v16 = vadd.f32 %v2699_v42, %v2467_v46  ;;  %v2383_v30 = vadd.f32 %v2382_v6, %v6258_v3  ;;  %v3092_v46 = vunpack.c.l.b16 %v2948_v41  ;;  %v6259_v42 = vld [vmem:[#allocation3_spill] sm:$0xff]  ;;  %v3386_v6 = vrot.slane %v5101_v20, 1  ;;  %v4932_v41 = vld [vmem:[#allocation2 + $0x30] sm:$0xf0]  ;;  %v2949_v3 = vld [vmem:[#allocation2 + $0x50] sm:$0x1] }
 0x1a5   : > { %v2468_v25 = vpop.f32.mrf.mxu2  ;;  %2841 = vmatmul.bf16.gmra.mxu1 %v1408_v35  ;;  %v6051_v58 = vadd.f32 %v2788_v0, %v2700_v16  ;;  %v3156_v0 = vsel %vm1142_vm3, %v3151_v19, %v3155_v9  ;;  %v1410_v35 = vrot.slane %v6259_v42, 1  ;;  %v3108_v61 = vpack.c.b16 %v3092_v46, %v3092_v46 }
 0x1a6   : > { %v2469_v47 = vadd.f32 %v2468_v25, %v2380_v37 }
 0x1a7   : > { %v2795_v43 = vpop.f32.mrf.mxu0  ;;  %v1411_v14 = vsel %vm1399_vm4, %v1409_v63, %v1410_v35  ;;  %v3387_v37 = vrot.slane %v3108_v61, 1  ;;  %v6261_v63 = vld [vmem:[#allocation19_spill] sm:$0xff]  ;;  %v3093_v35 = vunpack.c.l.b16 %v2949_v3 }
 0x1a9   : > { %v3388_v9 = vsel %vm1399_vm4, %v3386_v6, %v3387_v37  ;;  %v6262_v37 = vld [vmem:[#allocation4_spill] sm:$0xff] }
 0x1aa   : > { %v2701_v34 = vpop.f32.mrf.mxu3  ;;  %3652 = vmatmul.bf16.gmra.mxu2 %v4982_v2  ;;  %v2384_v51 = vpop.f32.mrf.mxu1  ;;  %v3160_v2 = vshll.u32 %v2919_v13, 16 }
 0x1ab   : > { %v2702_v4 = vadd.f32 %v2701_v34, %v2469_v47  ;;  %v2385_v23 = vadd.f32 %v2384_v51, %v6260_v1  ;;  %v3165_v47 = vshll.u32 %v3108_v61, 16  ;;  %v4933_v34 = vld [vmem:[#allocation2 + $0x30] sm:$0xe] }
 0x1ac   : > { %v3162_v25 = vrot.slane %v3160_v2, 1  ;;  %v4983_v2 = vld [vmem:[#allocation2 + $0x48] sm:$0xff]  }
 0x1ad   : > { %v2471_v12 = vpop.f32.mrf.mxu2  ;;  %v6057_v18 = vadd.f32 %v2790_v48, %v2702_v4  ;;  %v3158_v48 = vshrl.u32 %v2919_v13, 16  ;;  %v3167_v4 = vrot.slane %v3165_v47, 1  ;;  %v3172_v1 = vshll.u32 %v4983_v2, 16 }
 0x1ae   : > { %v2472_v29 = vadd.f32 %v2471_v12, %v2383_v30  ;;  %v4995_v12 = vld [vmem:[#allocation2 + $0x48] sm:$0xf0] }
 0x1af   : > { %3741 = vmatmul.bf16.gmra.mxu3 %v3156_v0  ;;  %v2798_v15 = vpop.f32.mrf.mxu0  ;;  %v3163_v32 = vor.u32 %v3162_v25, %v3158_v48  ;;  %v4934_v0 = vor.u32 %v4933_v34, %v4932_v41  ;;  %v6263_v41 = vld [vmem:[#allocation22_spill] sm:$0xff]  ;;  %v3170_v34 = vshrl.u32 %v4983_v2, 16 }
 0x1b1   : > { %v3168_v42 = vsel %vm1142_vm3, %v3163_v32, %v3167_v4  ;;  %v1412_v6 = vrot.slane %v4934_v0, 1  ;;  %v3174_v32 = vrot.slane %v3172_v1, 1  ;;  %v5105_v0 = vld [vmem:[#allocation2 + $0x54] sm:$0xf0] }
 0x1b2   : > { %v2704_v16 = vpop.f32.mrf.mxu3  ;;  %v2387_v44 = vpop.f32.mrf.mxu1  ;;  %3835 = vmatmul.bf16.gmra.mxu0 %v3388_v9  ;;  %v5103_v9 = vld [vmem:[#allocation2 + $0x3c] sm:$0xe] }
 0x1b3   : > { %v2705_v54 = vadd.f32 %v2704_v16, %v2472_v29  ;;  %v4996_v29 = vld [vmem:[#allocation2 + $0x48] sm:$0xe] }
 0x1b5   : > { %v2473_v49 = vpop.f32.mrf.mxu2  ;;  %2846 = vmatmul.bf16.gmra.mxu1 %v1411_v14  ;;  %v6062_v19 = vadd.f32 %v2793_v57, %v2705_v54  ;;  %v2388_v57 = vadd.f32 %v2387_v44, %v6261_v63  ;;  %v1413_v54 = vrot.slane %v6262_v37, 1 }
 0x1b6   : > { %v2474_v26 = vadd.f32 %v2473_v49, %v2385_v23  ;;  %v3109_v23 = vpack.c.b16 %v3093_v35, %v3093_v35 }
 0x1b7   : > { %v2800_v14 = vpop.f32.mrf.mxu0  ;;  %v1414_v44 = vsel %vm1399_vm4, %v1412_v6, %v1413_v54  ;;  %v6264_v6 = vld [vmem:[#allocation5_spill] sm:$0xff] }
 0x1b8   : > { %v3390_v49 = vrot.slane %v3109_v23, 1  ;;  %v3177_v4 = vshll.u32 %v3109_v23, 16  ;;  %v5104_v37 = vor.u32 %v5103_v9, %v6264_v6 }
 0x1ba   : > { %v2706_v30 = vpop.f32.mrf.mxu3  ;;  %3657 = vmatmul.bf16.gmra.mxu2 %v2919_v13  ;;  %v2389_v51 = vpop.f32.mrf.mxu1  ;;  %v4997_v13 = vor.u32 %v4996_v29, %v4995_v12  ;;  %v3179_v35 = vrot.slane %v3177_v4, 1 }
 0x1bb   : > { %v2707_v46 = vadd.f32 %v2706_v30, %v2474_v26  ;;  %v2923_v30 = vld [vmem:[#allocation2 + $0x54] sm:$0xff]  }
 0x1bc   : > { %v3389_v47 = vrot.slane %v4997_v13, 1  ;;  %v6265_v13 = vld [vmem:[#allocation6_spill] sm:$0xff] }
 0x1bd   : > { %v2476_v20 = vpop.f32.mrf.mxu2  ;;  %v6067_v61 = vadd.f32 %v2795_v43, %v2707_v46  ;;  %v2390_v43 = vadd.f32 %v2389_v51, %v6263_v41  ;;  %v6266_v41 = vld [vmem:[#allocation7_spill] sm:$0xff] }
 0x1be   : > { %v2477_v16 = vadd.f32 %v2476_v20, %v2388_v57  ;;  %v3391_v63 = vsel %vm1399_vm4, %v3389_v47, %v3390_v49  ;;  %v5106_v57 = vld [vmem:[#allocation2 + $0x54] sm:$0xe]  ;;  %v2950_v20 = vld [vmem:[#allocation2 + $0x5c] sm:$0x1] }
 0x1bf   : > { %3746 = vmatmul.bf16.gmra.mxu3 %v3168_v42  ;;  %v2803_v29 = vpop.f32.mrf.mxu0  ;;  %v3175_v42 = vor.u32 %v3174_v32, %v3170_v34  ;;  %v3094_v23 = vunpack.c.l.b16 %v2950_v20  ;;  %v5107_v34 = vor.u32 %v5106_v57, %v5105_v0 }
 0x1c1   : > { %v3110_v32 = vpack.c.b16 %v3094_v23, %v3094_v23 }
 0x1c2   : > { %v2709_v48 = vpop.f32.mrf.mxu3  ;;  %v2392_v25 = vpop.f32.mrf.mxu1  ;;  %3840 = vmatmul.bf16.gmra.mxu0 %v3391_v63 }
 0x1c3   : > { %v2710_v26 = vadd.f32 %v2709_v48, %v2477_v16  ;;  %v2393_v1 = vadd.f32 %v2392_v25, %v6265_v13  ;;  %v3392_v25 = vrot.slane %v5107_v34, 1  ;;  %v4935_v13 = vld [vmem:[#allocation2 + $0x48] sm:$0xf0]  ;;  %v4999_v34 = vld [vmem:[#allocation2 + $0x60] sm:$0xe] }
 0x1c5   : > { %v2478_v3 = vpop.f32.mrf.mxu2  ;;  %2851 = vmatmul.bf16.gmra.mxu1 %v1414_v44  ;;  %v6072_v46 = vadd.f32 %v2798_v15, %v2710_v26  ;;  %v3180_v15 = vsel %vm1142_vm3, %v3175_v42, %v3179_v35  ;;  %v1415_v26 = vrot.slane %v5104_v37, 1  ;;  %v6267_v42 = vld [vmem:[#allocation8_spill] sm:$0xff] }
 0x1c6   : > { %v2479_v12 = vadd.f32 %v2478_v3, %v2390_v43  ;;  %v1416_v43 = vrot.slane %v6266_v41, 1 }
 0x1c7   : > { %v2805_v49 = vpop.f32.mrf.mxu0 }
 0x1c8   : > { %v1417_v3 = vsel %vm1399_vm4, %v1415_v26, %v1416_v43  ;;  %v4998_v43 = vld [vmem:[#allocation2 + $0x60] sm:$0xf0] }
 0x1ca   : > { %v2711_v16 = vpop.f32.mrf.mxu3  ;;  %3662 = vmatmul.bf16.gmra.mxu2 %v4983_v2  ;;  %v2394_v51 = vpop.f32.mrf.mxu1  ;;  %v3184_v2 = vshll.u32 %v2923_v30, 16 }
 0x1cb   : > { %v2712_v54 = vadd.f32 %v2711_v16, %v2479_v12  ;;  %v3393_v12 = vrot.slane %v3110_v32, 1  ;;  %v2395_v35 = vadd.f32 %v2394_v51, %v6267_v42  ;;  %v3189_v16 = vshll.u32 %v3110_v32, 16 }
 0x1cc   : > { %v3186_v20 = vrot.slane %v3184_v2, 1  ;;  %v6268_v2 = vld [vmem:[#allocation10_spill] sm:$0xff] }
 0x1cd   : > { %v2481_v48 = vpop.f32.mrf.mxu2  ;;  %v6078_v44 = vadd.f32 %v2800_v14, %v2712_v54  ;;  %v3182_v14 = vshrl.u32 %v2923_v30, 16  ;;  %v3394_v54 = vsel %vm1399_vm4, %v3392_v25, %v3393_v12  ;;  %v3191_v23 = vrot.slane %v3189_v16, 1  ;;  %v4984_v25 = vld [vmem:[#allocation2 + $0x60] sm:$0xff]  }
 0x1ce   : > { %v2482_v47 = vadd.f32 %v2481_v48, %v2393_v1  ;;  %v4936_v1 = vld [vmem:[#allocation2 + $0x48] sm:$0xe]  ;;  %v2951_v48 = vld [vmem:[#allocation2 + $0x68] sm:$0x1]  ;;  %v3196_v16 = vshll.u32 %v4984_v25, 16 }
 0x1cf   : > { %3751 = vmatmul.bf16.gmra.mxu3 %v3180_v15  ;;  %v2808_v57 = vpop.f32.mrf.mxu0  ;;  %v3187_v15 = vor.u32 %v3186_v20, %v3182_v14  ;;  %v4937_v26 = vor.u32 %v4936_v1, %v4935_v13  ;;  %v6270_v14 = vld [vmem:[#allocation9_spill] sm:$0xff] }
 0x1d0   : > { %v1419_v20 = vrot.slane %v6270_v14, 1 }
 0x1d1   : > { %v3192_v32 = vsel %vm1142_vm3, %v3187_v15, %v3191_v23  ;;  %v5109_v23 = vld [vmem:[#allocation2 + $0x54] sm:$0xe] }
 0x1d2   : > { %v2714_v4 = vpop.f32.mrf.mxu3  ;;  %v2397_v9 = vpop.f32.mrf.mxu1  ;;  %3845 = vmatmul.bf16.gmra.mxu0 %v3394_v54 }
 0x1d3   : > { %v2715_v63 = vadd.f32 %v2714_v4, %v2482_v47  ;;  %v3095_v4 = vunpack.c.l.b16 %v2951_v48  ;;  %v6271_v48 = vld [vmem:[#allocation12_spill] sm:$0xff] }
 0x1d5   : > { %v2483_v6 = vpop.f32.mrf.mxu2  ;;  %2856 = vmatmul.bf16.gmra.mxu1 %v1417_v3  ;;  %v6083_v37 = vadd.f32 %v2803_v29, %v2715_v63  ;;  %v2398_v29 = vadd.f32 %v2397_v9, %v6268_v2 }
 0x1d6   : > { %v2484_v0 = vadd.f32 %v2483_v6, %v2395_v35  ;;  %v1418_v35 = vrot.slane %v4937_v26, 1  ;;  %v3111_v6 = vpack.c.b16 %v3095_v4, %v3095_v4 }
 0x1d7   : > { %v2810_v42 = vpop.f32.mrf.mxu0 }
 0x1d8   : > { %v1420_v9 = vsel %vm1399_vm4, %v1418_v35, %v1419_v20  ;;  %v3396_v1 = vrot.slane %v3111_v6, 1  ;;  %v3201_v2 = vshll.u32 %v3111_v6, 16  ;;  %v5112_v35 = vld [vmem:[#allocation2 + $0x6c] sm:$0xe] }
 0x1da   : > { %v2716_v47 = vpop.f32.mrf.mxu3  ;;  %3667 = vmatmul.bf16.gmra.mxu2 %v2923_v30  ;;  %v2399_v51 = vpop.f32.mrf.mxu1  ;;  %v5000_v30 = vor.u32 %v4999_v34, %v4998_v43  ;;  %v5111_v43 = vld [vmem:[#allocation2 + $0x6c] sm:$0xf0]  ;;  %v3203_v20 = vrot.slane %v3201_v2, 1 }
 0x1db   : > { %v2717_v41 = vadd.f32 %v2716_v47, %v2484_v0  ;;  %v3194_v47 = vshrl.u32 %v4984_v25, 16 }
 0x1dc   : > { %v3395_v13 = vrot.slane %v5000_v30, 1 }
 0x1dd   : > { %v2486_v3 = vpop.f32.mrf.mxu2  ;;  %v6088_v12 = vadd.f32 %v2805_v49, %v2717_v41  ;;  %v2400_v49 = vadd.f32 %v2399_v51, %v6271_v48  ;;  %v3198_v41 = vrot.slane %v3196_v16, 1  ;;  %v6273_v16 = vld [vmem:[#allocation11_spill] sm:$0xff] }
 0x1de   : > { %v2487_v63 = vadd.f32 %v2486_v3, %v2398_v29  ;;  %v2927_v29 = vld [vmem:[#allocation2 + $0x6c] sm:$0xff]   ;;  %v3397_v3 = vsel %vm1399_vm4, %v3395_v13, %v3396_v1  ;;  %v5110_v6 = vor.u32 %v5109_v23, %v6273_v16 }
 0x1df   : > { %6269 = vst [vmem:[#allocation13_spill] sm:$0xff] %v6088_v12  ;;  %3756 = vmatmul.bf16.gmra.mxu3 %v3192_v32  ;;  %v2813_v4 = vpop.f32.mrf.mxu0  ;;  %v3199_v14 = vor.u32 %v3198_v41, %v3194_v47  ;;  %v6276_v41 = vld [vmem:[#allocation14_spill] sm:$0xff] }
 0x1e0   : > { %v1421_v47 = vrot.slane %v5110_v6, 1  ;;  %v1422_v2 = vrot.slane %v6276_v41, 1  ;;  %v2953_v41 = vld [vmem:[#allocation2 + $0x80] sm:$0x1] }
 0x1e2   : > { %v2719_v0 = vpop.f32.mrf.mxu3  ;;  %v2402_v54 = vpop.f32.mrf.mxu1  ;;  %3850 = vmatmul.bf16.gmra.mxu0 %v3397_v3  ;;  %v5113_v3 = vor.u32 %v5112_v35, %v5111_v43 }
 0x1e3   : > { %v2720_v15 = vadd.f32 %v2719_v0, %v2487_v63  ;;  %v2952_v63 = vld [vmem:[#allocation2 + $0x74] sm:$0x1] }
 0x1e5   : > { %v2488_v26 = vpop.f32.mrf.mxu2  ;;  %2861 = vmatmul.bf16.gmra.mxu1 %v1420_v9  ;;  %v6093_v34 = vadd.f32 %v2808_v57, %v2720_v15  ;;  %v6274_v9 = vld [vmem:[#allocation15_spill] sm:$0xff]  ;;  %v3204_v57 = vsel %vm1142_vm3, %v3199_v14, %v3203_v20  ;;  %v3096_v15 = vunpack.c.l.b16 %v2952_v63  ;;  %v6277_v20 = vld [vmem:[#allocation17_spill] sm:$0xff] }
 0x1e6   : > { %v2489_v32 = vadd.f32 %v2488_v26, %v2400_v49  ;;  %v2403_v48 = vadd.f32 %v2402_v54, %v6274_v9  ;;  %v3398_v54 = vrot.slane %v5113_v3, 1  ;;  %v5002_v3 = vld [vmem:[#allocation2 + $0x78] sm:$0xe] }
 0x1e7   : > { %6272 = vst [vmem:[#allocation3_spill] sm:$0xff] %v6093_v34  ;;  %v2815_v1 = vpop.f32.mrf.mxu0  ;;  %v3112_v34 = vpack.c.b16 %v3096_v15, %v3096_v15  ;;  %v4939_v15 = vld [vmem:[#allocation2 + $0x60] sm:$0xe] }
 0x1ea   : > { %v2721_v30 = vpop.f32.mrf.mxu3  ;;  %3672 = vmatmul.bf16.gmra.mxu2 %v4984_v25  ;;  %v2404_v51 = vpop.f32.mrf.mxu1  ;;  %v3208_v25 = vshll.u32 %v2927_v29, 16 }
 0x1eb   : > { %v2722_v0 = vadd.f32 %v2721_v30, %v2489_v32  ;;  %v1423_v32 = vsel %vm1399_vm4, %v1421_v47, %v1422_v2  ;;  %v3399_v30 = vrot.slane %v3112_v34, 1  ;;  %v2405_v63 = vadd.f32 %v2404_v51, %v6277_v20 }
 0x1ec   : > { %v3210_v16 = vrot.slane %v3208_v25, 1  ;;  %v6279_v25 = vld [vmem:[#allocation21_spill] sm:$0xff] }
 0x1ed   : > { %v2491_v49 = vpop.f32.mrf.mxu2  ;;  %v6099_v26 = vadd.f32 %v2810_v42, %v2722_v0  ;;  %v3206_v42 = vshrl.u32 %v2927_v29, 16  ;;  %v3213_v0 = vshll.u32 %v3112_v34, 16  ;;  %v5001_v34 = vld [vmem:[#allocation2 + $0x78] sm:$0xf0] }
 0x1ee   : > { %v2492_v13 = vadd.f32 %v2491_v49, %v2403_v48  ;;  %v3400_v48 = vsel %vm1399_vm4, %v3398_v54, %v3399_v30  ;;  %v4985_v54 = vld [vmem:[#allocation2 + $0x78] sm:$0xff]  }
 0x1ef   : > { %6275 = vst [vmem:[#allocation16_spill] sm:$0xff] %v6099_v26  ;;  %3761 = vmatmul.bf16.gmra.mxu3 %v3204_v57  ;;  %v2818_v35 = vpop.f32.mrf.mxu0  ;;  %v4938_v57 = vld [vmem:[#allocation2 + $0x60] sm:$0xf0]  ;;  %v3211_v49 = vor.u32 %v3210_v16, %v3206_v42  ;;  %v3215_v47 = vrot.slane %v3213_v0, 1  ;;  %v6281_v0 = vld [vmem:[#allocation18_spill] sm:$0xff] }
 0x1f2   : > { %v2724_v12 = vpop.f32.mrf.mxu3  ;;  %v2407_v23 = vpop.f32.mrf.mxu1  ;;  %3855 = vmatmul.bf16.gmra.mxu0 %v3400_v48  ;;  %v3220_v48 = vshll.u32 %v4985_v54, 16 }
 0x1f3   : > { %v2725_v14 = vadd.f32 %v2724_v12, %v2492_v13  ;;  %v4940_v13 = vor.u32 %v4939_v15, %v4938_v57 }
 0x1f5   : > { %v2493_v9 = vpop.f32.mrf.mxu2  ;;  %2866 = vmatmul.bf16.gmra.mxu1 %v1423_v32  ;;  %v6104_v6 = vadd.f32 %v2813_v4, %v2725_v14  ;;  %v2408_v4 = vadd.f32 %v2407_v23, %v6279_v25  ;;  %v3216_v32 = vsel %vm1142_vm3, %v3211_v49, %v3215_v47  ;;  %v3097_v14 = vunpack.c.l.b16 %v2953_v41 }
 0x1f6   : > { %v2494_v43 = vadd.f32 %v2493_v9, %v2405_v63  ;;  %v1424_v16 = vrot.slane %v4940_v13, 1  ;;  %v1425_v9 = vrot.slane %v6281_v0, 1  ;;  %v3218_v25 = vshrl.u32 %v4985_v54, 16 }
 0x1f7   : > { %6278 = vst [vmem:[#allocation19_spill] sm:$0xff] %v6104_v6  ;;  %v2820_v42 = vpop.f32.mrf.mxu0 }
 0x1f8   : > { %v1426_v23 = vsel %vm1399_vm4, %v1424_v16, %v1425_v9  ;;  %v5118_v16 = vld [vmem:[#allocation2 + $0x84] sm:$0xe] }
 0x1fa   : > { %v2726_v12 = vpop.f32.mrf.mxu3  ;;  %3677 = vmatmul.bf16.gmra.mxu2 %v2927_v29  ;;  %v2409_v51 = vpop.f32.mrf.mxu1  ;;  %v5003_v29 = vor.u32 %v5002_v3, %v5001_v34  ;;  %v2931_v34 = vld [vmem:[#allocation2 + $0x84] sm:$0xff]  }
 0x1fb   : > { %v2727_v2 = vadd.f32 %v2726_v12, %v2494_v43  ;;  %v3113_v43 = vpack.c.b16 %v3097_v14, %v3097_v14  ;;  %v5115_v12 = vld [vmem:[#allocation2 + $0x6c] sm:$0xe]  ;;  %v5117_v3 = vld [vmem:[#allocation2 + $0x84] sm:$0xf0] }
 0x1fc   : > { %v3401_v49 = vrot.slane %v5003_v29, 1 }
 0x1fd   : > { %v2496_v20 = vpop.f32.mrf.mxu2  ;;  %v6109_v30 = vadd.f32 %v2815_v1, %v2727_v2  ;;  %v3402_v47 = vrot.slane %v3113_v43, 1  ;;  %v6282_v1 = vld [vmem:[#allocation23_spill] sm:$0xff]  ;;  %v3225_v13 = vshll.u32 %v3113_v43, 16 }
 0x1fe   : > { %v2497_v63 = vadd.f32 %v2496_v20, %v2408_v4  ;;  %v2410_v2 = vadd.f32 %v2409_v51, %v6282_v1  ;;  %v3222_v4 = vrot.slane %v3220_v48, 1  ;;  %v6284_v48 = vld [vmem:[#allocation20_spill] sm:$0xff] }
 0x1ff   : > { %6280 = vst [vmem:[#allocation4_spill] sm:$0xff] %v6109_v30  ;;  %3766 = vmatmul.bf16.gmra.mxu3 %v3216_v32  ;;  %v3821_v0 = vpop.f32.mrf.mxu0  ;;  %v3403_v30 = vsel %vm1399_vm4, %v3401_v49, %v3402_v47  ;;  %v3227_v29 = vrot.slane %v3225_v13, 1  ;;  %v5116_v43 = vor.u32 %v5115_v12, %v6284_v48  ;;  %v6286_v47 = vld [vmem:[#allocation24_spill] sm:$0xff] }
 0x200   : > { %v3223_v9 = vor.u32 %v3222_v4, %v3218_v25  ;;  %v1428_v25 = vrot.slane %v6286_v47, 1  ;;  %v5119_v4 = vor.u32 %v5118_v16, %v5117_v3  ;;  %v4941_v16 = vld [vmem:[#allocation2 + $0x78] sm:$0xf0] }
 0x201   : > { %v1427_v49 = vrot.slane %v5116_v43, 1 }
 0x202   : > { %v2729_v57 = vpop.f32.mrf.mxu3  ;;  %v6112_v15 = vpop.f32.mrf.mxu1  ;;  %3860 = vmatmul.bf16.gmra.mxu0 %v3403_v30  ;;  %v3228_v1 = vsel %vm1142_vm3, %v3223_v9, %v3227_v29  ;;  %v3232_v30 = vshll.u32 %v2931_v34, 16  ;;  %v3230_v9 = vshrl.u32 %v2931_v34, 16 }
 0x203   : > { %v2730_v41 = vadd.f32 %v2729_v57, %v2497_v63  ;;  %v2954_v63 = vld [vmem:[#allocation2 + $0x8c] sm:$0x1]  ;;  %v1429_v12 = vsel %vm1399_vm4, %v1427_v49, %v1428_v25  ;;  %v2955_v49 = vld [vmem:[#allocation2 + $0x98] sm:$0x1] }
 0x204   : > { %v3234_v29 = vrot.slane %v3232_v30, 1 }
 0x205   : > { %v2498_v20 = vpop.f32.mrf.mxu2  ;;  %2871 = vmatmul.bf16.gmra.mxu1 %v1426_v23  ;;  %v6116_v32 = vadd.f32 %v2818_v35, %v2730_v41  ;;  %v3098_v35 = vunpack.c.l.b16 %v2954_v63 }
 0x206   : > { %v2499_v14 = vadd.f32 %v2498_v20, %v2410_v2 }
 0x207   : > { %6283 = vst [vmem:[#allocation22_spill] sm:$0xff] %v6116_v32  ;;  %v3823_v20 = vpop.f32.mrf.mxu0  ;;  %v3114_v13 = vpack.c.b16 %v3098_v35, %v3098_v35 }
 0x209   : > { %v3237_v63 = vshll.u32 %v3114_v13, 16 }
 0x20a   : > { %v2731_v57 = vpop.f32.mrf.mxu3  ;;  %3682 = vmatmul.bf16.gmra.mxu2 %v4985_v54  ;;  %v2834_v51 = vpop.f32.mrf.mxu1 }
 0x20b   : > { %v2732_v23 = vadd.f32 %v2731_v57, %v2499_v14  ;;  %v3404_v14 = vrot.slane %v5119_v4, 1  ;;  %v3405_v57 = vrot.slane %v3114_v13, 1  ;;  %v3239_v35 = vrot.slane %v3237_v63, 1 }
 0x20d   : > { %v3643_v41 = vpop.f32.mrf.mxu2  ;;  %v6121_v2 = vadd.f32 %v2820_v42, %v2732_v23  ;;  %v3406_v3 = vsel %vm1399_vm4, %v3404_v14, %v3405_v57  ;;  %v4942_v23 = vld [vmem:[#allocation2 + $0x78] sm:$0xe]  ;;  %v3099_v57 = vunpack.c.l.b16 %v2955_v49 }
 0x20e   : > { %v4943_v30 = vor.u32 %v4942_v23, %v4941_v16  ;;  %v1431_v16 = vrot.slane %v5868_v5, 1 }
 0x20f   : > { %6285 = vst [vmem:[#allocation5_spill] sm:$0xff] %v6121_v2  ;;  %3771 = vmatmul.bf16.gmra.mxu3 %v3228_v1  ;;  %v3826_v43 = vpop.f32.mrf.mxu0  ;;  %v3235_v1 = vor.u32 %v3234_v29, %v3230_v9  ;;  %v5005_v2 = vld [vmem:[#allocation2 + $0x90] sm:$0xe] }
 0x211   : > { %v3240_v14 = vsel %vm1142_vm3, %v3235_v1, %v3239_v35 }
 0x212   : > { %v3732_v54 = vpop.f32.mrf.mxu3  ;;  %v2837_v32 = vpop.f32.mrf.mxu1  ;;  %3865 = vmatmul.bf16.gmra.mxu0 %v3406_v3  ;;  %v1430_v3 = vrot.slane %v4943_v30, 1 }
 0x213   : > { %v3733_v42 = vadd.f32 %v3732_v54, %v3643_v41  ;;  %v6287_v41 = vld [vmem:[#allocation25_spill] sm:$0xff] }
 0x214   : > { %v2833_v13 = vadd.f32 %v6112_v15, %v6287_v41  ;;  %v1432_v49 = vsel %vm1399_vm4, %v1430_v3, %v1431_v16  ;;  %v5121_v41 = vld [vmem:[#allocation2 + $0x84] sm:$0xe]  ;;  %v5124_v16 = vld [vmem:[#allocation2 + $0x9c] sm:$0xe] }
 0x215   : > { %v3645_v48 = vpop.f32.mrf.mxu2  ;;  %2876 = vmatmul.bf16.gmra.mxu1 %v1429_v12  ;;  %v3822_v47 = vadd.f32 %v3821_v0, %v3733_v42  ;;  %v5004_v12 = vld [vmem:[#allocation2 + $0x90] sm:$0xf0]  ;;  %v2835_v0 = vadd.f32 %v2834_v51, %v5877_v45 }
 0x216   : > { %v4986_v42 = vld [vmem:[#allocation2 + $0x90] sm:$0xff]   ;;  %v5006_v23 = vor.u32 %v5005_v2, %v5004_v12 }
 0x217   : > { %v3901_v9 = vadd.f32 %v3822_v47, %v2833_v13  ;;  %v3244_v15 = vshll.u32 %v4986_v42, 16  ;;  %v3242_v13 = vshrl.u32 %v4986_v42, 16 }
 0x218   : > { %v3407_v5 = vrot.slane %v5006_v23, 1 }
 0x219   : > { %v4034_v45 = vmul.f32 %v3901_v9, %v3901_v9 }
 0x21a   : > { %v3734_v25 = vpop.f32.mrf.mxu3  ;;  %3687 = vmatmul.bf16.gmra.mxu2 %v2931_v34  ;;  %v6127_v4 = vpop.f32.mrf.mxu1 }
 0x21b   : > { %v3735_v54 = vadd.f32 %v3734_v25, %v3645_v48  ;;  %v3828_v34 = vpop.f32.mrf.mxu0  ;;  %v3115_v48 = vpack.c.b16 %v3099_v57, %v3099_v57 }
 0x21d   : > { %v3824_v29 = vadd.f32 %v3823_v20, %v3735_v54  ;;  %v3648_v63 = vpop.f32.mrf.mxu2  ;;  %v3408_v2 = vrot.slane %v3115_v48, 1  ;;  %v3246_v54 = vrot.slane %v3244_v15, 1  ;;  %v3249_v12 = vshll.u32 %v3115_v48, 16 }
 0x21f   : > { %v3902_v6 = vadd.f32 %v3824_v29, %v2835_v0  ;;  %3776 = vmatmul.bf16.gmra.mxu3 %v3240_v14  ;;  %v2838_v14 = vadd.f32 %v2837_v32, %v5892_v50  ;;  %v3409_v26 = vsel %vm1399_vm4, %v3407_v5, %v3408_v2  ;;  %v3247_v23 = vor.u32 %v3246_v54, %v3242_v13 }
 0x220   : > { %v5122_v50 = vor.u32 %v5121_v41, %v5883_v31  ;;  %v2840_v5 = vadd.f32 %v6127_v4, %v5905_v21 }
 0x221   : > { %v4827_v51 = vpack.c.bf16 %v3902_v6, %v3901_v9  ;;  %v3997_v20 = vadd.f32 %v3902_v6, %v3901_v9  ;;  %v4035_v1 = vmul.f32 %v3902_v6, %v3902_v6  ;;  %v2935_v9 = vld [vmem:[#allocation2 + $0x9c] sm:$0xff]  }
 0x222   : > { %v3737_v35 = vpop.f32.mrf.mxu3  ;;  %v2842_v47 = vpop.f32.mrf.mxu1  ;;  %v5123_v6 = vld [vmem:[#allocation2 + $0x9c] sm:$0xf0]  ;;  %3870 = vmatmul.bf16.gmra.mxu0 %v3409_v26  ;;  %v1434_v26 = vrot.slane %v5900_v53, 1 }
 0x223   : > { %4828 = vst [vmem:[%s6137_s23] sm:$0xff] %v4827_v51   ;;  %v4066_v25 = vadd.f32 %v4035_v1, %v4034_v45  ;;  %v3738_v30 = vadd.f32 %v3737_v35, %v3648_v63  ;;  %v3831_v29 = vpop.f32.mrf.mxu0  ;;  %v3251_v51 = vrot.slane %v3249_v12, 1  ;;  %v2956_v1 = vld [vmem:[#allocation2 + $0xa4] sm:$0x1]  ;;  %v5125_v54 = vor.u32 %v5124_v16, %v5123_v6 }
 0x224   : > { %v3256_v12 = vshll.u32 %v2935_v9, 16  ;;  %v2843_v6 = vadd.f32 %v2842_v47, %v5924_v39 }
 0x225   : > { %v3827_v57 = vadd.f32 %v3826_v43, %v3738_v30  ;;  %v3650_v0 = vpop.f32.mrf.mxu2  ;;  %2881 = vmatmul.bf16.gmra.mxu1 %v1432_v49  ;;  %v3252_v35 = vsel %vm1142_vm3, %v3247_v23, %v3251_v51  ;;  %v3100_v49 = vunpack.c.l.b16 %v2956_v1  ;;  %v3410_v21 = vrot.slane %v5125_v54, 1 }
 0x226   : > { %v3258_v1 = vrot.slane %v3256_v12, 1 }
 0x227   : > { %v3903_v3 = vadd.f32 %v3827_v57, %v2838_v14  ;;  %v3116_v31 = vpack.c.b16 %v3100_v49, %v3100_v49 }
 0x229   : > { %v3998_v45 = vadd.f32 %v3997_v20, %v3903_v3  ;;  %v4036_v63 = vmul.f32 %v3903_v3, %v3903_v3  ;;  %v1433_v20 = vrot.slane %v5122_v50, 1  ;;  %v3411_v4 = vrot.slane %v3116_v31, 1 }
 0x22a   : > { %v3739_v15 = vpop.f32.mrf.mxu3  ;;  %3692 = vmatmul.bf16.gmra.mxu2 %v4986_v42  ;;  %v2844_v48 = vpop.f32.mrf.mxu1  ;;  %v3261_v53 = vshll.u32 %v3116_v31, 16 }
 0x22b   : > { %v4067_v32 = vadd.f32 %v4066_v25, %v4036_v63  ;;  %v3740_v43 = vadd.f32 %v3739_v15, %v3650_v0  ;;  %v3833_v13 = vpop.f32.mrf.mxu0  ;;  %v1435_v23 = vsel %vm1399_vm4, %v1433_v20, %v1434_v26  ;;  %v3254_v63 = vshrl.u32 %v2935_v9, 16 }
 0x22d   : > { %v3829_v2 = vadd.f32 %v3828_v34, %v3740_v43  ;;  %v3653_v30 = vpop.f32.mrf.mxu2  ;;  %v4944_v43 = vld [vmem:[#allocation2 + $0x90] sm:$0xf0]  ;;  %v3259_v49 = vor.u32 %v3258_v1, %v3254_v63 }
 0x22f   : > { %v3904_v42 = vadd.f32 %v3829_v2, %v2840_v5  ;;  %3781 = vmatmul.bf16.gmra.mxu3 %v3252_v35  ;;  %v4945_v35 = vld [vmem:[#allocation2 + $0x90] sm:$0xe]  ;;  %v3263_v5 = vrot.slane %v3261_v53, 1 }
 0x230   : > { %v4946_v54 = vor.u32 %v4945_v35, %v4944_v43  ;;  %v5127_v35 = vld [vmem:[#allocation2 + $0x9c] sm:$0xe] }
 0x231   : > { %v4832_v25 = vpack.c.bf16 %v3904_v42, %v3903_v3  ;;  %v3999_v41 = vadd.f32 %v3998_v45, %v3904_v42  ;;  %v4037_v14 = vmul.f32 %v3904_v42, %v3904_v42  ;;  %v3412_v45 = vsel %vm1399_vm4, %v3410_v21, %v3411_v4  ;;  %v5008_v42 = vld [vmem:[#allocation2 + $0xa8] sm:$0xe] }
 0x232   : > { %v3742_v57 = vpop.f32.mrf.mxu3  ;;  %v2847_v0 = vpop.f32.mrf.mxu1  ;;  %3875 = vmatmul.bf16.gmra.mxu0 %v3412_v45  ;;  %v3264_v12 = vsel %vm1142_vm3, %v3259_v49, %v3263_v5  ;;  %v1436_v21 = vrot.slane %v4946_v54, 1  ;;  %v1437_v4 = vrot.slane %v5932_v52, 1 }
 0x233   : > { %5013 = vst [vmem:[%s6137_s23 + $0x8] sm:$0xff] %v4832_v25   ;;  %v4068_v34 = vadd.f32 %v4067_v32, %v4037_v14  ;;  %v3743_v51 = vadd.f32 %v3742_v57, %v3653_v30  ;;  %v3836_v3 = vpop.f32.mrf.mxu0  ;;  %v2957_v32 = vld [vmem:[#allocation2 + $0xb0] sm:$0x1]  ;;  %v2845_v25 = vadd.f32 %v2844_v48, %v5941_v36 }
 0x234   : > { %v3101_v31 = vunpack.c.l.b16 %v2957_v32  ;;  %v1438_v36 = vsel %vm1399_vm4, %v1436_v21, %v1437_v4 }
 0x235   : > { %v3832_v16 = vadd.f32 %v3831_v29, %v3743_v51  ;;  %v3655_v15 = vpop.f32.mrf.mxu2  ;;  %2886 = vmatmul.bf16.gmra.mxu1 %v1435_v23  ;;  %v5007_v29 = vld [vmem:[#allocation2 + $0xa8] sm:$0xf0] }
 0x236   : > { %v4987_v23 = vld [vmem:[#allocation2 + $0xa8] sm:$0xff]   ;;  %v3117_v63 = vpack.c.b16 %v3101_v31, %v3101_v31 }
 0x237   : > { %v3905_v50 = vadd.f32 %v3832_v16, %v2843_v6  ;;  %v3266_v49 = vshrl.u32 %v4987_v23, 16 }
 0x238   : > { %v3273_v5 = vshll.u32 %v3117_v63, 16 }
 0x239   : > { %v4000_v2 = vadd.f32 %v3999_v41, %v3905_v50  ;;  %v4038_v20 = vmul.f32 %v3905_v50, %v3905_v50 }
 0x23a   : > { %v3744_v30 = vpop.f32.mrf.mxu3  ;;  %3697 = vmatmul.bf16.gmra.mxu2 %v2935_v9  ;;  %v2849_v26 = vpop.f32.mrf.mxu1  ;;  %v5009_v9 = vor.u32 %v5008_v42, %v5007_v29  ;;  %v5130_v42 = vld [vmem:[#allocation2 + $0xb4] sm:$0xe]  ;;  %v3275_v31 = vrot.slane %v3273_v5, 1 }
 0x23b   : > { %v4069_v39 = vadd.f32 %v4068_v34, %v4038_v20  ;;  %v3745_v47 = vadd.f32 %v3744_v30, %v3655_v15  ;;  %v3838_v41 = vpop.f32.mrf.mxu0  ;;  %v3268_v34 = vshll.u32 %v4987_v23, 16  ;;  %v2848_v20 = vadd.f32 %v2847_v0, %v5954_v8 }
 0x23c   : > { %v3413_v48 = vrot.slane %v5009_v9, 1  ;;  %v5128_v8 = vor.u32 %v5127_v35, %v5947_v17 }
 0x23d   : > { %v3834_v14 = vadd.f32 %v3833_v13, %v3745_v47  ;;  %v3658_v57 = vpop.f32.mrf.mxu2  ;;  %v3414_v13 = vrot.slane %v3117_v63, 1  ;;  %v3270_v52 = vrot.slane %v3268_v34, 1 }
 0x23f   : > { %v3906_v51 = vadd.f32 %v3834_v14, %v2845_v25  ;;  %3786 = vmatmul.bf16.gmra.mxu3 %v3264_v12  ;;  %v3415_v47 = vsel %vm1399_vm4, %v3413_v48, %v3414_v13  ;;  %v3271_v12 = vor.u32 %v3270_v52, %v3266_v49  ;;  %v2958_v14 = vld [vmem:[#allocation2 + $0xbc] sm:$0x1] }
 0x240   : > { %v3102_v9 = vunpack.c.l.b16 %v2958_v14 }
 0x241   : > { %v4837_v1 = vpack.c.bf16 %v3906_v51, %v3905_v50  ;;  %v4001_v53 = vadd.f32 %v4000_v2, %v3906_v51  ;;  %v4039_v6 = vmul.f32 %v3906_v51, %v3906_v51  ;;  %v2939_v50 = vld [vmem:[#allocation2 + $0xb4] sm:$0xff]   ;;  %v3276_v4 = vsel %vm1142_vm3, %v3271_v12, %v3275_v31  ;;  %v4947_v12 = vld [vmem:[#allocation2 + $0xa8] sm:$0xf0]  ;;  %v4948_v31 = vld [vmem:[#allocation2 + $0xa8] sm:$0xe] }
 0x242   : > { %v3747_v16 = vpop.f32.mrf.mxu3  ;;  %v2852_v15 = vpop.f32.mrf.mxu1  ;;  %v5129_v2 = vld [vmem:[#allocation2 + $0xb4] sm:$0xf0]  ;;  %3880 = vmatmul.bf16.gmra.mxu0 %v3415_v47  ;;  %v2850_v51 = vadd.f32 %v2849_v26, %v5962_v10  ;;  %v3118_v48 = vpack.c.b16 %v3102_v9, %v3102_v9  ;;  %v3278_v5 = vshrl.u32 %v2939_v50, 16  ;;  %v5011_v9 = vld [vmem:[#allocation2 + $0xc0] sm:$0xe] }
 0x243   : > { %5014 = vst [vmem:[%s6137_s23 + $0x10] sm:$0xff] %v4837_v1   ;;  %v4070_v45 = vadd.f32 %v4069_v39, %v4039_v6  ;;  %v3748_v43 = vadd.f32 %v3747_v16, %v3658_v57  ;;  %v3841_v54 = vpop.f32.mrf.mxu0  ;;  %v1440_v6 = vrot.slane %v5958_v60, 1  ;;  %v5131_v16 = vor.u32 %v5130_v42, %v5129_v2 }
 0x244   : > { %v3417_v26 = vrot.slane %v3118_v48, 1  ;;  %v3285_v60 = vshll.u32 %v3118_v48, 16  ;;  %v1443_v48 = vrot.slane %v5988_v22, 1 }
 0x245   : > { %v3837_v32 = vadd.f32 %v3836_v3, %v3748_v43  ;;  %v3660_v30 = vpop.f32.mrf.mxu2  ;;  %2891 = vmatmul.bf16.gmra.mxu1 %v1438_v36  ;;  %v3416_v10 = vrot.slane %v5131_v16, 1  ;;  %v4988_v16 = vld [vmem:[#allocation2 + $0xc0] sm:$0xff]  }
 0x247   : > { %v3907_v29 = vadd.f32 %v3837_v32, %v2848_v20  ;;  %v2853_v32 = vadd.f32 %v2852_v15, %v5980_v24 }
 0x249   : > { %v4002_v39 = vadd.f32 %v4001_v53, %v3907_v29  ;;  %v4040_v25 = vmul.f32 %v3907_v29, %v3907_v29  ;;  %v1439_v53 = vrot.slane %v5128_v8, 1  ;;  %v2959_v8 = vld [vmem:[#allocation2 + $0xc8] sm:$0x1] }
 0x24a   : > { %v3749_v57 = vpop.f32.mrf.mxu3  ;;  %3702 = vmatmul.bf16.gmra.mxu2 %v4987_v23  ;;  %v2854_v21 = vpop.f32.mrf.mxu1  ;;  %v3280_v23 = vshll.u32 %v2939_v50, 16 }
 0x24b   : > { %v4071_v0 = vadd.f32 %v4070_v45, %v4040_v25  ;;  %v3750_v3 = vadd.f32 %v3749_v57, %v3660_v30  ;;  %v3843_v1 = vpop.f32.mrf.mxu0  ;;  %v1441_v49 = vsel %vm1399_vm4, %v1439_v53, %v1440_v6  ;;  %v3287_v25 = vrot.slane %v3285_v60, 1 }
 0x24c   : > { %v3282_v20 = vrot.slane %v3280_v23, 1  ;;  %v3290_v60 = vshrl.u32 %v4988_v16, 16 }
 0x24d   : > { %v3839_v34 = vadd.f32 %v3838_v41, %v3750_v3  ;;  %v3663_v63 = vpop.f32.mrf.mxu2 }
 0x24f   : > { %v3908_v36 = vadd.f32 %v3839_v34, %v2850_v51  ;;  %3791 = vmatmul.bf16.gmra.mxu3 %v3276_v4  ;;  %v4949_v4 = vor.u32 %v4948_v31, %v4947_v12  ;;  %v3103_v34 = vunpack.c.l.b16 %v2959_v8  ;;  %v5135_v12 = vld [vmem:[#allocation2 + $0xcc] sm:$0xf0] }
 0x251   : > { %v4842_v17 = vpack.c.bf16 %v3908_v36, %v3907_v29  ;;  %v4003_v13 = vadd.f32 %v4002_v39, %v3908_v36  ;;  %v4041_v45 = vmul.f32 %v3908_v36, %v3908_v36  ;;  %v3418_v29 = vsel %vm1399_vm4, %v3416_v10, %v3417_v26 }
 0x252   : > { %v3752_v43 = vpop.f32.mrf.mxu3  ;;  %v2857_v35 = vpop.f32.mrf.mxu1  ;;  %v3283_v39 = vor.u32 %v3282_v20, %v3278_v5  ;;  %3885 = vmatmul.bf16.gmra.mxu0 %v3418_v29  ;;  %v1442_v23 = vrot.slane %v4949_v4, 1  ;;  %v5133_v20 = vld [vmem:[#allocation2 + $0xb4] sm:$0xe] }
 0x253   : > { %5015 = vst [vmem:[%s6137_s23 + $0x18] sm:$0xff] %v4842_v17   ;;  %v4072_v41 = vadd.f32 %v4071_v0, %v4041_v45  ;;  %v3753_v52 = vadd.f32 %v3752_v43, %v3663_v63  ;;  %v3846_v47 = vpop.f32.mrf.mxu0  ;;  %v2855_v63 = vadd.f32 %v2854_v21, %v5994_v11  ;;  %v3119_v45 = vpack.c.b16 %v3103_v34, %v3103_v34 }
 0x254   : > { %v3288_v51 = vsel %vm1142_vm3, %v3283_v39, %v3287_v25  ;;  %v1444_v11 = vsel %vm1399_vm4, %v1442_v23, %v1443_v48  ;;  %v1446_v48 = vrot.slane %v6009_v55, 1 }
 0x255   : > { %v3842_v30 = vadd.f32 %v3841_v54, %v3753_v52  ;;  %v3665_v2 = vpop.f32.mrf.mxu2  ;;  %2896 = vmatmul.bf16.gmra.mxu1 %v1441_v49  ;;  %v5010_v54 = vld [vmem:[#allocation2 + $0xc0] sm:$0xf0] }
 0x257   : > { %v3909_v42 = vadd.f32 %v3842_v30, %v2853_v32  ;;  %v3297_v32 = vshll.u32 %v3119_v45, 16  ;;  %v2858_v30 = vadd.f32 %v2857_v35, %v6005_v7  ;;  %v5134_v7 = vor.u32 %v5133_v20, %v6000_v28 }
 0x259   : > { %v4004_v14 = vadd.f32 %v4003_v13, %v3909_v42  ;;  %v4042_v57 = vmul.f32 %v3909_v42, %v3909_v42  ;;  %v3292_v13 = vshll.u32 %v4988_v16, 16  ;;  %v3299_v8 = vrot.slane %v3297_v32, 1 }
 0x25a   : > { %v3754_v0 = vpop.f32.mrf.mxu3  ;;  %3707 = vmatmul.bf16.gmra.mxu2 %v2939_v50  ;;  %v2859_v3 = vpop.f32.mrf.mxu1  ;;  %v5012_v50 = vor.u32 %v5011_v9, %v5010_v54  ;;  %v1445_v23 = vrot.slane %v5134_v7, 1 }
 0x25b   : > { %v4073_v24 = vadd.f32 %v4072_v41, %v4042_v57  ;;  %v3755_v15 = vadd.f32 %v3754_v0, %v3665_v2  ;;  %v3848_v36 = vpop.f32.mrf.mxu0  ;;  %v3294_v22 = vrot.slane %v3292_v13, 1  ;;  %v2860_v34 = vadd.f32 %v2859_v3, %v6013_v56 }
 0x25c   : > { %v3419_v21 = vrot.slane %v5012_v50, 1 }
 0x25d   : > { %v3844_v53 = vadd.f32 %v3843_v1, %v3755_v15  ;;  %v3668_v6 = vpop.f32.mrf.mxu2  ;;  %v3420_v1 = vrot.slane %v3119_v45, 1  ;;  %v3295_v57 = vor.u32 %v3294_v22, %v3290_v60 }
 0x25f   : > { %v3910_v17 = vadd.f32 %v3844_v53, %v2855_v63  ;;  %3796 = vmatmul.bf16.gmra.mxu3 %v3288_v51  ;;  %v3421_v39 = vsel %vm1399_vm4, %v3419_v21, %v3420_v1  ;;  %v3300_v9 = vsel %vm1142_vm3, %v3295_v57, %v3299_v8 }
 0x261   : > { %v4847_v43 = vpack.c.bf16 %v3910_v17, %v3909_v42  ;;  %v4005_v49 = vadd.f32 %v4004_v14, %v3910_v17  ;;  %v4043_v10 = vmul.f32 %v3910_v17, %v3910_v17  ;;  %v2943_v42 = vld [vmem:[#allocation2 + $0xcc] sm:$0xff]  }
 0x262   : > { %v3757_v26 = vpop.f32.mrf.mxu3  ;;  %v2862_v41 = vpop.f32.mrf.mxu1  ;;  %v5136_v14 = vld [vmem:[#allocation2 + $0xcc] sm:$0xe]  ;;  %3890 = vmatmul.bf16.gmra.mxu0 %v3421_v39  ;;  %v3302_v21 = vshrl.u32 %v2943_v42, 16 }
 0x263   : > { %5016 = vst [vmem:[%s6137_s23 + $0x20] sm:$0xff] %v4847_v43   ;;  %v4074_v52 = vadd.f32 %v4073_v24, %v4043_v10  ;;  %v3758_v5 = vadd.f32 %v3757_v26, %v3668_v6  ;;  %v3851_v31 = vpop.f32.mrf.mxu0  ;;  %v2960_v24 = vld [vmem:[#allocation2 + $0xd4] sm:$0x1]  ;;  %v5137_v50 = vor.u32 %v5136_v14, %v5135_v12  ;;  %v1447_v26 = vsel %vm1399_vm4, %v1445_v23, %v1446_v48 }
 0x264   : > { %v3104_v51 = vunpack.c.l.b16 %v2960_v24 }
 0x265   : > { %v3847_v2 = vadd.f32 %v3846_v47, %v3758_v5  ;;  %v3670_v29 = vpop.f32.mrf.mxu2  ;;  %2901 = vmatmul.bf16.gmra.mxu1 %v1444_v11  ;;  %v3422_v56 = vrot.slane %v5137_v50, 1 }
 0x266   : > { %v3120_v13 = vpack.c.b16 %v3104_v51, %v3104_v51 }
 0x267   : > { %v3911_v25 = vadd.f32 %v3847_v2, %v2858_v30 }
 0x268   : > { %v3423_v3 = vrot.slane %v3120_v13, 1  ;;  %v3309_v55 = vshll.u32 %v3120_v13, 16 }
 0x269   : > { %v4006_v0 = vadd.f32 %v4005_v49, %v3911_v25  ;;  %v4044_v4 = vmul.f32 %v3911_v25, %v3911_v25 }
 0x26a   : > { %v3759_v15 = vpop.f32.mrf.mxu3  ;;  %3712 = vmatmul.bf16.gmra.mxu2 %v4988_v16  ;;  %v2864_v54 = vpop.f32.mrf.mxu1  ;;  %v3304_v16 = vshll.u32 %v2943_v42, 16  ;;  %v3424_v22 = vsel %vm1399_vm4, %v3422_v56, %v3423_v3  ;;  %v3311_v2 = vrot.slane %v3309_v55, 1 }
 0x26b   : > { %v4075_v35 = vadd.f32 %v4074_v52, %v4044_v4  ;;  %v3760_v47 = vadd.f32 %v3759_v15, %v3670_v29  ;;  %v3853_v6 = vpop.f32.mrf.mxu0  ;;  %v2863_v52 = vadd.f32 %v2862_v41, %v6019_v27  ;;  %v2865_v41 = vadd.f32 %v2864_v54, %v6024_v38 }
 0x26c   : > { %v3306_v1 = vrot.slane %v3304_v16, 1 }
 0x26d   : > { %v3849_v63 = vadd.f32 %v3848_v36, %v3760_v47  ;;  %v3673_v53 = vpop.f32.mrf.mxu2 }
 0x26e   : > { %v3307_v30 = vor.u32 %v3306_v1, %v3302_v21 }
 0x26f   : > { %v3912_v17 = vadd.f32 %v3849_v63, %v2860_v34  ;;  %3801 = vmatmul.bf16.gmra.mxu3 %v3300_v9 }
 0x270   : > { %v3312_v27 = vsel %vm1142_vm3, %v3307_v30, %v3311_v2 }
 0x271   : > { %v4852_v28 = vpack.c.bf16 %v3912_v17, %v3911_v25  ;;  %v4007_v45 = vadd.f32 %v4006_v0, %v3912_v17  ;;  %v4045_v43 = vmul.f32 %v3912_v17, %v3912_v17 }
 0x272   : > { %v3762_v49 = vpop.f32.mrf.mxu3  ;;  %v2867_v10 = vpop.f32.mrf.mxu1  ;;  %3895 = vmatmul.bf16.gmra.mxu0 %v3424_v22 }
 0x273   : > { %5017 = vst [vmem:[%s6137_s23 + $0x28] sm:$0xff] %v4852_v28   ;;  %v4076_v36 = vadd.f32 %v4075_v35, %v4045_v43  ;;  %v3763_v11 = vadd.f32 %v3762_v49, %v3673_v53  ;;  %v3856_v60 = vpop.f32.mrf.mxu0  ;;  %v2868_v51 = vadd.f32 %v2867_v10, %v6030_v33 }
 0x275   : > { %v3852_v5 = vadd.f32 %v3851_v31, %v3763_v11  ;;  %v3675_v20 = vpop.f32.mrf.mxu2  ;;  %2906 = vmatmul.bf16.gmra.mxu1 %v1447_v26 }
 0x277   : > { %v3913_v32 = vadd.f32 %v3852_v5, %v2863_v52 }
 0x279   : > { %v4008_v29 = vadd.f32 %v4007_v45, %v3913_v32  ;;  %v4046_v12 = vmul.f32 %v3913_v32, %v3913_v32 }
 0x27a   : > { %v3764_v39 = vpop.f32.mrf.mxu3  ;;  %3717 = vmatmul.bf16.gmra.mxu2 %v2943_v42  ;;  %v2869_v25 = vpop.f32.mrf.mxu1 }
 0x27b   : > { %v4077_v14 = vadd.f32 %v4076_v36, %v4046_v12  ;;  %v3765_v57 = vadd.f32 %v3764_v39, %v3675_v20  ;;  %v3858_v0 = vpop.f32.mrf.mxu0  ;;  %v2870_v16 = vadd.f32 %v2869_v25, %v6036_v62 }
 0x27d   : > { %v3854_v31 = vadd.f32 %v3853_v6, %v3765_v57  ;;  %v3678_v8 = vpop.f32.mrf.mxu2 }
 0x27f   : > { %v3914_v4 = vadd.f32 %v3854_v31, %v2865_v41  ;;  %3806 = vmatmul.bf16.gmra.mxu3 %v3312_v27 }
 0x281   : > { %v4857_v24 = vpack.c.bf16 %v3914_v4, %v3913_v32  ;;  %v4009_v15 = vadd.f32 %v4008_v29, %v3914_v4  ;;  %v4047_v7 = vmul.f32 %v3914_v4, %v3914_v4 }
 0x282   : > { %v3767_v35 = vpop.f32.mrf.mxu3  ;;  %v2872_v47 = vpop.f32.mrf.mxu1 }
 0x283   : > { %5018 = vst [vmem:[%s6137_s23 + $0x30] sm:$0xff] %v4857_v24   ;;  %v4078_v42 = vadd.f32 %v4077_v14, %v4047_v7  ;;  %v3768_v9 = vadd.f32 %v3767_v35, %v3678_v8  ;;  %v3861_v53 = vpop.f32.mrf.mxu0  ;;  %v2873_v11 = vadd.f32 %v2872_v47, %v6041_v40 }
 0x285   : > { %v3857_v34 = vadd.f32 %v3856_v60, %v3768_v9  ;;  %v3680_v63 = vpop.f32.mrf.mxu2 }
 0x287   : > { %v3915_v23 = vadd.f32 %v3857_v34, %v2868_v51 }
 0x289   : > { %v4010_v38 = vadd.f32 %v4009_v15, %v3915_v23  ;;  %v4048_v54 = vmul.f32 %v3915_v23, %v3915_v23 }
 0x28a   : > { %v3769_v6 = vpop.f32.mrf.mxu3  ;;  %v2874_v48 = vpop.f32.mrf.mxu1 }
 0x28b   : > { %v4079_v50 = vadd.f32 %v4078_v42, %v4048_v54  ;;  %v3770_v17 = vadd.f32 %v3769_v6, %v3680_v63  ;;  %v3863_v45 = vpop.f32.mrf.mxu0  ;;  %v2875_v30 = vadd.f32 %v2874_v48, %v6046_v59 }
 0x28d   : > { %v3859_v13 = vadd.f32 %v3858_v0, %v3770_v17  ;;  %v3683_v28 = vpop.f32.mrf.mxu2 }
 0x28f   : > { %v3916_v43 = vadd.f32 %v3859_v13, %v2870_v16 }
 0x291   : > { %v4862_v49 = vpack.c.bf16 %v3916_v43, %v3915_v23  ;;  %v4011_v26 = vadd.f32 %v4010_v38, %v3916_v43  ;;  %v4049_v33 = vmul.f32 %v3916_v43, %v3916_v43 }
 0x292   : > { %v3772_v10 = vpop.f32.mrf.mxu3  ;;  %v2877_v56 = vpop.f32.mrf.mxu1 }
 0x293   : > { %5019 = vst [vmem:[%s6137_s23 + $0x38] sm:$0xff] %v4862_v49   ;;  %v4080_v3 = vadd.f32 %v4079_v50, %v4049_v33  ;;  %v3773_v36 = vadd.f32 %v3772_v10, %v3683_v28  ;;  %v3866_v55 = vpop.f32.mrf.mxu0  ;;  %v2878_v8 = vadd.f32 %v2877_v56, %v6051_v58 }
 0x295   : > { %v3862_v21 = vadd.f32 %v3861_v53, %v3773_v36  ;;  %v3685_v1 = vpop.f32.mrf.mxu2 }
 0x297   : > { %v3917_v52 = vadd.f32 %v3862_v21, %v2873_v11 }
 0x299   : > { %v4012_v5 = vadd.f32 %v4011_v26, %v3917_v52  ;;  %v4050_v62 = vmul.f32 %v3917_v52, %v3917_v52 }
 0x29a   : > { %v3774_v20 = vpop.f32.mrf.mxu3  ;;  %v2879_v60 = vpop.f32.mrf.mxu1 }
 0x29b   : > { %v4081_v22 = vadd.f32 %v4080_v3, %v4050_v62  ;;  %v3775_v32 = vadd.f32 %v3774_v20, %v3685_v1  ;;  %v3868_v12 = vpop.f32.mrf.mxu0  ;;  %v2880_v51 = vadd.f32 %v2879_v60, %v6057_v18 }
 0x29d   : > { %v3864_v2 = vadd.f32 %v3863_v45, %v3775_v32  ;;  %v3688_v29 = vpop.f32.mrf.mxu2 }
 0x29f   : > { %v3918_v39 = vadd.f32 %v3864_v2, %v2875_v30 }
 0x2a1   : > { %v4867_v25 = vpack.c.bf16 %v3918_v39, %v3917_v52  ;;  %v4013_v14 = vadd.f32 %v4012_v5, %v3918_v39  ;;  %v4051_v40 = vmul.f32 %v3918_v39, %v3918_v39 }
 0x2a2   : > { %v3777_v57 = vpop.f32.mrf.mxu3  ;;  %v2882_v27 = vpop.f32.mrf.mxu1 }
 0x2a3   : > { %5020 = vst [vmem:[%s6137_s23 + $0x40] sm:$0xff] %v4867_v25   ;;  %v4082_v41 = vadd.f32 %v4081_v22, %v4051_v40  ;;  %v3778_v31 = vadd.f32 %v3777_v57, %v3688_v29  ;;  %v3871_v24 = vpop.f32.mrf.mxu0  ;;  %v2883_v16 = vadd.f32 %v2882_v27, %v6062_v19 }
 0x2a5   : > { %v3867_v0 = vadd.f32 %v3866_v55, %v3778_v31  ;;  %v3690_v4 = vpop.f32.mrf.mxu2 }
 0x2a7   : > { %v3919_v15 = vadd.f32 %v3867_v0, %v2878_v8 }
 0x2a9   : > { %v4014_v7 = vadd.f32 %v4013_v14, %v3919_v15  ;;  %v4052_v59 = vmul.f32 %v3919_v15, %v3919_v15 }
 0x2aa   : > { %v3779_v35 = vpop.f32.mrf.mxu3  ;;  %v2884_v47 = vpop.f32.mrf.mxu1 }
 0x2ab   : > { %v4083_v42 = vadd.f32 %v4082_v41, %v4052_v59  ;;  %v3780_v9 = vadd.f32 %v3779_v35, %v3690_v4  ;;  %v3873_v53 = vpop.f32.mrf.mxu0  ;;  %v2885_v3 = vadd.f32 %v2884_v47, %v6067_v61 }
 0x2ad   : > { %v3869_v34 = vadd.f32 %v3868_v12, %v3780_v9  ;;  %v3693_v63 = vpop.f32.mrf.mxu2 }
 0x2af   : > { %v3920_v23 = vadd.f32 %v3869_v34, %v2880_v51 }
 0x2b1   : > { %v4872_v38 = vpack.c.bf16 %v3920_v23, %v3919_v15  ;;  %v4015_v54 = vadd.f32 %v4014_v7, %v3920_v23  ;;  %v4053_v58 = vmul.f32 %v3920_v23, %v3920_v23 }
 0x2b2   : > { %v3782_v6 = vpop.f32.mrf.mxu3  ;;  %v2887_v48 = vpop.f32.mrf.mxu1 }
 0x2b3   : > { %5021 = vst [vmem:[%s6137_s23 + $0x48] sm:$0xff] %v4872_v38   ;;  %v4084_v50 = vadd.f32 %v4083_v42, %v4053_v58  ;;  %v3783_v17 = vadd.f32 %v3782_v6, %v3693_v63  ;;  %v3876_v45 = vpop.f32.mrf.mxu0  ;;  %v2888_v22 = vadd.f32 %v2887_v48, %v6072_v46  ;;  %v6288_v38 = vld [vmem:[#allocation13_spill] sm:$0xff] }
 0x2b5   : > { %v3872_v13 = vadd.f32 %v3871_v24, %v3783_v17  ;;  %v3695_v28 = vpop.f32.mrf.mxu2 }
 0x2b7   : > { %v3921_v43 = vadd.f32 %v3872_v13, %v2883_v16 }
 0x2b9   : > { %v4016_v18 = vadd.f32 %v4015_v54, %v3921_v43  ;;  %v4054_v49 = vmul.f32 %v3921_v43, %v3921_v43 }
 0x2ba   : > { %v3784_v26 = vpop.f32.mrf.mxu3  ;;  %v2889_v33 = vpop.f32.mrf.mxu1 }
 0x2bb   : > { %v4085_v10 = vadd.f32 %v4084_v50, %v4054_v49  ;;  %v3785_v56 = vadd.f32 %v3784_v26, %v3695_v28  ;;  %v3878_v21 = vpop.f32.mrf.mxu0  ;;  %v2890_v40 = vadd.f32 %v2889_v33, %v6078_v44 }
 0x2bd   : > { %v3874_v36 = vadd.f32 %v3873_v53, %v3785_v56  ;;  %v3698_v11 = vpop.f32.mrf.mxu2 }
 0x2bf   : > { %v3922_v1 = vadd.f32 %v3874_v36, %v2885_v3 }
 0x2c1   : > { %v4877_v55 = vpack.c.bf16 %v3922_v1, %v3921_v43  ;;  %v4017_v52 = vadd.f32 %v4016_v18, %v3922_v1  ;;  %v4055_v19 = vmul.f32 %v3922_v1, %v3922_v1  ;;  %v6289_v18 = vld [vmem:[#allocation3_spill] sm:$0xff] }
 0x2c2   : > { %v3787_v5 = vpop.f32.mrf.mxu3  ;;  %v2892_v60 = vpop.f32.mrf.mxu1 }
 0x2c3   : > { %5022 = vst [vmem:[%s6137_s23 + $0x50] sm:$0xff] %v4877_v55   ;;  %v4086_v62 = vadd.f32 %v4085_v10, %v4055_v19  ;;  %v3788_v20 = vadd.f32 %v3787_v5, %v3698_v11  ;;  %v3881_v2 = vpop.f32.mrf.mxu0  ;;  %v2893_v59 = vadd.f32 %v2892_v60, %v6083_v37  ;;  %v6290_v55 = vld [vmem:[#allocation16_spill] sm:$0xff] }
 0x2c5   : > { %v3877_v32 = vadd.f32 %v3876_v45, %v3788_v20  ;;  %v3700_v30 = vpop.f32.mrf.mxu2 }
 0x2c7   : > { %v3923_v29 = vadd.f32 %v3877_v32, %v2888_v22 }
 0x2c9   : > { %v4018_v61 = vadd.f32 %v4017_v52, %v3923_v29  ;;  %v4056_v12 = vmul.f32 %v3923_v29, %v3923_v29 }
 0x2ca   : > { %v3789_v39 = vpop.f32.mrf.mxu3  ;;  %v2894_v41 = vpop.f32.mrf.mxu1 }
 0x2cb   : > { %v4087_v25 = vadd.f32 %v4086_v62, %v4056_v12  ;;  %v3790_v14 = vadd.f32 %v3789_v39, %v3700_v30  ;;  %v3883_v8 = vpop.f32.mrf.mxu0  ;;  %v2895_v54 = vadd.f32 %v2894_v41, %v6288_v38 }
 0x2cd   : > { %v3879_v57 = vadd.f32 %v3878_v21, %v3790_v14  ;;  %v3703_v27 = vpop.f32.mrf.mxu2 }
 0x2cf   : > { %v3924_v31 = vadd.f32 %v3879_v57, %v2890_v40 }
 0x2d1   : > { %v4882_v0 = vpack.c.bf16 %v3924_v31, %v3923_v29  ;;  %v4019_v4 = vadd.f32 %v4018_v61, %v3924_v31  ;;  %v4057_v46 = vmul.f32 %v3924_v31, %v3924_v31  ;;  %v6291_v61 = vld [vmem:[#allocation19_spill] sm:$0xff] }
 0x2d2   : > { %v3792_v24 = vpop.f32.mrf.mxu3  ;;  %v2897_v9 = vpop.f32.mrf.mxu1 }
 0x2d3   : > { %5023 = vst [vmem:[%s6137_s23 + $0x58] sm:$0xff] %v4882_v0   ;;  %v4088_v15 = vadd.f32 %v4087_v25, %v4057_v46  ;;  %v3793_v7 = vadd.f32 %v3792_v24, %v3703_v27  ;;  %v3886_v63 = vpop.f32.mrf.mxu0  ;;  %v2898_v49 = vadd.f32 %v2897_v9, %v6289_v18 }
 0x2d5   : > { %v3882_v35 = vadd.f32 %v3881_v2, %v3793_v7  ;;  %v3705_v47 = vpop.f32.mrf.mxu2 }
 0x2d7   : > { %v3925_v42 = vadd.f32 %v3882_v35, %v2893_v59 }
 0x2d9   : > { %v4020_v44 = vadd.f32 %v4019_v4, %v3925_v42  ;;  %v4058_v51 = vmul.f32 %v3925_v42, %v3925_v42  ;;  %v6292_v4 = vld [vmem:[#allocation4_spill] sm:$0xff] }
 0x2da   : > { %v3794_v34 = vpop.f32.mrf.mxu3  ;;  %v2899_v13 = vpop.f32.mrf.mxu1 }
 0x2db   : > { %v4089_v53 = vadd.f32 %v4088_v15, %v4058_v51  ;;  %v3795_v23 = vadd.f32 %v3794_v34, %v3705_v47  ;;  %v3888_v43 = vpop.f32.mrf.mxu0  ;;  %v2900_v52 = vadd.f32 %v2899_v13, %v6290_v55  ;;  %v6294_v13 = vld [vmem:[#allocation5_spill] sm:$0xff] }
 0x2dd   : > { %v3884_v58 = vadd.f32 %v3883_v8, %v3795_v23  ;;  %v3708_v6 = vpop.f32.mrf.mxu2 }
 0x2df   : > { %v3926_v48 = vadd.f32 %v3884_v58, %v2895_v54 }
 0x2e1   : > { %v4887_v50 = vpack.c.bf16 %v3926_v48, %v3925_v42  ;;  %v4021_v17 = vadd.f32 %v4020_v44, %v3926_v48  ;;  %v4059_v16 = vmul.f32 %v3926_v48, %v3926_v48 }
 0x2e2   : > { %v3797_v37 = vpop.f32.mrf.mxu3  ;;  %v2902_v1 = vpop.f32.mrf.mxu1 }
 0x2e3   : > { %5024 = vst [vmem:[%s6137_s23 + $0x60] sm:$0xff] %v4887_v50   ;;  %v4090_v28 = vadd.f32 %v4089_v53, %v4059_v16  ;;  %v3798_v45 = vadd.f32 %v3797_v37, %v3708_v6  ;;  %v3891_v62 = vpop.f32.mrf.mxu0  ;;  %v2903_v12 = vadd.f32 %v2902_v1, %v6291_v61 }
 0x2e5   : > { %v3887_v26 = vadd.f32 %v3886_v63, %v3798_v45  ;;  %v3710_v33 = vpop.f32.mrf.mxu2  ;;  %v6293_v63 = vld [vmem:[#allocation22_spill] sm:$0xff] }
 0x2e7   : > { %v3927_v10 = vadd.f32 %v3887_v26, %v2898_v49 }
 0x2e9   : > { %v4022_v56 = vadd.f32 %v4021_v17, %v3927_v10  ;;  %v4060_v3 = vmul.f32 %v3927_v10, %v3927_v10 }
 0x2ea   : > { %v3799_v36 = vpop.f32.mrf.mxu3  ;;  %v2904_v14 = vpop.f32.mrf.mxu1 }
 0x2eb   : > { %v4091_v11 = vadd.f32 %v4090_v28, %v4060_v3  ;;  %v3800_v21 = vadd.f32 %v3799_v36, %v3710_v33  ;;  %v3893_v57 = vpop.f32.mrf.mxu0  ;;  %v2905_v46 = vadd.f32 %v2904_v14, %v6292_v4 }
 0x2ed   : > { %v3889_v19 = vadd.f32 %v3888_v43, %v3800_v21  ;;  %v3713_v5 = vpop.f32.mrf.mxu2 }
 0x2ef   : > { %v3928_v20 = vadd.f32 %v3889_v19, %v2900_v52 }
 0x2f1   : > { %v4892_v60 = vpack.c.bf16 %v3928_v20, %v3927_v10  ;;  %v4023_v22 = vadd.f32 %v4022_v56, %v3928_v20  ;;  %v4061_v32 = vmul.f32 %v3928_v20, %v3928_v20 }
 0x2f2   : > { %v3802_v30 = vpop.f32.mrf.mxu3  ;;  %v2907_v59 = vpop.f32.mrf.mxu1 }
 0x2f3   : > { %5025 = vst [vmem:[%s6137_s23 + $0x68] sm:$0xff] %v4892_v60   ;;  %v4092_v2 = vadd.f32 %v4091_v11, %v4061_v32  ;;  %v3803_v29 = vadd.f32 %v3802_v30, %v3713_v5  ;;  %v3896_v9 = vpop.f32.mrf.mxu0  ;;  %v2908_v53 = vadd.f32 %v2907_v59, %v6293_v63 }
 0x2f5   : > { %v3892_v39 = vadd.f32 %v3891_v62, %v3803_v29  ;;  %v3715_v25 = vpop.f32.mrf.mxu2 }
 0x2f7   : > { %v3929_v40 = vadd.f32 %v3892_v39, %v2903_v12 }
 0x2f9   : > { %v4024_v27 = vadd.f32 %v4023_v22, %v3929_v40  ;;  %v4062_v41 = vmul.f32 %v3929_v40, %v3929_v40 }
 0x2fa   : > { %v3804_v31 = vpop.f32.mrf.mxu3  ;;  %v2909_v48 = vpop.f32.mrf.mxu1 }
 0x2fb   : > { %v4093_v8 = vadd.f32 %v4092_v2, %v4062_v41  ;;  %v3805_v0 = vadd.f32 %v3804_v31, %v3715_v25  ;;  %v3898_v37 = vpop.f32.mrf.mxu0  ;;  %v2910_v28 = vadd.f32 %v2909_v48, %v6294_v13 }
 0x2fd   : > { %v3894_v24 = vadd.f32 %v3893_v57, %v3805_v0  ;;  %v3718_v15 = vpop.f32.mrf.mxu2 }
 0x2ff   : > { %v3930_v7 = vadd.f32 %v3894_v24, %v2905_v46 }
 0x301   : > { %v4897_v35 = vpack.c.bf16 %v3930_v7, %v3929_v40  ;;  %v4025_v47 = vadd.f32 %v4024_v27, %v3930_v7  ;;  %v4063_v42 = vmul.f32 %v3930_v7, %v3930_v7 }
 0x302   : > { %v3807_v44 = vpop.f32.mrf.mxu3 }
 0x303   : > { %5026 = vst [vmem:[%s6137_s23 + $0x70] sm:$0xff] %v4897_v35   ;;  %v4094_v51 = vadd.f32 %v4093_v8, %v4063_v42  ;;  %v3808_v34 = vadd.f32 %v3807_v44, %v3718_v15 }
 0x305   : > { %v3897_v23 = vadd.f32 %v3896_v9, %v3808_v34  ;;  %v3720_v54 = vpop.f32.mrf.mxu2 }
 0x307   : > { %v3931_v38 = vadd.f32 %v3897_v23, %v2908_v53 }
 0x309   : > { %v4026_v58 = vadd.f32 %v4025_v47, %v3931_v38  ;;  %v4064_v6 = vmul.f32 %v3931_v38, %v3931_v38 }
 0x30a   : > { %v3809_v50 = vpop.f32.mrf.mxu3 }
 0x30b   : > { %v4095_v17 = vadd.f32 %v4094_v51, %v4064_v6  ;;  %v3810_v16 = vadd.f32 %v3809_v50, %v3720_v54 }
 0x30d   : > { %v3899_v45 = vadd.f32 %v3898_v37, %v3810_v16 }
 0x30f   : > { %v3932_v43 = vadd.f32 %v3899_v45, %v2910_v28 }
 0x311   : > { %v4902_v18 = vpack.c.bf16 %v3932_v43, %v3931_v38  ;;  %v4027_v49 = vadd.f32 %v4026_v58, %v3932_v43  ;;  %v4065_v26 = vmul.f32 %v3932_v43, %v3932_v43 }
 0x313   : > { %5027 = vst [vmem:[%s6137_s23 + $0x78] sm:$0xff] %v4902_v18   ;;  %v4028_v33 = vrot.slane %v4027_v49, 4  ;;  %v4096_v10 = vadd.f32 %v4095_v17, %v4065_v26 }
 0x315   : > { %v4029_v56 = vadd.f32 %v4028_v33, %v4027_v49  ;;  %v4097_v3 = vrot.slane %v4096_v10, 4 }
 0x317   : > { %v4030_v36 = vrot.slane %v4029_v56, 2  ;;  %v4098_v11 = vadd.f32 %v4097_v3, %v4096_v10 }
 0x319   : > { %v4031_v21 = vadd.f32 %v4030_v36, %v4029_v56  ;;  %v4099_v1 = vrot.slane %v4098_v11, 2 }
 0x31b   : > { %v4032_v55 = vrot.slane %v4031_v21, 1  ;;  %v4100_v52 = vadd.f32 %v4099_v1, %v4098_v11 }
 0x31d   : > { %v4101_v19 = vrot.slane %v4100_v52, 1  ;;  %v4033_v5 = vadd.f32 %v4032_v55, %v4031_v21 }
 0x31f   : > { %v4102_v62 = vadd.f32 %v4101_v19, %v4100_v52 }
 0x321   : > { %v4104_v20 = vsel %vm662_vm0, %v4033_v5, %v4102_v62 }
 0x322   : > { %v4106_v60 = vsel %vm4105_vm5, %v4104_v20, 0.0 }
 0x323   : > { %4107 = vst [vmem:[%s236_s27] sm:$0xff] %v4106_v60 }
 0x324 PF: > { %s16_s18 = sadd.s32 1, %s5144_s18  }
 0x325   : > { %p13_p5 = scmp.ge.s32.totalorder %s16_s18, 4  }
 0x327   :  { %15 = sbr.rel (!%p13_p5) target bundleno = 1 (0x1), region = 82 }

</bundles_post_ra>
